<compile_context>
chip_gen: v5e
topology: v5e:2x2
jax: 0.10.0
libtpu: 0.0.40
codegen_flags: <defaults>
</compile_context>

<pallas_src>
import jax
import jax.numpy as jnp
from jax.experimental import pallas as pl

# ---------------- problem sizes (small, consistent with the module) ----------------
M = 3        # num_meta_paths
N = 16       # number of graph nodes
DIN = 32     # in_size
F = 16       # out_size (per head)
H = 4        # layer_num_heads
HID = 128    # SemanticAttention hidden_size (module default)
HF = H * F   # per-node embedding per metapath (flattened heads)
MH = M * H   # total (metapath, head) pairs
HN = H * N   # per-metapath edge-logit width (heads * src nodes)

NEG_SLOPE = 0.2   # DGL GATConv default negative_slope
MASK_VAL = -1e30


# ------------------------- fused HANLayer kernel (single call) -------------------------
def han_kernel(h_ref, wflat_ref, arsel_ref, alsel_ref, diagmask_ref, adjt_ref,
               sumsel_ref, segexp_ref, tileeye_ref, blockmask_ref, bias_ref,
               w1_ref, b1_ref, w2_ref, out_ref):
    f32 = jnp.float32
    h = h_ref[...]                                                        # (N, DIN)

    # ---- projection for all (metapath, head) pairs: one MXU matmul, lane-dense ----
    z_all = jnp.dot(h, wflat_ref[...], preferred_element_type=f32)        # (N, MH*F) = (16,192)

    # ---- edge logits for all pairs as one (N, MH*N) slab: e[d, mh*N+s] = er[mh][d] + el[mh][s]
    er_exp = jnp.dot(z_all, arsel_ref[...], preferred_element_type=f32)   # (N, MH*N)  er[mh][d]
    g_el = jnp.dot(z_all, alsel_ref[...], preferred_element_type=f32)     # (N, MH*N)  el[mh][row]
    w_el = g_el * diagmask_ref[...]                                       # keep el only where row == s
    ones_nn = jnp.ones((N, N), dtype=f32)
    el_exp = jnp.dot(ones_nn, w_el, preferred_element_type=f32)           # (N, MH*N)  el[mh][s], all rows
    e_all = er_exp + el_exp

    # ---- leaky relu + adjacency mask + segment softmax, all on the full (16,192) slab ----
    e_all = jnp.where(e_all > 0, e_all, NEG_SLOPE * e_all)                # leaky relu (VPU, one pass)
    e_all = jnp.where(adjt_ref[...] > 0, e_all, MASK_VAL)                 # mask non-edges (VPU, one pass)
    # Row-global max: the same shift per dst row for every segment -> per-segment softmax is
    # unchanged (shift invariance).  Safe here: logits are O(1), so no segment underflows.
    e_all = e_all - jnp.max(e_all, axis=1, keepdims=True)                 # single XLU reduce
    p_all = jnp.exp(e_all)                                                # EUP, one pass
    denom = jnp.dot(p_all, sumsel_ref[...], preferred_element_type=f32)   # (N, MH) per-segment sums (MXU)
    inv = pl.reciprocal(denom, approx=True)                               # (N, MH)  EUP
    inv_exp = jnp.dot(inv, segexp_ref[...], preferred_element_type=f32)   # (N, MH*N) broadcast via MXU
    alpha = p_all * inv_exp                                               # (N, MH*N)

    # ---- per-metapath: block-diagonal aggregation, bias + ELU, semantic projection ----
    tile_eye = tileeye_ref[...]        # (H*N, N)   tiled identity
    blockmask = blockmask_ref[...]     # (H*N, H*F) per-head block-diagonal mask
    w1 = w1_ref[...]                   # (HF, HID)
    b1 = b1_ref[...]                   # (1, HID)
    w2 = w2_ref[...]                   # (HID, 1)

    embs, scores = [], []
    for m in range(M):                                                    # tiny static unroll (M=3)
        z_m = z_all[:, m * HF:(m + 1) * HF]                               # (N, H*F)
        alpha_m = alpha[:, m * HN:(m + 1) * HN]                           # (N, H*N)
        z_bd = jnp.dot(tile_eye, z_m, preferred_element_type=f32) * blockmask   # (H*N, H*F) block-diag
        rst = jnp.dot(alpha_m, z_bd, preferred_element_type=f32)          # (N, H*F): all heads in one matmul
        rst = rst + bias_ref[m:m + 1, :]
        emb = jnp.where(rst > 0, rst, jnp.exp(jnp.minimum(rst, 0.0)) - 1.0)   # overflow-safe ELU
        t = jnp.tanh(jnp.dot(emb, w1, preferred_element_type=f32) + b1)   # (N, HID)
        scores.append(jnp.dot(t, w2, preferred_element_type=f32))         # (N, 1)
        embs.append(emb)

    # ---- semantic softmax over metapaths (M=3 tiny columns) + weighted sum ----
    smax = scores[0]
    for s in scores[1:]:
        smax = jnp.maximum(smax, s)
    ps = [jnp.exp(s - smax) for s in scores]
    den = ps[0]
    for p in ps[1:]:
        den = den + p
    inv_den = pl.reciprocal(den, approx=True)                             # (N, 1)

    acc = ps[0] * embs[0]
    for m in range(1, M):
        acc = acc + ps[m] * embs[m]
    out_ref[...] = acc * inv_den                                          # single (16,64) store


# ------------------------------- full HANLayer forward -------------------------------
@jax.jit
def han_layer_forward(adj, h, params):
    f32 = jnp.float32
    # ---- host-side layout plumbing (selector matrices, constant-folded by XLA) ----
    eye_mh = jnp.eye(MH, dtype=f32)
    eye_n = jnp.eye(N, dtype=f32)

    # projection weights: (M,H,DIN,F) -> (DIN, MH*F)
    w_flat = jnp.transpose(params["gat_w"], (2, 0, 1, 3)).reshape(DIN, MH * F)

    # attention-vector selectors, expanded per source slot:
    #   sel[mh'*F+f, mh*N+s] = a[mh, f] if mh' == mh else 0
    ar_flat = params["attn_r"].reshape(MH, F)
    al_flat = params["attn_l"].reshape(MH, F)
    ones_src = jnp.ones((1, 1, 1, N), f32)
    ar_sel = (eye_mh[:, None, :, None] * ar_flat[:, :, None, None] * ones_src).reshape(MH * F, MH * N)
    al_sel = (eye_mh[:, None, :, None] * al_flat[:, :, None, None] * ones_src).reshape(MH * F, MH * N)

    # diag_mask[row, mh*N+s] = (row == s)
    diag_mask = jnp.tile(eye_n, (1, MH))                                   # (N, MH*N)
    # adjacency tiled per head: adj_tiled[d, (m*H+hh)*N+s] = adj[m, d, s]
    adj_tiled = jnp.repeat(adj, H, axis=0).transpose(1, 0, 2).reshape(N, MH * N)
    # per-segment sum / broadcast selectors
    sum_sel = jnp.repeat(eye_mh, N, axis=0)                                # (MH*N, MH)
    seg_exp = jnp.repeat(eye_mh, N, axis=1)                                # (MH, MH*N)
    # block-diagonal aggregation helpers (per metapath)
    tile_eye = jnp.tile(eye_n, (H, 1))                                     # (H*N, N)
    blockmask = jnp.kron(jnp.eye(H, dtype=f32), jnp.ones((N, F), f32))     # (H*N, H*F)
    b_flat = params["gat_b"].reshape(M, HF)                                # (M, HF)

    return pl.pallas_call(
        han_kernel,
        out_shape=jax.ShapeDtypeStruct((N, HF), jnp.float32),
    )(h, w_flat, ar_sel, al_sel, diag_mask, adj_tiled,
      sum_sel, seg_exp, tile_eye, blockmask, b_flat,
      params["sem_w1"], params["sem_b1"], params["sem_w2"])


# ------------------------------- pure-JAX reference -------------------------------
def ref_forward(adj, h, params):
    w, al, ar, b = params["gat_w"], params["attn_l"], params["attn_r"], params["gat_b"]
    embs = []
    for m in range(M):
        heads = []
        for hh in range(H):
            z = h @ w[m, hh]
            el = z @ al[m, hh]
            er = z @ ar[m, hh]
            e = er[:, None] + el[None, :]
            e = jnp.where(e > 0, e, NEG_SLOPE * e)
            e = jnp.where(adj[m] > 0, e, MASK_VAL)
            e = e - e.max(axis=1, keepdims=True)
            p = jnp.exp(e)
            alpha = p / p.sum(axis=1, keepdims=True)
            r = alpha @ z + b[m, hh]
            r = jnp.where(r > 0, r, jnp.exp(r) - 1.0)
            heads.append(r)
        embs.append(jnp.concatenate(heads, axis=-1))
    zst = jnp.stack(embs, axis=1)                               # (N, M, HF)
    wsc = jnp.tanh(zst @ params["sem_w1"] + params["sem_b1"]) @ params["sem_w2"]
    beta = jax.nn.softmax(wsc, axis=1)
    return (beta * zst).sum(axis=1)


# ------------------------------------- main -------------------------------------
if __name__ == "__main__":
    key = jax.random.PRNGKey(0)
    (k_adj, k_h, k_w, k_al, k_ar, k_b, k_w1, k_b1, k_w2) = jax.random.split(key, 9)

    # dense metapath adjacency with guaranteed self-loops
    adj = (jax.random.uniform(k_adj, (M, N, N)) < 0.3).astype(jnp.float32)
    adj = jnp.maximum(adj, jnp.eye(N, dtype=jnp.float32)[None])

    h = jax.random.normal(k_h, (N, DIN), dtype=jnp.float32)

    params = {
        "gat_w": 0.1 * jax.random.normal(k_w, (M, H, DIN, F), dtype=jnp.float32),
        "attn_l": 0.1 * jax.random.normal(k_al, (M, H, F), dtype=jnp.float32),
        "attn_r": 0.1 * jax.random.normal(k_ar, (M, H, F), dtype=jnp.float32),
        "gat_b": 0.1 * jax.random.normal(k_b, (M, H, F), dtype=jnp.float32),
        "sem_w1": 0.1 * jax.random.normal(k_w1, (HF, HID), dtype=jnp.float32),
        "sem_b1": 0.1 * jax.random.normal(k_b1, (1, HID), dtype=jnp.float32),
        "sem_w2": 0.1 * jax.random.normal(k_w2, (HID, 1), dtype=jnp.float32),
    }

    out = han_layer_forward(adj, h, params)
    out = jax.block_until_ready(out)

    ref = ref_forward(adj, h, params)
    assert out.shape == (N, HF), out.shape
    assert bool(jnp.all(jnp.isfinite(out)))
    assert bool(jnp.allclose(out, ref, atol=1e-2, rtol=1e-2)), "mismatch vs reference"

    print("KERNEL_OK")
</pallas_src>

<mosaic_0001>
module attributes {stable_mosaic.version = 11 : i64} {
  func.func @han_kernel(%arg0: memref<16x32xf32, #tpu.memory_space<vmem>>, %arg1: memref<32x192xf32, #tpu.memory_space<vmem>>, %arg2: memref<192x192xf32, #tpu.memory_space<vmem>>, %arg3: memref<192x192xf32, #tpu.memory_space<vmem>>, %arg4: memref<16x192xf32, #tpu.memory_space<vmem>>, %arg5: memref<16x192xf32, #tpu.memory_space<vmem>>, %arg6: memref<192x12xf32, #tpu.memory_space<vmem>>, %arg7: memref<12x192xf32, #tpu.memory_space<vmem>>, %arg8: memref<64x16xf32, #tpu.memory_space<vmem>>, %arg9: memref<64x64xf32, #tpu.memory_space<vmem>>, %arg10: memref<3x64xf32, #tpu.memory_space<vmem>>, %arg11: memref<64x128xf32, #tpu.memory_space<vmem>>, %arg12: memref<1x128xf32, #tpu.memory_space<vmem>>, %arg13: memref<128x1xf32, #tpu.memory_space<vmem>>, %arg14: memref<16x64xf32, #tpu.memory_space<vmem>>) attributes {dimension_semantics = [], scalar_prefetch = 0 : i64, scratch_operands = 0 : i64, tpu.core_type = #tpu.core_type<tc>} {
    %c0 = arith.constant 0 : index
    %c0_0 = arith.constant 0 : index
    %0 = vector.load %arg0[%c0, %c0_0] : memref<16x32xf32, #tpu.memory_space<vmem>>, vector<16x32xf32>
    %c0_1 = arith.constant 0 : index
    %c0_2 = arith.constant 0 : index
    %1 = vector.load %arg1[%c0_1, %c0_2] : memref<32x192xf32, #tpu.memory_space<vmem>>, vector<32x192xf32>
    %cst = arith.constant dense<0.000000e+00> : vector<16x192xf32>
    %2 = tpu.matmul %0, %1, %cst {dimension_numbers = #tpu.dot_dimension_numbers<[1], [0], [0], [1], [0, 0, 1, 1], [], []>} : vector<16x32xf32>, vector<32x192xf32>, vector<16x192xf32> -> vector<16x192xf32>
    %c0_3 = arith.constant 0 : index
    %c0_4 = arith.constant 0 : index
    %3 = vector.load %arg2[%c0_3, %c0_4] : memref<192x192xf32, #tpu.memory_space<vmem>>, vector<192x192xf32>
    %cst_5 = arith.constant dense<0.000000e+00> : vector<16x192xf32>
    %4 = tpu.matmul %2, %3, %cst_5 {dimension_numbers = #tpu.dot_dimension_numbers<[1], [0], [0], [1], [0, 0, 1, 1], [], []>} : vector<16x192xf32>, vector<192x192xf32>, vector<16x192xf32> -> vector<16x192xf32>
    %c0_6 = arith.constant 0 : index
    %c0_7 = arith.constant 0 : index
    %5 = vector.load %arg3[%c0_6, %c0_7] : memref<192x192xf32, #tpu.memory_space<vmem>>, vector<192x192xf32>
    %cst_8 = arith.constant dense<0.000000e+00> : vector<16x192xf32>
    %6 = tpu.matmul %2, %5, %cst_8 {dimension_numbers = #tpu.dot_dimension_numbers<[1], [0], [0], [1], [0, 0, 1, 1], [], []>} : vector<16x192xf32>, vector<192x192xf32>, vector<16x192xf32> -> vector<16x192xf32>
    %c0_9 = arith.constant 0 : index
    %c0_10 = arith.constant 0 : index
    %7 = vector.load %arg4[%c0_9, %c0_10] : memref<16x192xf32, #tpu.memory_space<vmem>>, vector<16x192xf32>
    %8 = arith.mulf %6, %7 : vector<16x192xf32>
    %cst_11 = arith.constant 1.000000e+00 : f32
    %9 = vector.broadcast %cst_11 : f32 to vector<16x16xf32>
    %cst_12 = arith.constant dense<0.000000e+00> : vector<16x192xf32>
    %10 = tpu.matmul %9, %8, %cst_12 {dimension_numbers = #tpu.dot_dimension_numbers<[1], [0], [0], [1], [0, 0, 1, 1], [], []>} : vector<16x16xf32>, vector<16x192xf32>, vector<16x192xf32> -> vector<16x192xf32>
    %11 = arith.addf %4, %10 : vector<16x192xf32>
    %cst_13 = arith.constant 0.000000e+00 : f32
    %12 = vector.broadcast %cst_13 : f32 to vector<16x192xf32>
    %13 = arith.cmpf ogt, %11, %12 : vector<16x192xf32>
    %cst_14 = arith.constant 2.000000e-01 : f32
    %14 = vector.broadcast %cst_14 : f32 to vector<16x192xf32>
    %15 = arith.mulf %14, %11 : vector<16x192xf32>
    %16 = arith.select %13, %11, %15 : vector<16x192xi1>, vector<16x192xf32>
    %c0_15 = arith.constant 0 : index
    %c0_16 = arith.constant 0 : index
    %17 = vector.load %arg5[%c0_15, %c0_16] : memref<16x192xf32, #tpu.memory_space<vmem>>, vector<16x192xf32>
    %cst_17 = arith.constant 0.000000e+00 : f32
    %18 = vector.broadcast %cst_17 : f32 to vector<16x192xf32>
    %19 = arith.cmpf ogt, %17, %18 : vector<16x192xf32>
    %cst_18 = arith.constant -1.000000e+30 : f32
    %20 = vector.broadcast %cst_18 : f32 to vector<16x192xf32>
    %21 = arith.select %19, %16, %20 : vector<16x192xi1>, vector<16x192xf32>
    %cst_19 = arith.constant dense<0xFF800000> : vector<16xf32>
    %22 = vector.multi_reduction <maximumf>, %21, %cst_19 [1] : vector<16x192xf32> to vector<16xf32>
    %23 = vector.shape_cast %22 : vector<16xf32> to vector<16x1xf32>
    %24 = vector.broadcast %23 : vector<16x1xf32> to vector<16x192xf32>
    %25 = arith.subf %21, %24 : vector<16x192xf32>
    %26 = math.exp %25 : vector<16x192xf32>
    %c0_20 = arith.constant 0 : index
    %c0_21 = arith.constant 0 : index
    %27 = vector.load %arg6[%c0_20, %c0_21] : memref<192x12xf32, #tpu.memory_space<vmem>>, vector<192x12xf32>
    %cst_22 = arith.constant dense<0.000000e+00> : vector<16x12xf32>
    %28 = tpu.matmul %26, %27, %cst_22 {dimension_numbers = #tpu.dot_dimension_numbers<[1], [0], [0], [1], [0, 0, 1, 1], [], []>} : vector<16x192xf32>, vector<192x12xf32>, vector<16x12xf32> -> vector<16x12xf32>
    %29 = tpu.reciprocal %28 {approx = true} : vector<16x12xf32> -> vector<16x12xf32>
    %c0_23 = arith.constant 0 : index
    %c0_24 = arith.constant 0 : index
    %30 = vector.load %arg7[%c0_23, %c0_24] : memref<12x192xf32, #tpu.memory_space<vmem>>, vector<12x192xf32>
    %cst_25 = arith.constant dense<0.000000e+00> : vector<16x192xf32>
    %31 = tpu.matmul %29, %30, %cst_25 {dimension_numbers = #tpu.dot_dimension_numbers<[1], [0], [0], [1], [0, 0, 1, 1], [], []>} : vector<16x12xf32>, vector<12x192xf32>, vector<16x192xf32> -> vector<16x192xf32>
    %32 = arith.mulf %26, %31 : vector<16x192xf32>
    %c0_26 = arith.constant 0 : index
    %c0_27 = arith.constant 0 : index
    %33 = vector.load %arg8[%c0_26, %c0_27] : memref<64x16xf32, #tpu.memory_space<vmem>>, vector<64x16xf32>
    %c0_28 = arith.constant 0 : index
    %c0_29 = arith.constant 0 : index
    %34 = vector.load %arg9[%c0_28, %c0_29] : memref<64x64xf32, #tpu.memory_space<vmem>>, vector<64x64xf32>
    %c0_30 = arith.constant 0 : index
    %c0_31 = arith.constant 0 : index
    %35 = vector.load %arg11[%c0_30, %c0_31] : memref<64x128xf32, #tpu.memory_space<vmem>>, vector<64x128xf32>
    %c0_32 = arith.constant 0 : index
    %c0_33 = arith.constant 0 : index
    %36 = vector.load %arg12[%c0_32, %c0_33] : memref<1x128xf32, #tpu.memory_space<vmem>>, vector<1x128xf32>
    %c0_34 = arith.constant 0 : index
    %c0_35 = arith.constant 0 : index
    %37 = vector.load %arg13[%c0_34, %c0_35] : memref<128x1xf32, #tpu.memory_space<vmem>>, vector<128x1xf32>
    %38 = vector.extract_strided_slice %2 {offsets = [0, 0], sizes = [16, 64], strides = [1, 1]} : vector<16x192xf32> to vector<16x64xf32>
    %39 = vector.extract_strided_slice %32 {offsets = [0, 0], sizes = [16, 64], strides = [1, 1]} : vector<16x192xf32> to vector<16x64xf32>
    %cst_36 = arith.constant dense<0.000000e+00> : vector<64x64xf32>
    %40 = tpu.matmul %33, %38, %cst_36 {dimension_numbers = #tpu.dot_dimension_numbers<[1], [0], [0], [1], [0, 0, 1, 1], [], []>} : vector<64x16xf32>, vector<16x64xf32>, vector<64x64xf32> -> vector<64x64xf32>
    %41 = arith.mulf %40, %34 : vector<64x64xf32>
    %cst_37 = arith.constant dense<0.000000e+00> : vector<16x64xf32>
    %42 = tpu.matmul %39, %41, %cst_37 {dimension_numbers = #tpu.dot_dimension_numbers<[1], [0], [0], [1], [0, 0, 1, 1], [], []>} : vector<16x64xf32>, vector<64x64xf32>, vector<16x64xf32> -> vector<16x64xf32>
    %c0_38 = arith.constant 0 : index
    %c0_39 = arith.constant 0 : index
    %43 = vector.load %arg10[%c0_38, %c0_39] : memref<3x64xf32, #tpu.memory_space<vmem>>, vector<1x64xf32>
    %44 = vector.broadcast %43 : vector<1x64xf32> to vector<16x64xf32>
    %45 = arith.addf %42, %44 : vector<16x64xf32>
    %cst_40 = arith.constant 0.000000e+00 : f32
    %46 = vector.broadcast %cst_40 : f32 to vector<16x64xf32>
    %47 = arith.cmpf ogt, %45, %46 : vector<16x64xf32>
    %cst_41 = arith.constant 0.000000e+00 : f32
    %48 = vector.broadcast %cst_41 : f32 to vector<16x64xf32>
    %49 = arith.minimumf %45, %48 : vector<16x64xf32>
    %50 = math.exp %49 : vector<16x64xf32>
    %cst_42 = arith.constant 1.000000e+00 : f32
    %51 = vector.broadcast %cst_42 : f32 to vector<16x64xf32>
    %52 = arith.subf %50, %51 : vector<16x64xf32>
    %53 = arith.select %47, %45, %52 : vector<16x64xi1>, vector<16x64xf32>
    %cst_43 = arith.constant dense<0.000000e+00> : vector<16x128xf32>
    %54 = tpu.matmul %53, %35, %cst_43 {dimension_numbers = #tpu.dot_dimension_numbers<[1], [0], [0], [1], [0, 0, 1, 1], [], []>} : vector<16x64xf32>, vector<64x128xf32>, vector<16x128xf32> -> vector<16x128xf32>
    %55 = vector.broadcast %36 : vector<1x128xf32> to vector<16x128xf32>
    %56 = arith.addf %54, %55 : vector<16x128xf32>
    %57 = math.tanh %56 : vector<16x128xf32>
    %cst_44 = arith.constant dense<0.000000e+00> : vector<16x1xf32>
    %58 = tpu.matmul %57, %37, %cst_44 {dimension_numbers = #tpu.dot_dimension_numbers<[1], [0], [0], [1], [0, 0, 1, 1], [], []>} : vector<16x128xf32>, vector<128x1xf32>, vector<16x1xf32> -> vector<16x1xf32>
    %59 = vector.extract_strided_slice %2 {offsets = [0, 64], sizes = [16, 64], strides = [1, 1]} : vector<16x192xf32> to vector<16x64xf32>
    %60 = vector.extract_strided_slice %32 {offsets = [0, 64], sizes = [16, 64], strides = [1, 1]} : vector<16x192xf32> to vector<16x64xf32>
    %cst_45 = arith.constant dense<0.000000e+00> : vector<64x64xf32>
    %61 = tpu.matmul %33, %59, %cst_45 {dimension_numbers = #tpu.dot_dimension_numbers<[1], [0], [0], [1], [0, 0, 1, 1], [], []>} : vector<64x16xf32>, vector<16x64xf32>, vector<64x64xf32> -> vector<64x64xf32>
    %62 = arith.mulf %61, %34 : vector<64x64xf32>
    %cst_46 = arith.constant dense<0.000000e+00> : vector<16x64xf32>
    %63 = tpu.matmul %60, %62, %cst_46 {dimension_numbers = #tpu.dot_dimension_numbers<[1], [0], [0], [1], [0, 0, 1, 1], [], []>} : vector<16x64xf32>, vector<64x64xf32>, vector<16x64xf32> -> vector<16x64xf32>
    %c1 = arith.constant 1 : index
    %c0_47 = arith.constant 0 : index
    %64 = vector.load %arg10[%c1, %c0_47] : memref<3x64xf32, #tpu.memory_space<vmem>>, vector<1x64xf32>
    %65 = vector.broadcast %64 : vector<1x64xf32> to vector<16x64xf32>
    %66 = arith.addf %63, %65 : vector<16x64xf32>
    %cst_48 = arith.constant 0.000000e+00 : f32
    %67 = vector.broadcast %cst_48 : f32 to vector<16x64xf32>
    %68 = arith.cmpf ogt, %66, %67 : vector<16x64xf32>
    %cst_49 = arith.constant 0.000000e+00 : f32
    %69 = vector.broadcast %cst_49 : f32 to vector<16x64xf32>
    %70 = arith.minimumf %66, %69 : vector<16x64xf32>
    %71 = math.exp %70 : vector<16x64xf32>
    %cst_50 = arith.constant 1.000000e+00 : f32
    %72 = vector.broadcast %cst_50 : f32 to vector<16x64xf32>
    %73 = arith.subf %71, %72 : vector<16x64xf32>
    %74 = arith.select %68, %66, %73 : vector<16x64xi1>, vector<16x64xf32>
    %cst_51 = arith.constant dense<0.000000e+00> : vector<16x128xf32>
    %75 = tpu.matmul %74, %35, %cst_51 {dimension_numbers = #tpu.dot_dimension_numbers<[1], [0], [0], [1], [0, 0, 1, 1], [], []>} : vector<16x64xf32>, vector<64x128xf32>, vector<16x128xf32> -> vector<16x128xf32>
    %76 = vector.broadcast %36 : vector<1x128xf32> to vector<16x128xf32>
    %77 = arith.addf %75, %76 : vector<16x128xf32>
    %78 = math.tanh %77 : vector<16x128xf32>
    %cst_52 = arith.constant dense<0.000000e+00> : vector<16x1xf32>
    %79 = tpu.matmul %78, %37, %cst_52 {dimension_numbers = #tpu.dot_dimension_numbers<[1], [0], [0], [1], [0, 0, 1, 1], [], []>} : vector<16x128xf32>, vector<128x1xf32>, vector<16x1xf32> -> vector<16x1xf32>
    %80 = vector.extract_strided_slice %2 {offsets = [0, 128], sizes = [16, 64], strides = [1, 1]} : vector<16x192xf32> to vector<16x64xf32>
    %81 = vector.extract_strided_slice %32 {offsets = [0, 128], sizes = [16, 64], strides = [1, 1]} : vector<16x192xf32> to vector<16x64xf32>
    %cst_53 = arith.constant dense<0.000000e+00> : vector<64x64xf32>
    %82 = tpu.matmul %33, %80, %cst_53 {dimension_numbers = #tpu.dot_dimension_numbers<[1], [0], [0], [1], [0, 0, 1, 1], [], []>} : vector<64x16xf32>, vector<16x64xf32>, vector<64x64xf32> -> vector<64x64xf32>
    %83 = arith.mulf %82, %34 : vector<64x64xf32>
    %cst_54 = arith.constant dense<0.000000e+00> : vector<16x64xf32>
    %84 = tpu.matmul %81, %83, %cst_54 {dimension_numbers = #tpu.dot_dimension_numbers<[1], [0], [0], [1], [0, 0, 1, 1], [], []>} : vector<16x64xf32>, vector<64x64xf32>, vector<16x64xf32> -> vector<16x64xf32>
    %c2 = arith.constant 2 : index
    %c0_55 = arith.constant 0 : index
    %85 = vector.load %arg10[%c2, %c0_55] : memref<3x64xf32, #tpu.memory_space<vmem>>, vector<1x64xf32>
    %86 = vector.broadcast %85 : vector<1x64xf32> to vector<16x64xf32>
    %87 = arith.addf %84, %86 : vector<16x64xf32>
    %cst_56 = arith.constant 0.000000e+00 : f32
    %88 = vector.broadcast %cst_56 : f32 to vector<16x64xf32>
    %89 = arith.cmpf ogt, %87, %88 : vector<16x64xf32>
    %cst_57 = arith.constant 0.000000e+00 : f32
    %90 = vector.broadcast %cst_57 : f32 to vector<16x64xf32>
    %91 = arith.minimumf %87, %90 : vector<16x64xf32>
    %92 = math.exp %91 : vector<16x64xf32>
    %cst_58 = arith.constant 1.000000e+00 : f32
    %93 = vector.broadcast %cst_58 : f32 to vector<16x64xf32>
    %94 = arith.subf %92, %93 : vector<16x64xf32>
    %95 = arith.select %89, %87, %94 : vector<16x64xi1>, vector<16x64xf32>
    %cst_59 = arith.constant dense<0.000000e+00> : vector<16x128xf32>
    %96 = tpu.matmul %95, %35, %cst_59 {dimension_numbers = #tpu.dot_dimension_numbers<[1], [0], [0], [1], [0, 0, 1, 1], [], []>} : vector<16x64xf32>, vector<64x128xf32>, vector<16x128xf32> -> vector<16x128xf32>
    %97 = vector.broadcast %36 : vector<1x128xf32> to vector<16x128xf32>
    %98 = arith.addf %96, %97 : vector<16x128xf32>
    %99 = math.tanh %98 : vector<16x128xf32>
    %cst_60 = arith.constant dense<0.000000e+00> : vector<16x1xf32>
    %100 = tpu.matmul %99, %37, %cst_60 {dimension_numbers = #tpu.dot_dimension_numbers<[1], [0], [0], [1], [0, 0, 1, 1], [], []>} : vector<16x128xf32>, vector<128x1xf32>, vector<16x1xf32> -> vector<16x1xf32>
    %101 = arith.maximumf %58, %79 : vector<16x1xf32>
    %102 = arith.maximumf %101, %100 : vector<16x1xf32>
    %103 = arith.subf %58, %102 : vector<16x1xf32>
    %104 = math.exp %103 : vector<16x1xf32>
    %105 = arith.subf %79, %102 : vector<16x1xf32>
    %106 = math.exp %105 : vector<16x1xf32>
    %107 = arith.subf %100, %102 : vector<16x1xf32>
    %108 = math.exp %107 : vector<16x1xf32>
    %109 = arith.addf %104, %106 : vector<16x1xf32>
    %110 = arith.addf %109, %108 : vector<16x1xf32>
    %111 = tpu.reciprocal %110 {approx = true} : vector<16x1xf32> -> vector<16x1xf32>
    %112 = vector.broadcast %104 : vector<16x1xf32> to vector<16x64xf32>
    %113 = arith.mulf %112, %53 : vector<16x64xf32>
    %114 = vector.broadcast %106 : vector<16x1xf32> to vector<16x64xf32>
    %115 = arith.mulf %114, %74 : vector<16x64xf32>
    %116 = arith.addf %113, %115 : vector<16x64xf32>
    %117 = vector.broadcast %108 : vector<16x1xf32> to vector<16x64xf32>
    %118 = arith.mulf %117, %95 : vector<16x64xf32>
    %119 = arith.addf %116, %118 : vector<16x64xf32>
    %120 = vector.broadcast %111 : vector<16x1xf32> to vector<16x64xf32>
    %121 = arith.mulf %119, %120 : vector<16x64xf32>
    %c0_61 = arith.constant 0 : index
    %c0_62 = arith.constant 0 : index
    %122 = vector.load %arg14[%c0_61, %c0_62] : memref<16x64xf32, #tpu.memory_space<vmem>>, vector<16x64xf32>
    tpu.vector_store %arg14[%c0_61, %c0_62], %121 {strides = array<i32>} : memref<16x64xf32, #tpu.memory_space<vmem>>, vector<16x64xf32>,
    return
  }
}

</mosaic_0001>

<bundles_post_ra>
// kernel: mul.43
= control target key start
LH: loop header
LB: loop body
LE: loop exit
PB: predicated region body
PF: predicated region fallthrough
CT: control target
= control target key end

     0   :  { %v5_v0 = vlaneseq  ;;  %s7576_s0 = inlined_call_operand.vmem [shape: f32[12,16,12], index: 0, kind: input, shape index: {}]   ;;  %s7577_s1 = inlined_call_operand.vmem [shape: f32[12,16,12,16], index: 1, kind: output, shape index: {}]  }
   0x1   :  { %v4491_v2 = vld [vmem:[%s7576_s0 + $0x40] ss:$0 sm:$0xff]  ;;  %v4493_v5 = vld [vmem:[%s7576_s0 + $0x50] ss:$0 sm:$0xff]  ;;  %v4511_v14 = vld [vmem:[%s7576_s0 + $0x21] ss:$0 sm:$0xff] }
   0x2   :  { %v5266_v1 = vshrl.u32 %v5_v0, 7  ;;  %v4487_v3 = vld [vmem:[%s7576_s0 + $0x20] ss:$0 sm:$0xff]  ;;  %v4489_v6 = vld [vmem:[%s7576_s0 + $0x30] ss:$0 sm:$0xff] }
   0x3   :  { %v4_v4 = vld [vmem:[%s7576_s0] ss:$0 sm:$0xff]  ;;  %v4485_v7 = vld [vmem:[%s7576_s0 + $0x10] ss:$0 sm:$0xff]  ;;  %v4509_v15 = vld [vmem:[%s7576_s0 + $0x11] ss:$0 sm:$0xff] }
   0x4   :  { %5252 = vset.pattern.permute.xlu2 %v5266_v1  ;;  %5251 = vset.pattern.permute.xlu1 %v5266_v1  ;;  %v4499_v8 = vld [vmem:[%s7576_s0 + $0x80] ss:$0 sm:$0xff]  ;;  %v4497_v9 = vld [vmem:[%s7576_s0 + $0x70] ss:$0 sm:$0xff]  ;;  %v4507_v16 = vld [vmem:[%s7576_s0 + $0x1] ss:$0 sm:$0xff] }
   0x5   :  { %5250 = vset.pattern.permute.xlu0 %v5266_v1  ;;  %v4495_v10 = vld [vmem:[%s7576_s0 + $0x60] ss:$0 sm:$0xff]  ;;  %v4505_v11 = vld [vmem:[%s7576_s0 + $0xb0] ss:$0 sm:$0xff]  ;;  %v4517_v17 = vld [vmem:[%s7576_s0 + $0x51] ss:$0 sm:$0xff] }
   0x6   :  { %v4503_v12 = vld [vmem:[%s7576_s0 + $0xa0] ss:$0 sm:$0xff]  ;;  %v4501_v13 = vld [vmem:[%s7576_s0 + $0x90] ss:$0 sm:$0xff]  ;;  %v4515_v18 = vld [vmem:[%s7576_s0 + $0x41] ss:$0 sm:$0xff] }
   0x7   :  { %v4513_v19 = vld [vmem:[%s7576_s0 + $0x31] ss:$0 sm:$0xff]  ;;  %v4523_v20 = vld [vmem:[%s7576_s0 + $0x81] ss:$0 sm:$0xff]  ;;  %v4535_v26 = vld [vmem:[%s7576_s0 + $0x22] ss:$0 sm:$0xff] }
   0x8   :  { %v4521_v21 = vld [vmem:[%s7576_s0 + $0x71] ss:$0 sm:$0xff]  ;;  %v4519_v22 = vld [vmem:[%s7576_s0 + $0x61] ss:$0 sm:$0xff]  ;;  %v4533_v27 = vld [vmem:[%s7576_s0 + $0x12] ss:$0 sm:$0xff] }
   0x9   :  { %v4529_v23 = vld [vmem:[%s7576_s0 + $0xb1] ss:$0 sm:$0xff]  ;;  %v4527_v24 = vld [vmem:[%s7576_s0 + $0xa1] ss:$0 sm:$0xff]  ;;  %v4531_v28 = vld [vmem:[%s7576_s0 + $0x2] ss:$0 sm:$0xff] }
   0xa   :  { %v4525_v25 = vld [vmem:[%s7576_s0 + $0x91] ss:$0 sm:$0xff]  ;;  %v4541_v29 = vld [vmem:[%s7576_s0 + $0x52] ss:$0 sm:$0xff]  ;;  %v4539_v30 = vld [vmem:[%s7576_s0 + $0x42] ss:$0 sm:$0xff] }
   0xb   :  { %v4537_v31 = vld [vmem:[%s7576_s0 + $0x32] ss:$0 sm:$0xff]  ;;  %v4547_v32 = vld [vmem:[%s7576_s0 + $0x82] ss:$0 sm:$0xff]  ;;  %v4559_v39 = vld [vmem:[%s7576_s0 + $0x23] ss:$0 sm:$0xff] }
   0xc   :  { %48 = vperm.xlu2 %5252, %v4491_v2   ;;  %28 = vperm.xlu1 %5251, %v4487_v3   ;;  %v4545_v33 = vld [vmem:[%s7576_s0 + $0x72] ss:$0 sm:$0xff]  ;;  %v4543_v34 = vld [vmem:[%s7576_s0 + $0x62] ss:$0 sm:$0xff]  ;;  %v4557_v40 = vld [vmem:[%s7576_s0 + $0x13] ss:$0 sm:$0xff] }
   0xd   :  { %9 = vperm.xlu0 %5250, %v4_v4   ;;  %v4553_v35 = vld [vmem:[%s7576_s0 + $0xb2] ss:$0 sm:$0xff]  ;;  %v4551_v36 = vld [vmem:[%s7576_s0 + $0xa2] ss:$0 sm:$0xff]  ;;  %v4555_v41 = vld [vmem:[%s7576_s0 + $0x3] ss:$0 sm:$0xff] }
   0xe   :  { %v4549_v37 = vld [vmem:[%s7576_s0 + $0x92] ss:$0 sm:$0xff]  ;;  %v4565_v43 = vld [vmem:[%s7576_s0 + $0x53] ss:$0 sm:$0xff]  ;;  %v4563_v44 = vld [vmem:[%s7576_s0 + $0x43] ss:$0 sm:$0xff] }
   0xf   :  { %v4561_v45 = vld [vmem:[%s7576_s0 + $0x33] ss:$0 sm:$0xff]  ;;  %v4571_v47 = vld [vmem:[%s7576_s0 + $0x83] ss:$0 sm:$0xff]  ;;  %v4583_v59 = vld [vmem:[%s7576_s0 + $0x24] ss:$0 sm:$0xff] }
  0x10   :  { %v4569_v48 = vld [vmem:[%s7576_s0 + $0x73] ss:$0 sm:$0xff]  ;;  %v4567_v49 = vld [vmem:[%s7576_s0 + $0x63] ss:$0 sm:$0xff]  ;;  %v4581_v60 = vld [vmem:[%s7576_s0 + $0x14] ss:$0 sm:$0xff] }
  0x11   :  { %v4577_v53 = vld [vmem:[%s7576_s0 + $0xb3] ss:$0 sm:$0xff]  ;;  %v4575_v54 = vld [vmem:[%s7576_s0 + $0xa3] ss:$0 sm:$0xff]  ;;  %v4579_v61 = vld [vmem:[%s7576_s0 + $0x4] ss:$0 sm:$0xff] }
  0x12   :  { %v4573_v55 = vld [vmem:[%s7576_s0 + $0x93] ss:$0 sm:$0xff]  ;;  %v4589_v2 = vld [vmem:[%s7576_s0 + $0x54] ss:$0 sm:$0xff]  ;;  %v4587_v3 = vld [vmem:[%s7576_s0 + $0x44] ss:$0 sm:$0xff] }
  0x13   :  { %v4585_v4 = vld [vmem:[%s7576_s0 + $0x34] ss:$0 sm:$0xff]  ;;  %v2086_v1 = vadd.s32 8, %v5266_v1 }
  0x14   :  { %58 = vperm.xlu2 %5252, %v4493_v5   ;;  %38 = vperm.xlu1 %5251, %v4489_v6  }
  0x15   :  { %18 = vperm.xlu0 %5250, %v4485_v7  }
  0x1c   :  { %88 = vperm.xlu2 %5252, %v4499_v8   ;;  %78 = vperm.xlu1 %5251, %v4497_v9   ;;  %v4595_v8 = vld [vmem:[%s7576_s0 + $0x84] ss:$0 sm:$0xff]  ;;  %v4593_v9 = vld [vmem:[%s7576_s0 + $0x74] ss:$0 sm:$0xff] }
  0x1d   :  { %68 = vperm.xlu0 %5250, %v4495_v10   ;;  %v4591_v10 = vld [vmem:[%s7576_s0 + $0x64] ss:$0 sm:$0xff] }
  0x24   :  { %118 = vperm.xlu2 %5252, %v4505_v11   ;;  %108 = vperm.xlu1 %5251, %v4503_v12  }
  0x25   :  { %98 = vperm.xlu0 %5250, %v4501_v13  }
  0x2c   :  { %150 = vperm.xlu2 %5252, %v4511_v14   ;;  %139 = vperm.xlu1 %5251, %v4509_v15   ;;  %v4601_v14 = vld [vmem:[%s7576_s0 + $0xb4] ss:$0 sm:$0xff]  ;;  %v4599_v15 = vld [vmem:[%s7576_s0 + $0xa4] ss:$0 sm:$0xff] }
  0x2d   :  { %128 = vperm.xlu0 %5250, %v4507_v16   ;;  %v4597_v16 = vld [vmem:[%s7576_s0 + $0x94] ss:$0 sm:$0xff] }
  0x34   :  { %183 = vperm.xlu2 %5252, %v4517_v17   ;;  %172 = vperm.xlu1 %5251, %v4515_v18  }
  0x35   :  { %161 = vperm.xlu0 %5250, %v4513_v19  }
  0x3c   :  { %216 = vperm.xlu2 %5252, %v4523_v20   ;;  %205 = vperm.xlu1 %5251, %v4521_v21   ;;  %v4607_v20 = vld [vmem:[%s7576_s0 + $0x25] ss:$0 sm:$0xff]  ;;  %v4605_v21 = vld [vmem:[%s7576_s0 + $0x15] ss:$0 sm:$0xff] }
  0x3d   :  { %194 = vperm.xlu0 %5250, %v4519_v22   ;;  %v4603_v22 = vld [vmem:[%s7576_s0 + $0x5] ss:$0 sm:$0xff] }
  0x44   :  { %249 = vperm.xlu2 %5252, %v4529_v23   ;;  %238 = vperm.xlu1 %5251, %v4527_v24  }
  0x45   :  { %227 = vperm.xlu0 %5250, %v4525_v25  }
  0x4c   :  { %281 = vperm.xlu2 %5252, %v4535_v26   ;;  %270 = vperm.xlu1 %5251, %v4533_v27   ;;  %v4613_v26 = vld [vmem:[%s7576_s0 + $0x55] ss:$0 sm:$0xff]  ;;  %v4611_v27 = vld [vmem:[%s7576_s0 + $0x45] ss:$0 sm:$0xff] }
  0x4d   :  { %259 = vperm.xlu0 %5250, %v4531_v28   ;;  %v4609_v28 = vld [vmem:[%s7576_s0 + $0x35] ss:$0 sm:$0xff] }
  0x54   :  { %314 = vperm.xlu2 %5252, %v4541_v29   ;;  %303 = vperm.xlu1 %5251, %v4539_v30  }
  0x55   :  { %292 = vperm.xlu0 %5250, %v4537_v31  }
  0x5c   :  { %347 = vperm.xlu2 %5252, %v4547_v32   ;;  %336 = vperm.xlu1 %5251, %v4545_v33   ;;  %v4619_v32 = vld [vmem:[%s7576_s0 + $0x85] ss:$0 sm:$0xff]  ;;  %v4617_v33 = vld [vmem:[%s7576_s0 + $0x75] ss:$0 sm:$0xff] }
  0x5d   :  { %325 = vperm.xlu0 %5250, %v4543_v34   ;;  %v4615_v34 = vld [vmem:[%s7576_s0 + $0x65] ss:$0 sm:$0xff] }
  0x64   :  { %380 = vperm.xlu2 %5252, %v4553_v35   ;;  %369 = vperm.xlu1 %5251, %v4551_v36  }
  0x65   :  { %358 = vperm.xlu0 %5250, %v4549_v37  }
  0x66   :  { %v49_v38 = vpop.permute.xlu2 %48 }
  0x67   :  { %4492 = vst [vmem:[%s7577_s1 + $0x400] sm:$0xff] %v49_v38  ;;  %v4625_v38 = vld [vmem:[%s7576_s0 + $0xb5] ss:$0 sm:$0xff] }
  0x6c   :  { %412 = vperm.xlu2 %5252, %v4559_v39   ;;  %401 = vperm.xlu1 %5251, %v4557_v40   ;;  %v4623_v39 = vld [vmem:[%s7576_s0 + $0xa5] ss:$0 sm:$0xff]  ;;  %v4621_v40 = vld [vmem:[%s7576_s0 + $0x95] ss:$0 sm:$0xff] }
  0x6d   :  { %390 = vperm.xlu0 %5250, %v4555_v41  }
  0x6e   :  { %v59_v42 = vpop.permute.xlu2 %58 }
  0x6f   :  { %4494 = vst [vmem:[%s7577_s1 + $0x500] sm:$0xff] %v59_v42 }
  0x74   :  { %445 = vperm.xlu2 %5252, %v4565_v43   ;;  %434 = vperm.xlu1 %5251, %v4563_v44   ;;  %v4631_v44 = vld [vmem:[%s7576_s0 + $0x26] ss:$0 sm:$0xff] }
  0x75   :  { %423 = vperm.xlu0 %5250, %v4561_v45   ;;  %v4629_v45 = vld [vmem:[%s7576_s0 + $0x16] ss:$0 sm:$0xff] }
  0x76   :  { %v89_v46 = vpop.permute.xlu2 %88 }
  0x77   :  { %4500 = vst [vmem:[%s7577_s1 + $0x800] sm:$0xff] %v89_v46  ;;  %v4627_v46 = vld [vmem:[%s7576_s0 + $0x6] ss:$0 sm:$0xff] }
  0x7c   :  { %478 = vperm.xlu2 %5252, %v4571_v47   ;;  %467 = vperm.xlu1 %5251, %v4569_v48  }
  0x7d   :  { %456 = vperm.xlu0 %5250, %v4567_v49  }
  0x7e   :  { %v119_v50 = vpop.permute.xlu2 %118  ;;  %v29_v51 = vpop.permute.xlu1 %28 }
  0x7f   :  { %4506 = vst [vmem:[%s7577_s1 + $0xb00] sm:$0xff] %v119_v50  ;;  %v10_v52 = vpop.permute.xlu0 %9  ;;  %v4637_v50 = vld [vmem:[%s7576_s0 + $0x56] ss:$0 sm:$0xff] }
  0x80   :  { %4488 = vst [vmem:[%s7577_s1 + $0x200] sm:$0xff] %v29_v51  ;;  %v4635_v51 = vld [vmem:[%s7576_s0 + $0x46] ss:$0 sm:$0xff] }
  0x81   :  { %11 = vst [vmem:[%s7577_s1] sm:$0xff] %v10_v52  ;;  %v4633_v52 = vld [vmem:[%s7576_s0 + $0x36] ss:$0 sm:$0xff] }
  0x84   :  { %511 = vperm.xlu2 %5252, %v4577_v53   ;;  %500 = vperm.xlu1 %5251, %v4575_v54  }
  0x85   :  { %489 = vperm.xlu0 %5250, %v4573_v55  }
  0x86   :  { %v151_v56 = vpop.permute.xlu2 %150  ;;  %v39_v57 = vpop.permute.xlu1 %38 }
  0x87   :  { %4512 = vst [vmem:[%s7577_s1 + $0x210] sm:$0xff] %v151_v56  ;;  %v19_v58 = vpop.permute.xlu0 %18  ;;  %v4643_v56 = vld [vmem:[%s7576_s0 + $0x86] ss:$0 sm:$0xff] }
  0x88   :  { %4490 = vst [vmem:[%s7577_s1 + $0x300] sm:$0xff] %v39_v57  ;;  %v4641_v57 = vld [vmem:[%s7576_s0 + $0x76] ss:$0 sm:$0xff] }
  0x89   :  { %4486 = vst [vmem:[%s7577_s1 + $0x100] sm:$0xff] %v19_v58  ;;  %v4639_v58 = vld [vmem:[%s7576_s0 + $0x66] ss:$0 sm:$0xff] }
  0x8c   :  { %543 = vperm.xlu2 %5252, %v4583_v59   ;;  %532 = vperm.xlu1 %5251, %v4581_v60  }
  0x8d   :  { %521 = vperm.xlu0 %5250, %v4579_v61  }
  0x8e   :  { %v184_v62 = vpop.permute.xlu2 %183  ;;  %v79_v63 = vpop.permute.xlu1 %78 }
  0x8f   :  { %4518 = vst [vmem:[%s7577_s1 + $0x510] sm:$0xff] %v184_v62  ;;  %v69_v0 = vpop.permute.xlu0 %68  ;;  %v4649_v62 = vld [vmem:[%s7576_s0 + $0xb6] ss:$0 sm:$0xff] }
  0x90   :  { %4498 = vst [vmem:[%s7577_s1 + $0x700] sm:$0xff] %v79_v63  ;;  %v4647_v63 = vld [vmem:[%s7576_s0 + $0xa6] ss:$0 sm:$0xff] }
  0x91   :  { %4496 = vst [vmem:[%s7577_s1 + $0x600] sm:$0xff] %v69_v0  ;;  %v4645_v0 = vld [vmem:[%s7576_s0 + $0x96] ss:$0 sm:$0xff] }
  0x94   :  { %576 = vperm.xlu2 %5252, %v4589_v2   ;;  %565 = vperm.xlu1 %5251, %v4587_v3  }
  0x95   :  { %554 = vperm.xlu0 %5250, %v4585_v4  }
  0x96   :  { %v217_v5 = vpop.permute.xlu2 %216  ;;  %v109_v6 = vpop.permute.xlu1 %108 }
  0x97   :  { %4524 = vst [vmem:[%s7577_s1 + $0x810] sm:$0xff] %v217_v5  ;;  %v99_v7 = vpop.permute.xlu0 %98  ;;  %v4655_v5 = vld [vmem:[%s7576_s0 + $0x27] ss:$0 sm:$0xff] }
  0x98   :  { %4504 = vst [vmem:[%s7577_s1 + $0xa00] sm:$0xff] %v109_v6  ;;  %v4653_v6 = vld [vmem:[%s7576_s0 + $0x17] ss:$0 sm:$0xff] }
  0x99   :  { %4502 = vst [vmem:[%s7577_s1 + $0x900] sm:$0xff] %v99_v7  ;;  %v4651_v7 = vld [vmem:[%s7576_s0 + $0x7] ss:$0 sm:$0xff] }
  0x9c   :  { %609 = vperm.xlu2 %5252, %v4595_v8   ;;  %598 = vperm.xlu1 %5251, %v4593_v9  }
  0x9d   :  { %587 = vperm.xlu0 %5250, %v4591_v10  }
  0x9e   :  { %v250_v11 = vpop.permute.xlu2 %249  ;;  %v140_v12 = vpop.permute.xlu1 %139 }
  0x9f   :  { %4530 = vst [vmem:[%s7577_s1 + $0xb10] sm:$0xff] %v250_v11  ;;  %v129_v13 = vpop.permute.xlu0 %128  ;;  %v4661_v11 = vld [vmem:[%s7576_s0 + $0x57] ss:$0 sm:$0xff] }
  0xa0   :  { %4510 = vst [vmem:[%s7577_s1 + $0x110] sm:$0xff] %v140_v12  ;;  %v4659_v12 = vld [vmem:[%s7576_s0 + $0x47] ss:$0 sm:$0xff] }
  0xa1   :  { %4508 = vst [vmem:[%s7577_s1 + $0x10] sm:$0xff] %v129_v13  ;;  %v4657_v13 = vld [vmem:[%s7576_s0 + $0x37] ss:$0 sm:$0xff] }
  0xa4   :  { %642 = vperm.xlu2 %5252, %v4601_v14   ;;  %631 = vperm.xlu1 %5251, %v4599_v15  }
  0xa5   :  { %620 = vperm.xlu0 %5250, %v4597_v16  }
  0xa6   :  { %v282_v17 = vpop.permute.xlu2 %281  ;;  %v173_v18 = vpop.permute.xlu1 %172 }
  0xa7   :  { %4536 = vst [vmem:[%s7577_s1 + $0x220] sm:$0xff] %v282_v17  ;;  %v162_v19 = vpop.permute.xlu0 %161  ;;  %v4667_v17 = vld [vmem:[%s7576_s0 + $0x87] ss:$0 sm:$0xff] }
  0xa8   :  { %4516 = vst [vmem:[%s7577_s1 + $0x410] sm:$0xff] %v173_v18  ;;  %v4665_v18 = vld [vmem:[%s7576_s0 + $0x77] ss:$0 sm:$0xff] }
  0xa9   :  { %4514 = vst [vmem:[%s7577_s1 + $0x310] sm:$0xff] %v162_v19  ;;  %v4663_v19 = vld [vmem:[%s7576_s0 + $0x67] ss:$0 sm:$0xff] }
  0xac   :  { %674 = vperm.xlu2 %5252, %v4607_v20   ;;  %663 = vperm.xlu1 %5251, %v4605_v21  }
  0xad   :  { %652 = vperm.xlu0 %5250, %v4603_v22  }
  0xae   :  { %v315_v23 = vpop.permute.xlu2 %314  ;;  %v206_v24 = vpop.permute.xlu1 %205 }
  0xaf   :  { %4542 = vst [vmem:[%s7577_s1 + $0x520] sm:$0xff] %v315_v23  ;;  %v195_v25 = vpop.permute.xlu0 %194  ;;  %v4673_v23 = vld [vmem:[%s7576_s0 + $0xb7] ss:$0 sm:$0xff] }
  0xb0   :  { %4522 = vst [vmem:[%s7577_s1 + $0x710] sm:$0xff] %v206_v24  ;;  %v4671_v24 = vld [vmem:[%s7576_s0 + $0xa7] ss:$0 sm:$0xff] }
  0xb1   :  { %4520 = vst [vmem:[%s7577_s1 + $0x610] sm:$0xff] %v195_v25  ;;  %v4669_v25 = vld [vmem:[%s7576_s0 + $0x97] ss:$0 sm:$0xff] }
  0xb4   :  { %707 = vperm.xlu2 %5252, %v4613_v26   ;;  %696 = vperm.xlu1 %5251, %v4611_v27  }
  0xb5   :  { %685 = vperm.xlu0 %5250, %v4609_v28  }
  0xb6   :  { %v348_v29 = vpop.permute.xlu2 %347  ;;  %v239_v30 = vpop.permute.xlu1 %238 }
  0xb7   :  { %4548 = vst [vmem:[%s7577_s1 + $0x820] sm:$0xff] %v348_v29  ;;  %v228_v31 = vpop.permute.xlu0 %227  ;;  %v4679_v29 = vld [vmem:[%s7576_s0 + $0x28] ss:$0 sm:$0xff] }
  0xb8   :  { %4528 = vst [vmem:[%s7577_s1 + $0xa10] sm:$0xff] %v239_v30  ;;  %v4677_v30 = vld [vmem:[%s7576_s0 + $0x18] ss:$0 sm:$0xff] }
  0xb9   :  { %4526 = vst [vmem:[%s7577_s1 + $0x910] sm:$0xff] %v228_v31  ;;  %v4675_v31 = vld [vmem:[%s7576_s0 + $0x8] ss:$0 sm:$0xff] }
  0xbc   :  { %740 = vperm.xlu2 %5252, %v4619_v32   ;;  %729 = vperm.xlu1 %5251, %v4617_v33  }
  0xbd   :  { %718 = vperm.xlu0 %5250, %v4615_v34  }
  0xbe   :  { %v381_v35 = vpop.permute.xlu2 %380  ;;  %v271_v36 = vpop.permute.xlu1 %270 }
  0xbf   :  { %4554 = vst [vmem:[%s7577_s1 + $0xb20] sm:$0xff] %v381_v35  ;;  %v260_v37 = vpop.permute.xlu0 %259  ;;  %v4685_v35 = vld [vmem:[%s7576_s0 + $0x58] ss:$0 sm:$0xff] }
  0xc0   :  { %4534 = vst [vmem:[%s7577_s1 + $0x120] sm:$0xff] %v271_v36  ;;  %v4683_v36 = vld [vmem:[%s7576_s0 + $0x48] ss:$0 sm:$0xff] }
  0xc1   :  { %4532 = vst [vmem:[%s7577_s1 + $0x20] sm:$0xff] %v260_v37  ;;  %v4681_v37 = vld [vmem:[%s7576_s0 + $0x38] ss:$0 sm:$0xff] }
  0xc4   :  { %773 = vperm.xlu2 %5252, %v4625_v38   ;;  %762 = vperm.xlu1 %5251, %v4623_v39  }
  0xc5   :  { %751 = vperm.xlu0 %5250, %v4621_v40  }
  0xc6   :  { %v413_v41 = vpop.permute.xlu2 %412  ;;  %v304_v42 = vpop.permute.xlu1 %303 }
  0xc7   :  { %4560 = vst [vmem:[%s7577_s1 + $0x230] sm:$0xff] %v413_v41  ;;  %v293_v43 = vpop.permute.xlu0 %292  ;;  %v4691_v41 = vld [vmem:[%s7576_s0 + $0x88] ss:$0 sm:$0xff] }
  0xc8   :  { %4540 = vst [vmem:[%s7577_s1 + $0x420] sm:$0xff] %v304_v42  ;;  %v4689_v42 = vld [vmem:[%s7576_s0 + $0x78] ss:$0 sm:$0xff] }
  0xc9   :  { %4538 = vst [vmem:[%s7577_s1 + $0x320] sm:$0xff] %v293_v43  ;;  %v4687_v43 = vld [vmem:[%s7576_s0 + $0x68] ss:$0 sm:$0xff] }
  0xcc   :  { %805 = vperm.xlu2 %5252, %v4631_v44   ;;  %794 = vperm.xlu1 %5251, %v4629_v45  }
  0xcd   :  { %783 = vperm.xlu0 %5250, %v4627_v46  }
  0xce   :  { %v446_v47 = vpop.permute.xlu2 %445  ;;  %v337_v48 = vpop.permute.xlu1 %336 }
  0xcf   :  { %4566 = vst [vmem:[%s7577_s1 + $0x530] sm:$0xff] %v446_v47  ;;  %v326_v49 = vpop.permute.xlu0 %325  ;;  %v4697_v47 = vld [vmem:[%s7576_s0 + $0xb8] ss:$0 sm:$0xff] }
  0xd0   :  { %4546 = vst [vmem:[%s7577_s1 + $0x720] sm:$0xff] %v337_v48  ;;  %v4695_v48 = vld [vmem:[%s7576_s0 + $0xa8] ss:$0 sm:$0xff] }
  0xd1   :  { %4544 = vst [vmem:[%s7577_s1 + $0x620] sm:$0xff] %v326_v49  ;;  %v4693_v49 = vld [vmem:[%s7576_s0 + $0x98] ss:$0 sm:$0xff] }
  0xd4   :  { %838 = vperm.xlu2 %5252, %v4637_v50   ;;  %827 = vperm.xlu1 %5251, %v4635_v51  }
  0xd5   :  { %816 = vperm.xlu0 %5250, %v4633_v52  }
  0xd6   :  { %v479_v53 = vpop.permute.xlu2 %478  ;;  %v370_v54 = vpop.permute.xlu1 %369 }
  0xd7   :  { %4572 = vst [vmem:[%s7577_s1 + $0x830] sm:$0xff] %v479_v53  ;;  %v359_v55 = vpop.permute.xlu0 %358  ;;  %v4703_v53 = vld [vmem:[%s7576_s0 + $0x29] ss:$0 sm:$0xff] }
  0xd8   :  { %4552 = vst [vmem:[%s7577_s1 + $0xa20] sm:$0xff] %v370_v54  ;;  %v4701_v54 = vld [vmem:[%s7576_s0 + $0x19] ss:$0 sm:$0xff] }
  0xd9   :  { %4550 = vst [vmem:[%s7577_s1 + $0x920] sm:$0xff] %v359_v55  ;;  %v4699_v55 = vld [vmem:[%s7576_s0 + $0x9] ss:$0 sm:$0xff] }
  0xdc   :  { %871 = vperm.xlu2 %5252, %v4643_v56   ;;  %860 = vperm.xlu1 %5251, %v4641_v57  }
  0xdd   :  { %849 = vperm.xlu0 %5250, %v4639_v58  }
  0xde   :  { %v512_v59 = vpop.permute.xlu2 %511  ;;  %v402_v60 = vpop.permute.xlu1 %401 }
  0xdf   :  { %4578 = vst [vmem:[%s7577_s1 + $0xb30] sm:$0xff] %v512_v59  ;;  %v391_v61 = vpop.permute.xlu0 %390  ;;  %v4709_v59 = vld [vmem:[%s7576_s0 + $0x59] ss:$0 sm:$0xff] }
  0xe0   :  { %4558 = vst [vmem:[%s7577_s1 + $0x130] sm:$0xff] %v402_v60  ;;  %v4707_v60 = vld [vmem:[%s7576_s0 + $0x49] ss:$0 sm:$0xff] }
  0xe1   :  { %4556 = vst [vmem:[%s7577_s1 + $0x30] sm:$0xff] %v391_v61  ;;  %v4705_v61 = vld [vmem:[%s7576_s0 + $0x39] ss:$0 sm:$0xff] }
  0xe4   :  { %904 = vperm.xlu2 %5252, %v4649_v62   ;;  %893 = vperm.xlu1 %5251, %v4647_v63  }
  0xe5   :  { %882 = vperm.xlu0 %5250, %v4645_v0  }
  0xe6   :  { %v544_v2 = vpop.permute.xlu2 %543  ;;  %v435_v3 = vpop.permute.xlu1 %434 }
  0xe7   :  { %4584 = vst [vmem:[%s7577_s1 + $0x240] sm:$0xff] %v544_v2  ;;  %v424_v4 = vpop.permute.xlu0 %423  ;;  %v4715_v2 = vld [vmem:[%s7576_s0 + $0x89] ss:$0 sm:$0xff] }
  0xe8   :  { %4564 = vst [vmem:[%s7577_s1 + $0x430] sm:$0xff] %v435_v3  ;;  %v4713_v3 = vld [vmem:[%s7576_s0 + $0x79] ss:$0 sm:$0xff] }
  0xe9   :  { %4562 = vst [vmem:[%s7577_s1 + $0x330] sm:$0xff] %v424_v4  ;;  %v4711_v4 = vld [vmem:[%s7576_s0 + $0x69] ss:$0 sm:$0xff] }
  0xec   :  { %936 = vperm.xlu2 %5252, %v4655_v5   ;;  %925 = vperm.xlu1 %5251, %v4653_v6  }
  0xed   :  { %914 = vperm.xlu0 %5250, %v4651_v7  }
  0xee   :  { %v577_v8 = vpop.permute.xlu2 %576  ;;  %v468_v9 = vpop.permute.xlu1 %467 }
  0xef   :  { %4590 = vst [vmem:[%s7577_s1 + $0x540] sm:$0xff] %v577_v8  ;;  %v457_v10 = vpop.permute.xlu0 %456  ;;  %v4721_v8 = vld [vmem:[%s7576_s0 + $0xb9] ss:$0 sm:$0xff] }
  0xf0   :  { %4570 = vst [vmem:[%s7577_s1 + $0x730] sm:$0xff] %v468_v9  ;;  %v4719_v9 = vld [vmem:[%s7576_s0 + $0xa9] ss:$0 sm:$0xff] }
  0xf1   :  { %4568 = vst [vmem:[%s7577_s1 + $0x630] sm:$0xff] %v457_v10  ;;  %v4717_v10 = vld [vmem:[%s7576_s0 + $0x99] ss:$0 sm:$0xff] }
  0xf4   :  { %969 = vperm.xlu2 %5252, %v4661_v11   ;;  %958 = vperm.xlu1 %5251, %v4659_v12  }
  0xf5   :  { %947 = vperm.xlu0 %5250, %v4657_v13  }
  0xf6   :  { %v610_v14 = vpop.permute.xlu2 %609  ;;  %v501_v15 = vpop.permute.xlu1 %500 }
  0xf7   :  { %4596 = vst [vmem:[%s7577_s1 + $0x840] sm:$0xff] %v610_v14  ;;  %v490_v16 = vpop.permute.xlu0 %489  ;;  %v4727_v14 = vld [vmem:[%s7576_s0 + $0x2a] ss:$0 sm:$0xff] }
  0xf8   :  { %4576 = vst [vmem:[%s7577_s1 + $0xa30] sm:$0xff] %v501_v15  ;;  %v4725_v15 = vld [vmem:[%s7576_s0 + $0x1a] ss:$0 sm:$0xff] }
  0xf9   :  { %4574 = vst [vmem:[%s7577_s1 + $0x930] sm:$0xff] %v490_v16  ;;  %v4723_v16 = vld [vmem:[%s7576_s0 + $0xa] ss:$0 sm:$0xff] }
  0xfc   :  { %1002 = vperm.xlu2 %5252, %v4667_v17   ;;  %991 = vperm.xlu1 %5251, %v4665_v18  }
  0xfd   :  { %980 = vperm.xlu0 %5250, %v4663_v19  }
  0xfe   :  { %v643_v20 = vpop.permute.xlu2 %642  ;;  %v533_v21 = vpop.permute.xlu1 %532 }
  0xff   :  { %4602 = vst [vmem:[%s7577_s1 + $0xb40] sm:$0xff] %v643_v20  ;;  %v522_v22 = vpop.permute.xlu0 %521  ;;  %v4733_v20 = vld [vmem:[%s7576_s0 + $0x5a] ss:$0 sm:$0xff] }
 0x100   :  { %4582 = vst [vmem:[%s7577_s1 + $0x140] sm:$0xff] %v533_v21  ;;  %v4731_v21 = vld [vmem:[%s7576_s0 + $0x4a] ss:$0 sm:$0xff] }
 0x101   :  { %4580 = vst [vmem:[%s7577_s1 + $0x40] sm:$0xff] %v522_v22  ;;  %v4729_v22 = vld [vmem:[%s7576_s0 + $0x3a] ss:$0 sm:$0xff] }
 0x104   :  { %1035 = vperm.xlu2 %5252, %v4673_v23   ;;  %1024 = vperm.xlu1 %5251, %v4671_v24  }
 0x105   :  { %1013 = vperm.xlu0 %5250, %v4669_v25  }
 0x106   :  { %v675_v26 = vpop.permute.xlu2 %674  ;;  %v566_v27 = vpop.permute.xlu1 %565 }
 0x107   :  { %4608 = vst [vmem:[%s7577_s1 + $0x250] sm:$0xff] %v675_v26  ;;  %v555_v28 = vpop.permute.xlu0 %554  ;;  %v4739_v26 = vld [vmem:[%s7576_s0 + $0x8a] ss:$0 sm:$0xff] }
 0x108   :  { %4588 = vst [vmem:[%s7577_s1 + $0x440] sm:$0xff] %v566_v27  ;;  %v4737_v27 = vld [vmem:[%s7576_s0 + $0x7a] ss:$0 sm:$0xff] }
 0x109   :  { %4586 = vst [vmem:[%s7577_s1 + $0x340] sm:$0xff] %v555_v28  ;;  %v4735_v28 = vld [vmem:[%s7576_s0 + $0x6a] ss:$0 sm:$0xff] }
 0x10c   :  { %1065 = vperm.xlu2 %5252, %v4679_v29   ;;  %1055 = vperm.xlu1 %5251, %v4677_v30  }
 0x10d   :  { %1045 = vperm.xlu0 %5250, %v4675_v31  }
 0x10e   :  { %v708_v32 = vpop.permute.xlu2 %707  ;;  %v599_v33 = vpop.permute.xlu1 %598 }
 0x10f   :  { %4614 = vst [vmem:[%s7577_s1 + $0x550] sm:$0xff] %v708_v32  ;;  %v588_v34 = vpop.permute.xlu0 %587  ;;  %v4745_v32 = vld [vmem:[%s7576_s0 + $0xba] ss:$0 sm:$0xff] }
 0x110   :  { %4594 = vst [vmem:[%s7577_s1 + $0x740] sm:$0xff] %v599_v33  ;;  %v4743_v33 = vld [vmem:[%s7576_s0 + $0xaa] ss:$0 sm:$0xff] }
 0x111   :  { %4592 = vst [vmem:[%s7577_s1 + $0x640] sm:$0xff] %v588_v34  ;;  %v4741_v34 = vld [vmem:[%s7576_s0 + $0x9a] ss:$0 sm:$0xff] }
 0x114   :  { %1095 = vperm.xlu2 %5252, %v4685_v35   ;;  %1085 = vperm.xlu1 %5251, %v4683_v36  }
 0x115   :  { %1075 = vperm.xlu0 %5250, %v4681_v37  }
 0x116   :  { %v741_v38 = vpop.permute.xlu2 %740  ;;  %v632_v39 = vpop.permute.xlu1 %631 }
 0x117   :  { %4620 = vst [vmem:[%s7577_s1 + $0x850] sm:$0xff] %v741_v38  ;;  %v621_v40 = vpop.permute.xlu0 %620  ;;  %v4751_v38 = vld [vmem:[%s7576_s0 + $0x2b] ss:$0 sm:$0xff] }
 0x118   :  { %4600 = vst [vmem:[%s7577_s1 + $0xa40] sm:$0xff] %v632_v39  ;;  %v4749_v39 = vld [vmem:[%s7576_s0 + $0x1b] ss:$0 sm:$0xff] }
 0x119   :  { %4598 = vst [vmem:[%s7577_s1 + $0x940] sm:$0xff] %v621_v40  ;;  %v4747_v40 = vld [vmem:[%s7576_s0 + $0xb] ss:$0 sm:$0xff] }
 0x11c   :  { %1125 = vperm.xlu2 %5252, %v4691_v41   ;;  %1115 = vperm.xlu1 %5251, %v4689_v42  }
 0x11d   :  { %1105 = vperm.xlu0 %5250, %v4687_v43  }
 0x11e   :  { %v774_v44 = vpop.permute.xlu2 %773  ;;  %v664_v45 = vpop.permute.xlu1 %663 }
 0x11f   :  { %4626 = vst [vmem:[%s7577_s1 + $0xb50] sm:$0xff] %v774_v44  ;;  %v653_v46 = vpop.permute.xlu0 %652  ;;  %v4757_v44 = vld [vmem:[%s7576_s0 + $0x5b] ss:$0 sm:$0xff] }
 0x120   :  { %4606 = vst [vmem:[%s7577_s1 + $0x150] sm:$0xff] %v664_v45  ;;  %v4755_v45 = vld [vmem:[%s7576_s0 + $0x4b] ss:$0 sm:$0xff] }
 0x121   :  { %4604 = vst [vmem:[%s7577_s1 + $0x50] sm:$0xff] %v653_v46  ;;  %v4753_v46 = vld [vmem:[%s7576_s0 + $0x3b] ss:$0 sm:$0xff] }
 0x124   :  { %1155 = vperm.xlu2 %5252, %v4697_v47   ;;  %1145 = vperm.xlu1 %5251, %v4695_v48  }
 0x125   :  { %1135 = vperm.xlu0 %5250, %v4693_v49  }
 0x126   :  { %v806_v50 = vpop.permute.xlu2 %805  ;;  %v697_v51 = vpop.permute.xlu1 %696 }
 0x127   :  { %4632 = vst [vmem:[%s7577_s1 + $0x260] sm:$0xff] %v806_v50  ;;  %v686_v52 = vpop.permute.xlu0 %685  ;;  %v4763_v50 = vld [vmem:[%s7576_s0 + $0x8b] ss:$0 sm:$0xff] }
 0x128   :  { %4612 = vst [vmem:[%s7577_s1 + $0x450] sm:$0xff] %v697_v51  ;;  %v4761_v51 = vld [vmem:[%s7576_s0 + $0x7b] ss:$0 sm:$0xff] }
 0x129   :  { %4610 = vst [vmem:[%s7577_s1 + $0x350] sm:$0xff] %v686_v52  ;;  %v4759_v52 = vld [vmem:[%s7576_s0 + $0x6b] ss:$0 sm:$0xff] }
 0x12c   :  { %1188 = vperm.xlu2 %5252, %v4703_v53   ;;  %1177 = vperm.xlu1 %5251, %v4701_v54  }
 0x12d   :  { %1166 = vperm.xlu0 %5250, %v4699_v55  }
 0x12e   :  { %v839_v56 = vpop.permute.xlu2 %838  ;;  %v730_v57 = vpop.permute.xlu1 %729 }
 0x12f   :  { %4638 = vst [vmem:[%s7577_s1 + $0x560] sm:$0xff] %v839_v56  ;;  %v719_v58 = vpop.permute.xlu0 %718  ;;  %v4769_v56 = vld [vmem:[%s7576_s0 + $0xbb] ss:$0 sm:$0xff] }
 0x130   :  { %4618 = vst [vmem:[%s7577_s1 + $0x750] sm:$0xff] %v730_v57  ;;  %v4767_v57 = vld [vmem:[%s7576_s0 + $0xab] ss:$0 sm:$0xff] }
 0x131   :  { %4616 = vst [vmem:[%s7577_s1 + $0x650] sm:$0xff] %v719_v58  ;;  %v4765_v58 = vld [vmem:[%s7576_s0 + $0x9b] ss:$0 sm:$0xff] }
 0x134   :  { %1221 = vperm.xlu2 %5252, %v4709_v59   ;;  %1210 = vperm.xlu1 %5251, %v4707_v60  }
 0x135   :  { %1199 = vperm.xlu0 %5250, %v4705_v61  }
 0x136   :  { %v872_v62 = vpop.permute.xlu2 %871  ;;  %v763_v63 = vpop.permute.xlu1 %762 }
 0x137   :  { %4644 = vst [vmem:[%s7577_s1 + $0x860] sm:$0xff] %v872_v62  ;;  %v752_v0 = vpop.permute.xlu0 %751  ;;  %v4775_v62 = vld [vmem:[%s7576_s0 + $0x2c] ss:$0 sm:$0xff] }
 0x138   :  { %4624 = vst [vmem:[%s7577_s1 + $0xa50] sm:$0xff] %v763_v63  ;;  %v4773_v63 = vld [vmem:[%s7576_s0 + $0x1c] ss:$0 sm:$0xff] }
 0x139   :  { %4622 = vst [vmem:[%s7577_s1 + $0x950] sm:$0xff] %v752_v0  ;;  %v4771_v0 = vld [vmem:[%s7576_s0 + $0xc] ss:$0 sm:$0xff] }
 0x13c   :  { %1254 = vperm.xlu2 %5252, %v4715_v2   ;;  %1243 = vperm.xlu1 %5251, %v4713_v3  }
 0x13d   :  { %1232 = vperm.xlu0 %5250, %v4711_v4  }
 0x13e   :  { %v905_v5 = vpop.permute.xlu2 %904  ;;  %v795_v6 = vpop.permute.xlu1 %794 }
 0x13f   :  { %4650 = vst [vmem:[%s7577_s1 + $0xb60] sm:$0xff] %v905_v5  ;;  %v784_v7 = vpop.permute.xlu0 %783  ;;  %v4781_v5 = vld [vmem:[%s7576_s0 + $0x5c] ss:$0 sm:$0xff] }
 0x140   :  { %4630 = vst [vmem:[%s7577_s1 + $0x160] sm:$0xff] %v795_v6  ;;  %v4779_v6 = vld [vmem:[%s7576_s0 + $0x4c] ss:$0 sm:$0xff] }
 0x141   :  { %4628 = vst [vmem:[%s7577_s1 + $0x60] sm:$0xff] %v784_v7  ;;  %v4777_v7 = vld [vmem:[%s7576_s0 + $0x3c] ss:$0 sm:$0xff] }
 0x144   :  { %1287 = vperm.xlu2 %5252, %v4721_v8   ;;  %1276 = vperm.xlu1 %5251, %v4719_v9  }
 0x145   :  { %1265 = vperm.xlu0 %5250, %v4717_v10  }
 0x146   :  { %v937_v11 = vpop.permute.xlu2 %936  ;;  %v828_v12 = vpop.permute.xlu1 %827 }
 0x147   :  { %4656 = vst [vmem:[%s7577_s1 + $0x270] sm:$0xff] %v937_v11  ;;  %v817_v13 = vpop.permute.xlu0 %816  ;;  %v4787_v11 = vld [vmem:[%s7576_s0 + $0x8c] ss:$0 sm:$0xff] }
 0x148   :  { %4636 = vst [vmem:[%s7577_s1 + $0x460] sm:$0xff] %v828_v12  ;;  %v4785_v12 = vld [vmem:[%s7576_s0 + $0x7c] ss:$0 sm:$0xff] }
 0x149   :  { %4634 = vst [vmem:[%s7577_s1 + $0x360] sm:$0xff] %v817_v13  ;;  %v4783_v13 = vld [vmem:[%s7576_s0 + $0x6c] ss:$0 sm:$0xff] }
 0x14c   :  { %1320 = vperm.xlu2 %5252, %v4727_v14   ;;  %1309 = vperm.xlu1 %5251, %v4725_v15  }
 0x14d   :  { %1298 = vperm.xlu0 %5250, %v4723_v16  }
 0x14e   :  { %v970_v17 = vpop.permute.xlu2 %969  ;;  %v861_v18 = vpop.permute.xlu1 %860 }
 0x14f   :  { %4662 = vst [vmem:[%s7577_s1 + $0x570] sm:$0xff] %v970_v17  ;;  %v850_v19 = vpop.permute.xlu0 %849  ;;  %v4793_v17 = vld [vmem:[%s7576_s0 + $0xbc] ss:$0 sm:$0xff] }
 0x150   :  { %4642 = vst [vmem:[%s7577_s1 + $0x760] sm:$0xff] %v861_v18  ;;  %v4791_v18 = vld [vmem:[%s7576_s0 + $0xac] ss:$0 sm:$0xff] }
 0x151   :  { %4640 = vst [vmem:[%s7577_s1 + $0x660] sm:$0xff] %v850_v19  ;;  %v4789_v19 = vld [vmem:[%s7576_s0 + $0x9c] ss:$0 sm:$0xff] }
 0x154   :  { %1353 = vperm.xlu2 %5252, %v4733_v20   ;;  %1342 = vperm.xlu1 %5251, %v4731_v21  }
 0x155   :  { %1331 = vperm.xlu0 %5250, %v4729_v22  }
 0x156   :  { %v1003_v23 = vpop.permute.xlu2 %1002  ;;  %v894_v24 = vpop.permute.xlu1 %893 }
 0x157   :  { %4668 = vst [vmem:[%s7577_s1 + $0x870] sm:$0xff] %v1003_v23  ;;  %v883_v25 = vpop.permute.xlu0 %882  ;;  %v4799_v23 = vld [vmem:[%s7576_s0 + $0x2d] ss:$0 sm:$0xff] }
 0x158   :  { %4648 = vst [vmem:[%s7577_s1 + $0xa60] sm:$0xff] %v894_v24  ;;  %v4797_v24 = vld [vmem:[%s7576_s0 + $0x1d] ss:$0 sm:$0xff] }
 0x159   :  { %4646 = vst [vmem:[%s7577_s1 + $0x960] sm:$0xff] %v883_v25  ;;  %v4795_v25 = vld [vmem:[%s7576_s0 + $0xd] ss:$0 sm:$0xff] }
 0x15c   :  { %1386 = vperm.xlu2 %5252, %v4739_v26   ;;  %1375 = vperm.xlu1 %5251, %v4737_v27  }
 0x15d   :  { %1364 = vperm.xlu0 %5250, %v4735_v28  }
 0x15e   :  { %v1036_v29 = vpop.permute.xlu2 %1035  ;;  %v926_v30 = vpop.permute.xlu1 %925 }
 0x15f   :  { %4674 = vst [vmem:[%s7577_s1 + $0xb70] sm:$0xff] %v1036_v29  ;;  %v915_v31 = vpop.permute.xlu0 %914  ;;  %v4805_v29 = vld [vmem:[%s7576_s0 + $0x5d] ss:$0 sm:$0xff] }
 0x160   :  { %4654 = vst [vmem:[%s7577_s1 + $0x170] sm:$0xff] %v926_v30  ;;  %v4803_v30 = vld [vmem:[%s7576_s0 + $0x4d] ss:$0 sm:$0xff] }
 0x161   :  { %4652 = vst [vmem:[%s7577_s1 + $0x70] sm:$0xff] %v915_v31  ;;  %v4801_v31 = vld [vmem:[%s7576_s0 + $0x3d] ss:$0 sm:$0xff] }
 0x164   :  { %1419 = vperm.xlu2 %5252, %v4745_v32   ;;  %1408 = vperm.xlu1 %5251, %v4743_v33  }
 0x165   :  { %1397 = vperm.xlu0 %5250, %v4741_v34  }
 0x166   :  { %v1066_v35 = vpop.permute.xlu2 %1065  ;;  %v959_v36 = vpop.permute.xlu1 %958 }
 0x167   :  { %4680 = vst [vmem:[%s7577_s1 + $0x280] sm:$0xff] %v1066_v35  ;;  %v948_v37 = vpop.permute.xlu0 %947  ;;  %v4811_v35 = vld [vmem:[%s7576_s0 + $0x8d] ss:$0 sm:$0xff] }
 0x168   :  { %4660 = vst [vmem:[%s7577_s1 + $0x470] sm:$0xff] %v959_v36  ;;  %v4809_v36 = vld [vmem:[%s7576_s0 + $0x7d] ss:$0 sm:$0xff] }
 0x169   :  { %4658 = vst [vmem:[%s7577_s1 + $0x370] sm:$0xff] %v948_v37  ;;  %v4807_v37 = vld [vmem:[%s7576_s0 + $0x6d] ss:$0 sm:$0xff] }
 0x16c   :  { %1452 = vperm.xlu2 %5252, %v4751_v38   ;;  %1441 = vperm.xlu1 %5251, %v4749_v39  }
 0x16d   :  { %1430 = vperm.xlu0 %5250, %v4747_v40  }
 0x16e   :  { %v1096_v41 = vpop.permute.xlu2 %1095  ;;  %v992_v42 = vpop.permute.xlu1 %991 }
 0x16f   :  { %4686 = vst [vmem:[%s7577_s1 + $0x580] sm:$0xff] %v1096_v41  ;;  %v981_v43 = vpop.permute.xlu0 %980  ;;  %v4817_v41 = vld [vmem:[%s7576_s0 + $0xbd] ss:$0 sm:$0xff] }
 0x170   :  { %4666 = vst [vmem:[%s7577_s1 + $0x770] sm:$0xff] %v992_v42  ;;  %v4815_v42 = vld [vmem:[%s7576_s0 + $0xad] ss:$0 sm:$0xff] }
 0x171   :  { %4664 = vst [vmem:[%s7577_s1 + $0x670] sm:$0xff] %v981_v43  ;;  %v4813_v43 = vld [vmem:[%s7576_s0 + $0x9d] ss:$0 sm:$0xff] }
 0x174   :  { %1485 = vperm.xlu2 %5252, %v4757_v44   ;;  %1474 = vperm.xlu1 %5251, %v4755_v45  }
 0x175   :  { %1463 = vperm.xlu0 %5250, %v4753_v46  }
 0x176   :  { %v1126_v47 = vpop.permute.xlu2 %1125  ;;  %v1025_v48 = vpop.permute.xlu1 %1024 }
 0x177   :  { %4692 = vst [vmem:[%s7577_s1 + $0x880] sm:$0xff] %v1126_v47  ;;  %v1014_v49 = vpop.permute.xlu0 %1013  ;;  %v4823_v47 = vld [vmem:[%s7576_s0 + $0x2e] ss:$0 sm:$0xff] }
 0x178   :  { %4672 = vst [vmem:[%s7577_s1 + $0xa70] sm:$0xff] %v1025_v48  ;;  %v4821_v48 = vld [vmem:[%s7576_s0 + $0x1e] ss:$0 sm:$0xff] }
 0x179   :  { %4670 = vst [vmem:[%s7577_s1 + $0x970] sm:$0xff] %v1014_v49  ;;  %v4819_v49 = vld [vmem:[%s7576_s0 + $0xe] ss:$0 sm:$0xff] }
 0x17c   :  { %1518 = vperm.xlu2 %5252, %v4763_v50   ;;  %1507 = vperm.xlu1 %5251, %v4761_v51  }
 0x17d   :  { %1496 = vperm.xlu0 %5250, %v4759_v52  }
 0x17e   :  { %v1156_v53 = vpop.permute.xlu2 %1155  ;;  %v1056_v54 = vpop.permute.xlu1 %1055 }
 0x17f   :  { %4698 = vst [vmem:[%s7577_s1 + $0xb80] sm:$0xff] %v1156_v53  ;;  %v1046_v55 = vpop.permute.xlu0 %1045  ;;  %v4829_v53 = vld [vmem:[%s7576_s0 + $0x5e] ss:$0 sm:$0xff] }
 0x180   :  { %4678 = vst [vmem:[%s7577_s1 + $0x180] sm:$0xff] %v1056_v54  ;;  %v4827_v54 = vld [vmem:[%s7576_s0 + $0x4e] ss:$0 sm:$0xff] }
 0x181   :  { %4676 = vst [vmem:[%s7577_s1 + $0x80] sm:$0xff] %v1046_v55  ;;  %v4825_v55 = vld [vmem:[%s7576_s0 + $0x3e] ss:$0 sm:$0xff] }
 0x184   :  { %1551 = vperm.xlu2 %5252, %v4769_v56   ;;  %1540 = vperm.xlu1 %5251, %v4767_v57  }
 0x185   :  { %1529 = vperm.xlu0 %5250, %v4765_v58  }
 0x186   :  { %v1189_v59 = vpop.permute.xlu2 %1188  ;;  %v1086_v60 = vpop.permute.xlu1 %1085 }
 0x187   :  { %4704 = vst [vmem:[%s7577_s1 + $0x290] sm:$0xff] %v1189_v59  ;;  %v1076_v61 = vpop.permute.xlu0 %1075  ;;  %v4835_v59 = vld [vmem:[%s7576_s0 + $0x8e] ss:$0 sm:$0xff] }
 0x188   :  { %4684 = vst [vmem:[%s7577_s1 + $0x480] sm:$0xff] %v1086_v60  ;;  %v4833_v60 = vld [vmem:[%s7576_s0 + $0x7e] ss:$0 sm:$0xff] }
 0x189   :  { %4682 = vst [vmem:[%s7577_s1 + $0x380] sm:$0xff] %v1076_v61  ;;  %v4831_v61 = vld [vmem:[%s7576_s0 + $0x6e] ss:$0 sm:$0xff] }
 0x18c   :  { %1584 = vperm.xlu2 %5252, %v4775_v62   ;;  %1573 = vperm.xlu1 %5251, %v4773_v63  }
 0x18d   :  { %1562 = vperm.xlu0 %5250, %v4771_v0  }
 0x18e   :  { %v1222_v2 = vpop.permute.xlu2 %1221  ;;  %v1116_v3 = vpop.permute.xlu1 %1115 }
 0x18f   :  { %4710 = vst [vmem:[%s7577_s1 + $0x590] sm:$0xff] %v1222_v2  ;;  %v1106_v4 = vpop.permute.xlu0 %1105  ;;  %v4841_v2 = vld [vmem:[%s7576_s0 + $0xbe] ss:$0 sm:$0xff] }
 0x190   :  { %4690 = vst [vmem:[%s7577_s1 + $0x780] sm:$0xff] %v1116_v3  ;;  %v4839_v3 = vld [vmem:[%s7576_s0 + $0xae] ss:$0 sm:$0xff] }
 0x191   :  { %4688 = vst [vmem:[%s7577_s1 + $0x680] sm:$0xff] %v1106_v4  ;;  %v4837_v4 = vld [vmem:[%s7576_s0 + $0x9e] ss:$0 sm:$0xff] }
 0x194   :  { %1617 = vperm.xlu2 %5252, %v4781_v5   ;;  %1606 = vperm.xlu1 %5251, %v4779_v6  }
 0x195   :  { %1595 = vperm.xlu0 %5250, %v4777_v7  }
 0x196   :  { %v1255_v8 = vpop.permute.xlu2 %1254  ;;  %v1146_v9 = vpop.permute.xlu1 %1145 }
 0x197   :  { %4716 = vst [vmem:[%s7577_s1 + $0x890] sm:$0xff] %v1255_v8  ;;  %v1136_v10 = vpop.permute.xlu0 %1135  ;;  %v4847_v8 = vld [vmem:[%s7576_s0 + $0x2f] ss:$0 sm:$0xff] }
 0x198   :  { %4696 = vst [vmem:[%s7577_s1 + $0xa80] sm:$0xff] %v1146_v9  ;;  %v4845_v9 = vld [vmem:[%s7576_s0 + $0x1f] ss:$0 sm:$0xff] }
 0x199   :  { %4694 = vst [vmem:[%s7577_s1 + $0x980] sm:$0xff] %v1136_v10  ;;  %v4843_v10 = vld [vmem:[%s7576_s0 + $0xf] ss:$0 sm:$0xff] }
 0x19c   :  { %1650 = vperm.xlu2 %5252, %v4787_v11   ;;  %1639 = vperm.xlu1 %5251, %v4785_v12  }
 0x19d   :  { %1628 = vperm.xlu0 %5250, %v4783_v13  }
 0x19e   :  { %v1288_v14 = vpop.permute.xlu2 %1287  ;;  %v1178_v15 = vpop.permute.xlu1 %1177 }
 0x19f   :  { %4722 = vst [vmem:[%s7577_s1 + $0xb90] sm:$0xff] %v1288_v14  ;;  %v1167_v16 = vpop.permute.xlu0 %1166  ;;  %v4853_v14 = vld [vmem:[%s7576_s0 + $0x5f] ss:$0 sm:$0xff] }
 0x1a0   :  { %4702 = vst [vmem:[%s7577_s1 + $0x190] sm:$0xff] %v1178_v15  ;;  %v4851_v15 = vld [vmem:[%s7576_s0 + $0x4f] ss:$0 sm:$0xff] }
 0x1a1   :  { %4700 = vst [vmem:[%s7577_s1 + $0x90] sm:$0xff] %v1167_v16  ;;  %v4849_v16 = vld [vmem:[%s7576_s0 + $0x3f] ss:$0 sm:$0xff] }
 0x1a4   :  { %1683 = vperm.xlu2 %5252, %v4793_v17   ;;  %1672 = vperm.xlu1 %5251, %v4791_v18  }
 0x1a5   :  { %1661 = vperm.xlu0 %5250, %v4789_v19  }
 0x1a6   :  { %v1321_v20 = vpop.permute.xlu2 %1320  ;;  %v1211_v21 = vpop.permute.xlu1 %1210 }
 0x1a7   :  { %4728 = vst [vmem:[%s7577_s1 + $0x2a0] sm:$0xff] %v1321_v20  ;;  %v1200_v22 = vpop.permute.xlu0 %1199  ;;  %v4859_v20 = vld [vmem:[%s7576_s0 + $0x8f] ss:$0 sm:$0xff] }
 0x1a8   :  { %4708 = vst [vmem:[%s7577_s1 + $0x490] sm:$0xff] %v1211_v21  ;;  %v4857_v21 = vld [vmem:[%s7576_s0 + $0x7f] ss:$0 sm:$0xff] }
 0x1a9   :  { %4706 = vst [vmem:[%s7577_s1 + $0x390] sm:$0xff] %v1200_v22  ;;  %v4855_v22 = vld [vmem:[%s7576_s0 + $0x6f] ss:$0 sm:$0xff] }
 0x1ac   :  { %1716 = vperm.xlu2 %5252, %v4799_v23   ;;  %1705 = vperm.xlu1 %5251, %v4797_v24  }
 0x1ad   :  { %1694 = vperm.xlu0 %5250, %v4795_v25  }
 0x1ae   :  { %v1354_v26 = vpop.permute.xlu2 %1353  ;;  %v1244_v27 = vpop.permute.xlu1 %1243 }
 0x1af   :  { %4734 = vst [vmem:[%s7577_s1 + $0x5a0] sm:$0xff] %v1354_v26  ;;  %v1233_v28 = vpop.permute.xlu0 %1232  ;;  %v4865_v26 = vld [vmem:[%s7576_s0 + $0xbf] ss:$0 sm:$0xff] }
 0x1b0   :  { %4714 = vst [vmem:[%s7577_s1 + $0x790] sm:$0xff] %v1244_v27  ;;  %v4863_v27 = vld [vmem:[%s7576_s0 + $0xaf] ss:$0 sm:$0xff] }
 0x1b1   :  { %4712 = vst [vmem:[%s7577_s1 + $0x690] sm:$0xff] %v1233_v28  ;;  %v4861_v28 = vld [vmem:[%s7576_s0 + $0x9f] ss:$0 sm:$0xff] }
 0x1b4   :  { %1749 = vperm.xlu2 %5252, %v4805_v29   ;;  %1738 = vperm.xlu1 %5251, %v4803_v30  }
 0x1b5   :  { %1727 = vperm.xlu0 %5250, %v4801_v31  }
 0x1b6   :  { %v1387_v32 = vpop.permute.xlu2 %1386  ;;  %v1277_v33 = vpop.permute.xlu1 %1276 }
 0x1b7   :  { %4740 = vst [vmem:[%s7577_s1 + $0x8a0] sm:$0xff] %v1387_v32  ;;  %v1266_v34 = vpop.permute.xlu0 %1265 }
 0x1b8   :  { %4720 = vst [vmem:[%s7577_s1 + $0xa90] sm:$0xff] %v1277_v33 }
 0x1b9   :  { %4718 = vst [vmem:[%s7577_s1 + $0x990] sm:$0xff] %v1266_v34 }
 0x1bc   :  { %1782 = vperm.xlu2 %5252, %v4811_v35   ;;  %1771 = vperm.xlu1 %5251, %v4809_v36   ;;  %v4870_v35 = vld [vmem:[%s7576_s0 + $0x20] ss:$0 sm:$0xff]  ;;  %v4868_v36 = vld [vmem:[%s7576_s0 + $0x10] ss:$0 sm:$0xff] }
 0x1bd   :  { %1760 = vperm.xlu0 %5250, %v4807_v37   ;;  %v2083_v37 = vld [vmem:[%s7576_s0] ss:$0 sm:$0xff] }
 0x1be   :  { %v1420_v38 = vpop.permute.xlu2 %1419  ;;  %v1310_v39 = vpop.permute.xlu1 %1309 }
 0x1bf   :  { %4746 = vst [vmem:[%s7577_s1 + $0xba0] sm:$0xff] %v1420_v38  ;;  %v1299_v40 = vpop.permute.xlu0 %1298 }
 0x1c0   :  { %4726 = vst [vmem:[%s7577_s1 + $0x1a0] sm:$0xff] %v1310_v39 }
 0x1c1   :  { %4724 = vst [vmem:[%s7577_s1 + $0xa0] sm:$0xff] %v1299_v40 }
 0x1c4   :  { %1815 = vperm.xlu2 %5252, %v4817_v41   ;;  %1804 = vperm.xlu1 %5251, %v4815_v42   ;;  %v4874_v41 = vld [vmem:[%s7576_s0 + $0x40] ss:$0 sm:$0xff]  ;;  %v4872_v42 = vld [vmem:[%s7576_s0 + $0x30] ss:$0 sm:$0xff] }
 0x1c5   :  { %1793 = vperm.xlu0 %5250, %v4813_v43   ;;  %v4876_v43 = vld [vmem:[%s7576_s0 + $0x50] ss:$0 sm:$0xff] }
 0x1c6   :  { %v1453_v44 = vpop.permute.xlu2 %1452  ;;  %v1343_v45 = vpop.permute.xlu1 %1342 }
 0x1c7   :  { %4752 = vst [vmem:[%s7577_s1 + $0x2b0] sm:$0xff] %v1453_v44  ;;  %v1332_v46 = vpop.permute.xlu0 %1331 }
 0x1c8   :  { %4732 = vst [vmem:[%s7577_s1 + $0x4a0] sm:$0xff] %v1343_v45 }
 0x1c9   :  { %4730 = vst [vmem:[%s7577_s1 + $0x3a0] sm:$0xff] %v1332_v46 }
 0x1cc   :  { %1848 = vperm.xlu2 %5252, %v4823_v47   ;;  %1837 = vperm.xlu1 %5251, %v4821_v48   ;;  %v4880_v47 = vld [vmem:[%s7576_s0 + $0x70] ss:$0 sm:$0xff]  ;;  %v4878_v48 = vld [vmem:[%s7576_s0 + $0x60] ss:$0 sm:$0xff] }
 0x1cd   :  { %1826 = vperm.xlu0 %5250, %v4819_v49   ;;  %v4882_v49 = vld [vmem:[%s7576_s0 + $0x80] ss:$0 sm:$0xff] }
 0x1ce   :  { %v1486_v50 = vpop.permute.xlu2 %1485  ;;  %v1376_v51 = vpop.permute.xlu1 %1375 }
 0x1cf   :  { %4758 = vst [vmem:[%s7577_s1 + $0x5b0] sm:$0xff] %v1486_v50  ;;  %v1365_v52 = vpop.permute.xlu0 %1364 }
 0x1d0   :  { %4738 = vst [vmem:[%s7577_s1 + $0x7a0] sm:$0xff] %v1376_v51 }
 0x1d1   :  { %4736 = vst [vmem:[%s7577_s1 + $0x6a0] sm:$0xff] %v1365_v52 }
 0x1d4   :  { %1881 = vperm.xlu2 %5252, %v4829_v53   ;;  %1870 = vperm.xlu1 %5251, %v4827_v54   ;;  %v4886_v53 = vld [vmem:[%s7576_s0 + $0xa0] ss:$0 sm:$0xff]  ;;  %v4884_v54 = vld [vmem:[%s7576_s0 + $0x90] ss:$0 sm:$0xff] }
 0x1d5   :  { %1859 = vperm.xlu0 %5250, %v4825_v55   ;;  %v4888_v55 = vld [vmem:[%s7576_s0 + $0xb0] ss:$0 sm:$0xff] }
 0x1d6   :  { %v1519_v56 = vpop.permute.xlu2 %1518  ;;  %v1409_v57 = vpop.permute.xlu1 %1408 }
 0x1d7   :  { %4764 = vst [vmem:[%s7577_s1 + $0x8b0] sm:$0xff] %v1519_v56  ;;  %v1398_v58 = vpop.permute.xlu0 %1397 }
 0x1d8   :  { %4744 = vst [vmem:[%s7577_s1 + $0xaa0] sm:$0xff] %v1409_v57 }
 0x1d9   :  { %4742 = vst [vmem:[%s7577_s1 + $0x9a0] sm:$0xff] %v1398_v58 }
 0x1dc   :  { %1914 = vperm.xlu2 %5252, %v4835_v59   ;;  %1903 = vperm.xlu1 %5251, %v4833_v60   ;;  %v4892_v59 = vld [vmem:[%s7576_s0 + $0x11] ss:$0 sm:$0xff]  ;;  %v4890_v60 = vld [vmem:[%s7576_s0 + $0x1] ss:$0 sm:$0xff] }
 0x1dd   :  { %1892 = vperm.xlu0 %5250, %v4831_v61   ;;  %v4894_v61 = vld [vmem:[%s7576_s0 + $0x21] ss:$0 sm:$0xff] }
 0x1de   :  { %v1552_v62 = vpop.permute.xlu2 %1551  ;;  %v1442_v63 = vpop.permute.xlu1 %1441 }
 0x1df   :  { %4770 = vst [vmem:[%s7577_s1 + $0xbb0] sm:$0xff] %v1552_v62  ;;  %v1431_v0 = vpop.permute.xlu0 %1430 }
 0x1e0   :  { %4750 = vst [vmem:[%s7577_s1 + $0x1b0] sm:$0xff] %v1442_v63 }
 0x1e1   :  { %4748 = vst [vmem:[%s7577_s1 + $0xb0] sm:$0xff] %v1431_v0 }
 0x1e4   :  { %1947 = vperm.xlu2 %5252, %v4841_v2   ;;  %1936 = vperm.xlu1 %5251, %v4839_v3   ;;  %v4898_v2 = vld [vmem:[%s7576_s0 + $0x41] ss:$0 sm:$0xff]  ;;  %v4896_v3 = vld [vmem:[%s7576_s0 + $0x31] ss:$0 sm:$0xff] }
 0x1e5   :  { %1925 = vperm.xlu0 %5250, %v4837_v4   ;;  %v4900_v4 = vld [vmem:[%s7576_s0 + $0x51] ss:$0 sm:$0xff] }
 0x1e6   :  { %v1585_v5 = vpop.permute.xlu2 %1584  ;;  %v1475_v6 = vpop.permute.xlu1 %1474 }
 0x1e7   :  { %4776 = vst [vmem:[%s7577_s1 + $0x2c0] sm:$0xff] %v1585_v5  ;;  %v1464_v7 = vpop.permute.xlu0 %1463 }
 0x1e8   :  { %4756 = vst [vmem:[%s7577_s1 + $0x4b0] sm:$0xff] %v1475_v6 }
 0x1e9   :  { %4754 = vst [vmem:[%s7577_s1 + $0x3b0] sm:$0xff] %v1464_v7 }
 0x1ec   :  { %1980 = vperm.xlu2 %5252, %v4847_v8   ;;  %1969 = vperm.xlu1 %5251, %v4845_v9   ;;  %v4904_v8 = vld [vmem:[%s7576_s0 + $0x71] ss:$0 sm:$0xff]  ;;  %v4902_v9 = vld [vmem:[%s7576_s0 + $0x61] ss:$0 sm:$0xff] }
 0x1ed   :  { %1958 = vperm.xlu0 %5250, %v4843_v10   ;;  %v4906_v10 = vld [vmem:[%s7576_s0 + $0x81] ss:$0 sm:$0xff] }
 0x1ee   :  { %v1618_v11 = vpop.permute.xlu2 %1617  ;;  %v1508_v12 = vpop.permute.xlu1 %1507 }
 0x1ef   :  { %4782 = vst [vmem:[%s7577_s1 + $0x5c0] sm:$0xff] %v1618_v11  ;;  %v1497_v13 = vpop.permute.xlu0 %1496 }
 0x1f0   :  { %4762 = vst [vmem:[%s7577_s1 + $0x7b0] sm:$0xff] %v1508_v12 }
 0x1f1   :  { %4760 = vst [vmem:[%s7577_s1 + $0x6b0] sm:$0xff] %v1497_v13 }
 0x1f4   :  { %2013 = vperm.xlu2 %5252, %v4853_v14   ;;  %2002 = vperm.xlu1 %5251, %v4851_v15   ;;  %v4910_v14 = vld [vmem:[%s7576_s0 + $0xa1] ss:$0 sm:$0xff]  ;;  %v4908_v15 = vld [vmem:[%s7576_s0 + $0x91] ss:$0 sm:$0xff] }
 0x1f5   :  { %1991 = vperm.xlu0 %5250, %v4849_v16   ;;  %v4912_v16 = vld [vmem:[%s7576_s0 + $0xb1] ss:$0 sm:$0xff] }
 0x1f6   :  { %v1651_v17 = vpop.permute.xlu2 %1650  ;;  %v1541_v18 = vpop.permute.xlu1 %1540 }
 0x1f7   :  { %4788 = vst [vmem:[%s7577_s1 + $0x8c0] sm:$0xff] %v1651_v17  ;;  %v1530_v19 = vpop.permute.xlu0 %1529 }
 0x1f8   :  { %4768 = vst [vmem:[%s7577_s1 + $0xab0] sm:$0xff] %v1541_v18 }
 0x1f9   :  { %4766 = vst [vmem:[%s7577_s1 + $0x9b0] sm:$0xff] %v1530_v19 }
 0x1fc   :  { %2046 = vperm.xlu2 %5252, %v4859_v20   ;;  %2035 = vperm.xlu1 %5251, %v4857_v21   ;;  %v4916_v20 = vld [vmem:[%s7576_s0 + $0x12] ss:$0 sm:$0xff]  ;;  %v4914_v21 = vld [vmem:[%s7576_s0 + $0x2] ss:$0 sm:$0xff] }
 0x1fd   :  { %2024 = vperm.xlu0 %5250, %v4855_v22   ;;  %v4918_v22 = vld [vmem:[%s7576_s0 + $0x22] ss:$0 sm:$0xff] }
 0x1fe   :  { %v1684_v23 = vpop.permute.xlu2 %1683  ;;  %v1574_v24 = vpop.permute.xlu1 %1573 }
 0x1ff   :  { %4794 = vst [vmem:[%s7577_s1 + $0xbc0] sm:$0xff] %v1684_v23  ;;  %v1563_v25 = vpop.permute.xlu0 %1562 }
 0x200   :  { %4774 = vst [vmem:[%s7577_s1 + $0x1c0] sm:$0xff] %v1574_v24 }
 0x201   :  { %4772 = vst [vmem:[%s7577_s1 + $0xc0] sm:$0xff] %v1563_v25 }
 0x204   :  { %2079 = vperm.xlu2 %5252, %v4865_v26   ;;  %2068 = vperm.xlu1 %5251, %v4863_v27   ;;  %v4922_v26 = vld [vmem:[%s7576_s0 + $0x42] ss:$0 sm:$0xff]  ;;  %v4920_v27 = vld [vmem:[%s7576_s0 + $0x32] ss:$0 sm:$0xff] }
 0x205   :  { %2057 = vperm.xlu0 %5250, %v4861_v28   ;;  %v4924_v28 = vld [vmem:[%s7576_s0 + $0x52] ss:$0 sm:$0xff] }
 0x206   :  { %v1717_v29 = vpop.permute.xlu2 %1716  ;;  %v1607_v30 = vpop.permute.xlu1 %1606 }
 0x207   :  { %4800 = vst [vmem:[%s7577_s1 + $0x2d0] sm:$0xff] %v1717_v29  ;;  %v1596_v31 = vpop.permute.xlu0 %1595 }
 0x208   :  { %4780 = vst [vmem:[%s7577_s1 + $0x4c0] sm:$0xff] %v1607_v30 }
 0x209   :  { %4778 = vst [vmem:[%s7577_s1 + $0x3c0] sm:$0xff] %v1596_v31 }
 0x20c   :  { %5255 = vset.pattern.permute.xlu2 %v2086_v1  ;;  %5254 = vset.pattern.permute.xlu1 %v2086_v1 }
 0x20d   :  { %5253 = vset.pattern.permute.xlu0 %v2086_v1  ;;  %v4928_v1 = vld [vmem:[%s7576_s0 + $0x72] ss:$0 sm:$0xff] }
 0x20e   :  { %v1750_v32 = vpop.permute.xlu2 %1749  ;;  %v1640_v33 = vpop.permute.xlu1 %1639 }
 0x20f   :  { %4806 = vst [vmem:[%s7577_s1 + $0x5d0] sm:$0xff] %v1750_v32  ;;  %v1629_v34 = vpop.permute.xlu0 %1628  ;;  %v4926_v32 = vld [vmem:[%s7576_s0 + $0x62] ss:$0 sm:$0xff] }
 0x210   :  { %4786 = vst [vmem:[%s7577_s1 + $0x7c0] sm:$0xff] %v1640_v33  ;;  %v4930_v33 = vld [vmem:[%s7576_s0 + $0x82] ss:$0 sm:$0xff] }
 0x211   :  { %4784 = vst [vmem:[%s7577_s1 + $0x6c0] sm:$0xff] %v1629_v34 }
 0x214   :  { %2108 = vperm.xlu2 %5255, %v4870_v35   ;;  %2098 = vperm.xlu1 %5254, %v4868_v36   ;;  %v4934_v36 = vld [vmem:[%s7576_s0 + $0xa2] ss:$0 sm:$0xff] }
 0x215   :  { %2088 = vperm.xlu0 %5253, %v2083_v37   ;;  %v4932_v37 = vld [vmem:[%s7576_s0 + $0x92] ss:$0 sm:$0xff] }
 0x216   :  { %v1783_v38 = vpop.permute.xlu2 %1782  ;;  %v1673_v39 = vpop.permute.xlu1 %1672 }
 0x217   :  { %4812 = vst [vmem:[%s7577_s1 + $0x8d0] sm:$0xff] %v1783_v38  ;;  %v1662_v40 = vpop.permute.xlu0 %1661  ;;  %v4936_v38 = vld [vmem:[%s7576_s0 + $0xb2] ss:$0 sm:$0xff] }
 0x218   :  { %4792 = vst [vmem:[%s7577_s1 + $0xac0] sm:$0xff] %v1673_v39 }
 0x219   :  { %4790 = vst [vmem:[%s7577_s1 + $0x9c0] sm:$0xff] %v1662_v40 }
 0x21c   :  { %2128 = vperm.xlu2 %5255, %v4874_v41   ;;  %2118 = vperm.xlu1 %5254, %v4872_v42   ;;  %v4940_v42 = vld [vmem:[%s7576_s0 + $0x13] ss:$0 sm:$0xff] }
 0x21d   :  { %2138 = vperm.xlu0 %5253, %v4876_v43   ;;  %v4938_v43 = vld [vmem:[%s7576_s0 + $0x3] ss:$0 sm:$0xff] }
 0x21e   :  { %v1816_v44 = vpop.permute.xlu2 %1815  ;;  %v1706_v45 = vpop.permute.xlu1 %1705 }
 0x21f   :  { %4818 = vst [vmem:[%s7577_s1 + $0xbd0] sm:$0xff] %v1816_v44  ;;  %v1695_v46 = vpop.permute.xlu0 %1694  ;;  %v4942_v44 = vld [vmem:[%s7576_s0 + $0x23] ss:$0 sm:$0xff] }
 0x220   :  { %4798 = vst [vmem:[%s7577_s1 + $0x1d0] sm:$0xff] %v1706_v45 }
 0x221   :  { %4796 = vst [vmem:[%s7577_s1 + $0xd0] sm:$0xff] %v1695_v46 }
 0x224   :  { %2158 = vperm.xlu2 %5255, %v4880_v47   ;;  %2148 = vperm.xlu1 %5254, %v4878_v48   ;;  %v4946_v48 = vld [vmem:[%s7576_s0 + $0x43] ss:$0 sm:$0xff] }
 0x225   :  { %2168 = vperm.xlu0 %5253, %v4882_v49   ;;  %v4944_v49 = vld [vmem:[%s7576_s0 + $0x33] ss:$0 sm:$0xff] }
 0x226   :  { %v1849_v50 = vpop.permute.xlu2 %1848  ;;  %v1739_v51 = vpop.permute.xlu1 %1738 }
 0x227   :  { %4824 = vst [vmem:[%s7577_s1 + $0x2e0] sm:$0xff] %v1849_v50  ;;  %v1728_v52 = vpop.permute.xlu0 %1727  ;;  %v4948_v50 = vld [vmem:[%s7576_s0 + $0x53] ss:$0 sm:$0xff] }
 0x228   :  { %4804 = vst [vmem:[%s7577_s1 + $0x4d0] sm:$0xff] %v1739_v51 }
 0x229   :  { %4802 = vst [vmem:[%s7577_s1 + $0x3d0] sm:$0xff] %v1728_v52  ;;  %v4952_v52 = vld [vmem:[%s7576_s0 + $0x73] ss:$0 sm:$0xff] }
 0x22c   :  { %2188 = vperm.xlu2 %5255, %v4886_v53   ;;  %2178 = vperm.xlu1 %5254, %v4884_v54   ;;  %v4950_v53 = vld [vmem:[%s7576_s0 + $0x63] ss:$0 sm:$0xff] }
 0x22d   :  { %2198 = vperm.xlu0 %5253, %v4888_v55   ;;  %v4954_v54 = vld [vmem:[%s7576_s0 + $0x83] ss:$0 sm:$0xff] }
 0x22e   :  { %v1882_v56 = vpop.permute.xlu2 %1881  ;;  %v1772_v57 = vpop.permute.xlu1 %1771 }
 0x22f   :  { %4830 = vst [vmem:[%s7577_s1 + $0x5e0] sm:$0xff] %v1882_v56  ;;  %v1761_v58 = vpop.permute.xlu0 %1760 }
 0x230   :  { %4810 = vst [vmem:[%s7577_s1 + $0x7d0] sm:$0xff] %v1772_v57 }
 0x231   :  { %4808 = vst [vmem:[%s7577_s1 + $0x6d0] sm:$0xff] %v1761_v58  ;;  %v4958_v58 = vld [vmem:[%s7576_s0 + $0xa3] ss:$0 sm:$0xff] }
 0x234   :  { %2219 = vperm.xlu2 %5255, %v4892_v59   ;;  %2208 = vperm.xlu1 %5254, %v4890_v60   ;;  %v4956_v59 = vld [vmem:[%s7576_s0 + $0x93] ss:$0 sm:$0xff] }
 0x235   :  { %2230 = vperm.xlu0 %5253, %v4894_v61   ;;  %v4960_v60 = vld [vmem:[%s7576_s0 + $0xb3] ss:$0 sm:$0xff] }
 0x236   :  { %v1915_v62 = vpop.permute.xlu2 %1914  ;;  %v1805_v63 = vpop.permute.xlu1 %1804 }
 0x237   :  { %4836 = vst [vmem:[%s7577_s1 + $0x8e0] sm:$0xff] %v1915_v62  ;;  %v1794_v0 = vpop.permute.xlu0 %1793 }
 0x238   :  { %4816 = vst [vmem:[%s7577_s1 + $0xad0] sm:$0xff] %v1805_v63 }
 0x239   :  { %4814 = vst [vmem:[%s7577_s1 + $0x9d0] sm:$0xff] %v1794_v0  ;;  %v4964_v0 = vld [vmem:[%s7576_s0 + $0x14] ss:$0 sm:$0xff] }
 0x23c   :  { %2252 = vperm.xlu2 %5255, %v4898_v2   ;;  %2241 = vperm.xlu1 %5254, %v4896_v3   ;;  %v4962_v2 = vld [vmem:[%s7576_s0 + $0x4] ss:$0 sm:$0xff] }
 0x23d   :  { %2263 = vperm.xlu0 %5253, %v4900_v4   ;;  %v4966_v3 = vld [vmem:[%s7576_s0 + $0x24] ss:$0 sm:$0xff] }
 0x23e   :  { %v1948_v5 = vpop.permute.xlu2 %1947  ;;  %v1838_v6 = vpop.permute.xlu1 %1837 }
 0x23f   :  { %4842 = vst [vmem:[%s7577_s1 + $0xbe0] sm:$0xff] %v1948_v5  ;;  %v1827_v7 = vpop.permute.xlu0 %1826 }
 0x240   :  { %4822 = vst [vmem:[%s7577_s1 + $0x1e0] sm:$0xff] %v1838_v6 }
 0x241   :  { %4820 = vst [vmem:[%s7577_s1 + $0xe0] sm:$0xff] %v1827_v7  ;;  %v4970_v7 = vld [vmem:[%s7576_s0 + $0x44] ss:$0 sm:$0xff] }
 0x244   :  { %2285 = vperm.xlu2 %5255, %v4904_v8   ;;  %2274 = vperm.xlu1 %5254, %v4902_v9   ;;  %v4968_v8 = vld [vmem:[%s7576_s0 + $0x34] ss:$0 sm:$0xff] }
 0x245   :  { %2296 = vperm.xlu0 %5253, %v4906_v10   ;;  %v4972_v9 = vld [vmem:[%s7576_s0 + $0x54] ss:$0 sm:$0xff] }
 0x246   :  { %v1981_v11 = vpop.permute.xlu2 %1980  ;;  %v1871_v12 = vpop.permute.xlu1 %1870 }
 0x247   :  { %4848 = vst [vmem:[%s7577_s1 + $0x2f0] sm:$0xff] %v1981_v11  ;;  %v1860_v13 = vpop.permute.xlu0 %1859 }
 0x248   :  { %4828 = vst [vmem:[%s7577_s1 + $0x4e0] sm:$0xff] %v1871_v12 }
 0x249   :  { %4826 = vst [vmem:[%s7577_s1 + $0x3e0] sm:$0xff] %v1860_v13  ;;  %v4976_v13 = vld [vmem:[%s7576_s0 + $0x74] ss:$0 sm:$0xff] }
 0x24c   :  { %2318 = vperm.xlu2 %5255, %v4910_v14   ;;  %2307 = vperm.xlu1 %5254, %v4908_v15   ;;  %v4974_v14 = vld [vmem:[%s7576_s0 + $0x64] ss:$0 sm:$0xff] }
 0x24d   :  { %2329 = vperm.xlu0 %5253, %v4912_v16   ;;  %v4978_v15 = vld [vmem:[%s7576_s0 + $0x84] ss:$0 sm:$0xff] }
 0x24e   :  { %v2014_v17 = vpop.permute.xlu2 %2013  ;;  %v1904_v18 = vpop.permute.xlu1 %1903 }
 0x24f   :  { %4854 = vst [vmem:[%s7577_s1 + $0x5f0] sm:$0xff] %v2014_v17  ;;  %v1893_v19 = vpop.permute.xlu0 %1892 }
 0x250   :  { %4834 = vst [vmem:[%s7577_s1 + $0x7e0] sm:$0xff] %v1904_v18 }
 0x251   :  { %4832 = vst [vmem:[%s7577_s1 + $0x6e0] sm:$0xff] %v1893_v19  ;;  %v4982_v19 = vld [vmem:[%s7576_s0 + $0xa4] ss:$0 sm:$0xff] }
 0x254   :  { %2350 = vperm.xlu2 %5255, %v4916_v20   ;;  %2339 = vperm.xlu1 %5254, %v4914_v21   ;;  %v4980_v20 = vld [vmem:[%s7576_s0 + $0x94] ss:$0 sm:$0xff] }
 0x255   :  { %2361 = vperm.xlu0 %5253, %v4918_v22   ;;  %v4984_v21 = vld [vmem:[%s7576_s0 + $0xb4] ss:$0 sm:$0xff] }
 0x256   :  { %v2047_v23 = vpop.permute.xlu2 %2046  ;;  %v1937_v24 = vpop.permute.xlu1 %1936 }
 0x257   :  { %4860 = vst [vmem:[%s7577_s1 + $0x8f0] sm:$0xff] %v2047_v23  ;;  %v1926_v25 = vpop.permute.xlu0 %1925 }
 0x258   :  { %4840 = vst [vmem:[%s7577_s1 + $0xae0] sm:$0xff] %v1937_v24 }
 0x259   :  { %4838 = vst [vmem:[%s7577_s1 + $0x9e0] sm:$0xff] %v1926_v25  ;;  %v4988_v25 = vld [vmem:[%s7576_s0 + $0x15] ss:$0 sm:$0xff] }
 0x25c   :  { %2383 = vperm.xlu2 %5255, %v4922_v26   ;;  %2372 = vperm.xlu1 %5254, %v4920_v27   ;;  %v4986_v26 = vld [vmem:[%s7576_s0 + $0x5] ss:$0 sm:$0xff] }
 0x25d   :  { %2394 = vperm.xlu0 %5253, %v4924_v28   ;;  %v4990_v27 = vld [vmem:[%s7576_s0 + $0x25] ss:$0 sm:$0xff] }
 0x25e   :  { %v2080_v29 = vpop.permute.xlu2 %2079  ;;  %v1970_v30 = vpop.permute.xlu1 %1969 }
 0x25f   :  { %4866 = vst [vmem:[%s7577_s1 + $0xbf0] sm:$0xff] %v2080_v29  ;;  %v1959_v31 = vpop.permute.xlu0 %1958 }
 0x260   :  { %4846 = vst [vmem:[%s7577_s1 + $0x1f0] sm:$0xff] %v1970_v30 }
 0x261   :  { %4844 = vst [vmem:[%s7577_s1 + $0xf0] sm:$0xff] %v1959_v31  ;;  %v4994_v31 = vld [vmem:[%s7576_s0 + $0x45] ss:$0 sm:$0xff] }
 0x264   :  { %2416 = vperm.xlu2 %5255, %v4928_v1   ;;  %2405 = vperm.xlu1 %5254, %v4926_v32   ;;  %v4992_v1 = vld [vmem:[%s7576_s0 + $0x35] ss:$0 sm:$0xff] }
 0x265   :  { %2427 = vperm.xlu0 %5253, %v4930_v33   ;;  %v4996_v32 = vld [vmem:[%s7576_s0 + $0x55] ss:$0 sm:$0xff] }
 0x266   :  { %v2003_v34 = vpop.permute.xlu1 %2002 }
 0x267   :  { %4852 = vst [vmem:[%s7577_s1 + $0x4f0] sm:$0xff] %v2003_v34  ;;  %v1992_v35 = vpop.permute.xlu0 %1991 }
 0x268   :  { %4850 = vst [vmem:[%s7577_s1 + $0x3f0] sm:$0xff] %v1992_v35 }
 0x26c   :  { %2449 = vperm.xlu2 %5255, %v4934_v36   ;;  %2438 = vperm.xlu1 %5254, %v4932_v37   ;;  %v5000_v36 = vld [vmem:[%s7576_s0 + $0x75] ss:$0 sm:$0xff]  ;;  %v4998_v37 = vld [vmem:[%s7576_s0 + $0x65] ss:$0 sm:$0xff] }
 0x26d   :  { %2460 = vperm.xlu0 %5253, %v4936_v38   ;;  %v5002_v38 = vld [vmem:[%s7576_s0 + $0x85] ss:$0 sm:$0xff] }
 0x26e   :  { %v2109_v39 = vpop.permute.xlu2 %2108  ;;  %v2036_v40 = vpop.permute.xlu1 %2035 }
 0x26f   :  { %4871 = vst [vmem:[%s7577_s1 + $0x208] sm:$0xff] %v2109_v39  ;;  %v2025_v41 = vpop.permute.xlu0 %2024 }
 0x270   :  { %4858 = vst [vmem:[%s7577_s1 + $0x7f0] sm:$0xff] %v2036_v40 }
 0x271   :  { %4856 = vst [vmem:[%s7577_s1 + $0x6f0] sm:$0xff] %v2025_v41 }
 0x274   :  { %2481 = vperm.xlu2 %5255, %v4940_v42   ;;  %2470 = vperm.xlu1 %5254, %v4938_v43   ;;  %v5006_v42 = vld [vmem:[%s7576_s0 + $0xa5] ss:$0 sm:$0xff]  ;;  %v5004_v43 = vld [vmem:[%s7576_s0 + $0x95] ss:$0 sm:$0xff] }
 0x275   :  { %2492 = vperm.xlu0 %5253, %v4942_v44   ;;  %v5008_v44 = vld [vmem:[%s7576_s0 + $0xb5] ss:$0 sm:$0xff] }
 0x276   :  { %v2129_v45 = vpop.permute.xlu2 %2128  ;;  %v2069_v46 = vpop.permute.xlu1 %2068 }
 0x277   :  { %4875 = vst [vmem:[%s7577_s1 + $0x408] sm:$0xff] %v2129_v45  ;;  %v2058_v47 = vpop.permute.xlu0 %2057 }
 0x278   :  { %4864 = vst [vmem:[%s7577_s1 + $0xaf0] sm:$0xff] %v2069_v46 }
 0x279   :  { %4862 = vst [vmem:[%s7577_s1 + $0x9f0] sm:$0xff] %v2058_v47 }
 0x27c   :  { %2514 = vperm.xlu2 %5255, %v4946_v48   ;;  %2503 = vperm.xlu1 %5254, %v4944_v49   ;;  %v5012_v48 = vld [vmem:[%s7576_s0 + $0x16] ss:$0 sm:$0xff]  ;;  %v5010_v49 = vld [vmem:[%s7576_s0 + $0x6] ss:$0 sm:$0xff] }
 0x27d   :  { %2525 = vperm.xlu0 %5253, %v4948_v50   ;;  %v5014_v50 = vld [vmem:[%s7576_s0 + $0x26] ss:$0 sm:$0xff] }
 0x27e   :  { %v2159_v51 = vpop.permute.xlu2 %2158 }
 0x27f   :  { %4881 = vst [vmem:[%s7577_s1 + $0x708] sm:$0xff] %v2159_v51 }
 0x284   :  { %2547 = vperm.xlu2 %5255, %v4952_v52   ;;  %2536 = vperm.xlu1 %5254, %v4950_v53  }
 0x285   :  { %2558 = vperm.xlu0 %5253, %v4954_v54   ;;  %v5018_v54 = vld [vmem:[%s7576_s0 + $0x46] ss:$0 sm:$0xff] }
 0x286   :  { %v2189_v55 = vpop.permute.xlu2 %2188  ;;  %v2099_v56 = vpop.permute.xlu1 %2098 }
 0x287   :  { %4887 = vst [vmem:[%s7577_s1 + $0xa08] sm:$0xff] %v2189_v55  ;;  %v2089_v57 = vpop.permute.xlu0 %2088  ;;  %v5016_v55 = vld [vmem:[%s7576_s0 + $0x36] ss:$0 sm:$0xff] }
 0x288   :  { %4869 = vst [vmem:[%s7577_s1 + $0x108] sm:$0xff] %v2099_v56  ;;  %v5020_v56 = vld [vmem:[%s7576_s0 + $0x56] ss:$0 sm:$0xff] }
 0x289   :  { %4867 = vst [vmem:[%s7577_s1 + $0x8] sm:$0xff] %v2089_v57 }
 0x28c   :  { %2580 = vperm.xlu2 %5255, %v4958_v58   ;;  %2569 = vperm.xlu1 %5254, %v4956_v59  }
 0x28d   :  { %2591 = vperm.xlu0 %5253, %v4960_v60   ;;  %v5024_v60 = vld [vmem:[%s7576_s0 + $0x76] ss:$0 sm:$0xff] }
 0x28e   :  { %v2220_v61 = vpop.permute.xlu2 %2219  ;;  %v2119_v62 = vpop.permute.xlu1 %2118 }
 0x28f   :  { %4893 = vst [vmem:[%s7577_s1 + $0x118] sm:$0xff] %v2220_v61  ;;  %v2139_v63 = vpop.permute.xlu0 %2138  ;;  %v5022_v61 = vld [vmem:[%s7576_s0 + $0x66] ss:$0 sm:$0xff] }
 0x290   :  { %4873 = vst [vmem:[%s7577_s1 + $0x308] sm:$0xff] %v2119_v62  ;;  %v5026_v62 = vld [vmem:[%s7576_s0 + $0x86] ss:$0 sm:$0xff] }
 0x291   :  { %4877 = vst [vmem:[%s7577_s1 + $0x508] sm:$0xff] %v2139_v63 }
 0x294   :  { %2612 = vperm.xlu2 %5255, %v4964_v0   ;;  %2601 = vperm.xlu1 %5254, %v4962_v2  }
 0x295   :  { %2623 = vperm.xlu0 %5253, %v4966_v3   ;;  %v5030_v3 = vld [vmem:[%s7576_s0 + $0xa6] ss:$0 sm:$0xff] }
 0x296   :  { %v2253_v4 = vpop.permute.xlu2 %2252  ;;  %v2149_v5 = vpop.permute.xlu1 %2148 }
 0x297   :  { %4899 = vst [vmem:[%s7577_s1 + $0x418] sm:$0xff] %v2253_v4  ;;  %v2169_v6 = vpop.permute.xlu0 %2168  ;;  %v5028_v4 = vld [vmem:[%s7576_s0 + $0x96] ss:$0 sm:$0xff] }
 0x298   :  { %4879 = vst [vmem:[%s7577_s1 + $0x608] sm:$0xff] %v2149_v5  ;;  %v5032_v5 = vld [vmem:[%s7576_s0 + $0xb6] ss:$0 sm:$0xff] }
 0x299   :  { %4883 = vst [vmem:[%s7577_s1 + $0x808] sm:$0xff] %v2169_v6 }
 0x29c   :  { %2645 = vperm.xlu2 %5255, %v4970_v7   ;;  %2634 = vperm.xlu1 %5254, %v4968_v8  }
 0x29d   :  { %2656 = vperm.xlu0 %5253, %v4972_v9   ;;  %v5036_v9 = vld [vmem:[%s7576_s0 + $0x17] ss:$0 sm:$0xff] }
 0x29e   :  { %v2286_v10 = vpop.permute.xlu2 %2285  ;;  %v2179_v11 = vpop.permute.xlu1 %2178 }
 0x29f   :  { %4905 = vst [vmem:[%s7577_s1 + $0x718] sm:$0xff] %v2286_v10  ;;  %v2199_v12 = vpop.permute.xlu0 %2198  ;;  %v5034_v10 = vld [vmem:[%s7576_s0 + $0x7] ss:$0 sm:$0xff] }
 0x2a0   :  { %4885 = vst [vmem:[%s7577_s1 + $0x908] sm:$0xff] %v2179_v11  ;;  %v5038_v11 = vld [vmem:[%s7576_s0 + $0x27] ss:$0 sm:$0xff] }
 0x2a1   :  { %4889 = vst [vmem:[%s7577_s1 + $0xb08] sm:$0xff] %v2199_v12 }
 0x2a4   :  { %2678 = vperm.xlu2 %5255, %v4976_v13   ;;  %2667 = vperm.xlu1 %5254, %v4974_v14  }
 0x2a5   :  { %2689 = vperm.xlu0 %5253, %v4978_v15   ;;  %v5042_v15 = vld [vmem:[%s7576_s0 + $0x47] ss:$0 sm:$0xff] }
 0x2a6   :  { %v2319_v16 = vpop.permute.xlu2 %2318  ;;  %v2209_v17 = vpop.permute.xlu1 %2208 }
 0x2a7   :  { %4911 = vst [vmem:[%s7577_s1 + $0xa18] sm:$0xff] %v2319_v16  ;;  %v2231_v18 = vpop.permute.xlu0 %2230  ;;  %v5040_v16 = vld [vmem:[%s7576_s0 + $0x37] ss:$0 sm:$0xff] }
 0x2a8   :  { %4891 = vst [vmem:[%s7577_s1 + $0x18] sm:$0xff] %v2209_v17  ;;  %v5044_v17 = vld [vmem:[%s7576_s0 + $0x57] ss:$0 sm:$0xff] }
 0x2a9   :  { %4895 = vst [vmem:[%s7577_s1 + $0x218] sm:$0xff] %v2231_v18 }
 0x2ac   :  { %2711 = vperm.xlu2 %5255, %v4982_v19   ;;  %2700 = vperm.xlu1 %5254, %v4980_v20  }
 0x2ad   :  { %2722 = vperm.xlu0 %5253, %v4984_v21   ;;  %v5048_v21 = vld [vmem:[%s7576_s0 + $0x77] ss:$0 sm:$0xff] }
 0x2ae   :  { %v2351_v22 = vpop.permute.xlu2 %2350  ;;  %v2242_v23 = vpop.permute.xlu1 %2241 }
 0x2af   :  { %4917 = vst [vmem:[%s7577_s1 + $0x128] sm:$0xff] %v2351_v22  ;;  %v2264_v24 = vpop.permute.xlu0 %2263  ;;  %v5046_v22 = vld [vmem:[%s7576_s0 + $0x67] ss:$0 sm:$0xff] }
 0x2b0   :  { %4897 = vst [vmem:[%s7577_s1 + $0x318] sm:$0xff] %v2242_v23  ;;  %v5050_v23 = vld [vmem:[%s7576_s0 + $0x87] ss:$0 sm:$0xff] }
 0x2b1   :  { %4901 = vst [vmem:[%s7577_s1 + $0x518] sm:$0xff] %v2264_v24 }
 0x2b4   :  { %2743 = vperm.xlu2 %5255, %v4988_v25   ;;  %2732 = vperm.xlu1 %5254, %v4986_v26  }
 0x2b5   :  { %2754 = vperm.xlu0 %5253, %v4990_v27   ;;  %v5054_v27 = vld [vmem:[%s7576_s0 + $0xa7] ss:$0 sm:$0xff] }
 0x2b6   :  { %v2384_v28 = vpop.permute.xlu2 %2383  ;;  %v2275_v29 = vpop.permute.xlu1 %2274 }
 0x2b7   :  { %4923 = vst [vmem:[%s7577_s1 + $0x428] sm:$0xff] %v2384_v28  ;;  %v2297_v30 = vpop.permute.xlu0 %2296  ;;  %v5052_v28 = vld [vmem:[%s7576_s0 + $0x97] ss:$0 sm:$0xff] }
 0x2b8   :  { %4903 = vst [vmem:[%s7577_s1 + $0x618] sm:$0xff] %v2275_v29  ;;  %v5056_v29 = vld [vmem:[%s7576_s0 + $0xb7] ss:$0 sm:$0xff] }
 0x2b9   :  { %4907 = vst [vmem:[%s7577_s1 + $0x818] sm:$0xff] %v2297_v30 }
 0x2bc   :  { %2776 = vperm.xlu2 %5255, %v4994_v31   ;;  %2765 = vperm.xlu1 %5254, %v4992_v1  }
 0x2bd   :  { %2787 = vperm.xlu0 %5253, %v4996_v32   ;;  %v5060_v32 = vld [vmem:[%s7576_s0 + $0x18] ss:$0 sm:$0xff] }
 0x2be   :  { %v2417_v33 = vpop.permute.xlu2 %2416  ;;  %v2308_v34 = vpop.permute.xlu1 %2307 }
 0x2bf   :  { %4929 = vst [vmem:[%s7577_s1 + $0x728] sm:$0xff] %v2417_v33  ;;  %v2330_v35 = vpop.permute.xlu0 %2329  ;;  %v5058_v33 = vld [vmem:[%s7576_s0 + $0x8] ss:$0 sm:$0xff] }
 0x2c0   :  { %4909 = vst [vmem:[%s7577_s1 + $0x918] sm:$0xff] %v2308_v34  ;;  %v5062_v34 = vld [vmem:[%s7576_s0 + $0x28] ss:$0 sm:$0xff] }
 0x2c1   :  { %4913 = vst [vmem:[%s7577_s1 + $0xb18] sm:$0xff] %v2330_v35 }
 0x2c4   :  { %2809 = vperm.xlu2 %5255, %v5000_v36   ;;  %2798 = vperm.xlu1 %5254, %v4998_v37  }
 0x2c5   :  { %2820 = vperm.xlu0 %5253, %v5002_v38   ;;  %v5066_v38 = vld [vmem:[%s7576_s0 + $0x48] ss:$0 sm:$0xff] }
 0x2c6   :  { %v2450_v39 = vpop.permute.xlu2 %2449  ;;  %v2340_v40 = vpop.permute.xlu1 %2339 }
 0x2c7   :  { %4935 = vst [vmem:[%s7577_s1 + $0xa28] sm:$0xff] %v2450_v39  ;;  %v2362_v41 = vpop.permute.xlu0 %2361  ;;  %v5064_v39 = vld [vmem:[%s7576_s0 + $0x38] ss:$0 sm:$0xff] }
 0x2c8   :  { %4915 = vst [vmem:[%s7577_s1 + $0x28] sm:$0xff] %v2340_v40  ;;  %v5068_v40 = vld [vmem:[%s7576_s0 + $0x58] ss:$0 sm:$0xff] }
 0x2c9   :  { %4919 = vst [vmem:[%s7577_s1 + $0x228] sm:$0xff] %v2362_v41 }
 0x2cc   :  { %2842 = vperm.xlu2 %5255, %v5006_v42   ;;  %2831 = vperm.xlu1 %5254, %v5004_v43  }
 0x2cd   :  { %2853 = vperm.xlu0 %5253, %v5008_v44   ;;  %v5072_v44 = vld [vmem:[%s7576_s0 + $0x78] ss:$0 sm:$0xff] }
 0x2ce   :  { %v2482_v45 = vpop.permute.xlu2 %2481  ;;  %v2373_v46 = vpop.permute.xlu1 %2372 }
 0x2cf   :  { %4941 = vst [vmem:[%s7577_s1 + $0x138] sm:$0xff] %v2482_v45  ;;  %v2395_v47 = vpop.permute.xlu0 %2394  ;;  %v5070_v45 = vld [vmem:[%s7576_s0 + $0x68] ss:$0 sm:$0xff] }
 0x2d0   :  { %4921 = vst [vmem:[%s7577_s1 + $0x328] sm:$0xff] %v2373_v46  ;;  %v5074_v46 = vld [vmem:[%s7576_s0 + $0x88] ss:$0 sm:$0xff] }
 0x2d1   :  { %4925 = vst [vmem:[%s7577_s1 + $0x528] sm:$0xff] %v2395_v47 }
 0x2d4   :  { %2874 = vperm.xlu2 %5255, %v5012_v48   ;;  %2863 = vperm.xlu1 %5254, %v5010_v49  }
 0x2d5   :  { %2885 = vperm.xlu0 %5253, %v5014_v50   ;;  %v5078_v50 = vld [vmem:[%s7576_s0 + $0xa8] ss:$0 sm:$0xff] }
 0x2d6   :  { %v2515_v51 = vpop.permute.xlu2 %2514  ;;  %v2406_v52 = vpop.permute.xlu1 %2405 }
 0x2d7   :  { %4947 = vst [vmem:[%s7577_s1 + $0x438] sm:$0xff] %v2515_v51  ;;  %v2428_v53 = vpop.permute.xlu0 %2427  ;;  %v5076_v51 = vld [vmem:[%s7576_s0 + $0x98] ss:$0 sm:$0xff] }
 0x2d8   :  { %4927 = vst [vmem:[%s7577_s1 + $0x628] sm:$0xff] %v2406_v52  ;;  %v5080_v52 = vld [vmem:[%s7576_s0 + $0xb8] ss:$0 sm:$0xff] }
 0x2d9   :  { %4931 = vst [vmem:[%s7577_s1 + $0x828] sm:$0xff] %v2428_v53 }
 0x2dc   :  { %2907 = vperm.xlu2 %5255, %v5018_v54   ;;  %2896 = vperm.xlu1 %5254, %v5016_v55  }
 0x2dd   :  { %2918 = vperm.xlu0 %5253, %v5020_v56   ;;  %v5084_v56 = vld [vmem:[%s7576_s0 + $0x19] ss:$0 sm:$0xff] }
 0x2de   :  { %v2548_v57 = vpop.permute.xlu2 %2547  ;;  %v2439_v58 = vpop.permute.xlu1 %2438 }
 0x2df   :  { %4953 = vst [vmem:[%s7577_s1 + $0x738] sm:$0xff] %v2548_v57  ;;  %v2461_v59 = vpop.permute.xlu0 %2460  ;;  %v5082_v57 = vld [vmem:[%s7576_s0 + $0x9] ss:$0 sm:$0xff] }
 0x2e0   :  { %4933 = vst [vmem:[%s7577_s1 + $0x928] sm:$0xff] %v2439_v58  ;;  %v5086_v58 = vld [vmem:[%s7576_s0 + $0x29] ss:$0 sm:$0xff] }
 0x2e1   :  { %4937 = vst [vmem:[%s7577_s1 + $0xb28] sm:$0xff] %v2461_v59 }
 0x2e4   :  { %2940 = vperm.xlu2 %5255, %v5024_v60   ;;  %2929 = vperm.xlu1 %5254, %v5022_v61  }
 0x2e5   :  { %2951 = vperm.xlu0 %5253, %v5026_v62   ;;  %v5090_v62 = vld [vmem:[%s7576_s0 + $0x49] ss:$0 sm:$0xff] }
 0x2e6   :  { %v2581_v63 = vpop.permute.xlu2 %2580  ;;  %v2471_v0 = vpop.permute.xlu1 %2470 }
 0x2e7   :  { %4959 = vst [vmem:[%s7577_s1 + $0xa38] sm:$0xff] %v2581_v63  ;;  %v2493_v2 = vpop.permute.xlu0 %2492  ;;  %v5088_v63 = vld [vmem:[%s7576_s0 + $0x39] ss:$0 sm:$0xff] }
 0x2e8   :  { %4939 = vst [vmem:[%s7577_s1 + $0x38] sm:$0xff] %v2471_v0  ;;  %v5092_v0 = vld [vmem:[%s7576_s0 + $0x59] ss:$0 sm:$0xff] }
 0x2e9   :  { %4943 = vst [vmem:[%s7577_s1 + $0x238] sm:$0xff] %v2493_v2 }
 0x2ec   :  { %2973 = vperm.xlu2 %5255, %v5030_v3   ;;  %2962 = vperm.xlu1 %5254, %v5028_v4  }
 0x2ed   :  { %2984 = vperm.xlu0 %5253, %v5032_v5   ;;  %v5096_v5 = vld [vmem:[%s7576_s0 + $0x79] ss:$0 sm:$0xff] }
 0x2ee   :  { %v2613_v6 = vpop.permute.xlu2 %2612  ;;  %v2504_v7 = vpop.permute.xlu1 %2503 }
 0x2ef   :  { %4965 = vst [vmem:[%s7577_s1 + $0x148] sm:$0xff] %v2613_v6  ;;  %v2526_v8 = vpop.permute.xlu0 %2525  ;;  %v5094_v6 = vld [vmem:[%s7576_s0 + $0x69] ss:$0 sm:$0xff] }
 0x2f0   :  { %4945 = vst [vmem:[%s7577_s1 + $0x338] sm:$0xff] %v2504_v7  ;;  %v5098_v7 = vld [vmem:[%s7576_s0 + $0x89] ss:$0 sm:$0xff] }
 0x2f1   :  { %4949 = vst [vmem:[%s7577_s1 + $0x538] sm:$0xff] %v2526_v8 }
 0x2f4   :  { %3005 = vperm.xlu2 %5255, %v5036_v9   ;;  %2994 = vperm.xlu1 %5254, %v5034_v10  }
 0x2f5   :  { %3016 = vperm.xlu0 %5253, %v5038_v11   ;;  %v5102_v11 = vld [vmem:[%s7576_s0 + $0xa9] ss:$0 sm:$0xff] }
 0x2f6   :  { %v2646_v12 = vpop.permute.xlu2 %2645  ;;  %v2537_v13 = vpop.permute.xlu1 %2536 }
 0x2f7   :  { %4971 = vst [vmem:[%s7577_s1 + $0x448] sm:$0xff] %v2646_v12  ;;  %v2559_v14 = vpop.permute.xlu0 %2558  ;;  %v5100_v12 = vld [vmem:[%s7576_s0 + $0x99] ss:$0 sm:$0xff] }
 0x2f8   :  { %4951 = vst [vmem:[%s7577_s1 + $0x638] sm:$0xff] %v2537_v13  ;;  %v5104_v13 = vld [vmem:[%s7576_s0 + $0xb9] ss:$0 sm:$0xff] }
 0x2f9   :  { %4955 = vst [vmem:[%s7577_s1 + $0x838] sm:$0xff] %v2559_v14 }
 0x2fc   :  { %3038 = vperm.xlu2 %5255, %v5042_v15   ;;  %3027 = vperm.xlu1 %5254, %v5040_v16  }
 0x2fd   :  { %3049 = vperm.xlu0 %5253, %v5044_v17   ;;  %v5108_v17 = vld [vmem:[%s7576_s0 + $0x1a] ss:$0 sm:$0xff] }
 0x2fe   :  { %v2679_v18 = vpop.permute.xlu2 %2678  ;;  %v2570_v19 = vpop.permute.xlu1 %2569 }
 0x2ff   :  { %4977 = vst [vmem:[%s7577_s1 + $0x748] sm:$0xff] %v2679_v18  ;;  %v2592_v20 = vpop.permute.xlu0 %2591  ;;  %v5106_v18 = vld [vmem:[%s7576_s0 + $0xa] ss:$0 sm:$0xff] }
 0x300   :  { %4957 = vst [vmem:[%s7577_s1 + $0x938] sm:$0xff] %v2570_v19  ;;  %v5110_v19 = vld [vmem:[%s7576_s0 + $0x2a] ss:$0 sm:$0xff] }
 0x301   :  { %4961 = vst [vmem:[%s7577_s1 + $0xb38] sm:$0xff] %v2592_v20 }
 0x304   :  { %3071 = vperm.xlu2 %5255, %v5048_v21   ;;  %3060 = vperm.xlu1 %5254, %v5046_v22  }
 0x305   :  { %3082 = vperm.xlu0 %5253, %v5050_v23   ;;  %v5114_v23 = vld [vmem:[%s7576_s0 + $0x4a] ss:$0 sm:$0xff] }
 0x306   :  { %v2712_v24 = vpop.permute.xlu2 %2711  ;;  %v2602_v25 = vpop.permute.xlu1 %2601 }
 0x307   :  { %4983 = vst [vmem:[%s7577_s1 + $0xa48] sm:$0xff] %v2712_v24  ;;  %v2624_v26 = vpop.permute.xlu0 %2623  ;;  %v5112_v24 = vld [vmem:[%s7576_s0 + $0x3a] ss:$0 sm:$0xff] }
 0x308   :  { %4963 = vst [vmem:[%s7577_s1 + $0x48] sm:$0xff] %v2602_v25  ;;  %v5116_v25 = vld [vmem:[%s7576_s0 + $0x5a] ss:$0 sm:$0xff] }
 0x309   :  { %4967 = vst [vmem:[%s7577_s1 + $0x248] sm:$0xff] %v2624_v26 }
 0x30c   :  { %3104 = vperm.xlu2 %5255, %v5054_v27   ;;  %3093 = vperm.xlu1 %5254, %v5052_v28  }
 0x30d   :  { %3115 = vperm.xlu0 %5253, %v5056_v29   ;;  %v5120_v29 = vld [vmem:[%s7576_s0 + $0x7a] ss:$0 sm:$0xff] }
 0x30e   :  { %v2744_v30 = vpop.permute.xlu2 %2743  ;;  %v2635_v31 = vpop.permute.xlu1 %2634 }
 0x30f   :  { %4989 = vst [vmem:[%s7577_s1 + $0x158] sm:$0xff] %v2744_v30  ;;  %v2657_v1 = vpop.permute.xlu0 %2656  ;;  %v5118_v30 = vld [vmem:[%s7576_s0 + $0x6a] ss:$0 sm:$0xff] }
 0x310   :  { %4969 = vst [vmem:[%s7577_s1 + $0x348] sm:$0xff] %v2635_v31  ;;  %v5122_v31 = vld [vmem:[%s7576_s0 + $0x8a] ss:$0 sm:$0xff] }
 0x311   :  { %4973 = vst [vmem:[%s7577_s1 + $0x548] sm:$0xff] %v2657_v1 }
 0x314   :  { %3135 = vperm.xlu2 %5255, %v5060_v32   ;;  %3125 = vperm.xlu1 %5254, %v5058_v33  }
 0x315   :  { %3145 = vperm.xlu0 %5253, %v5062_v34   ;;  %v5126_v34 = vld [vmem:[%s7576_s0 + $0xaa] ss:$0 sm:$0xff] }
 0x316   :  { %v2777_v35 = vpop.permute.xlu2 %2776  ;;  %v2668_v36 = vpop.permute.xlu1 %2667 }
 0x317   :  { %4995 = vst [vmem:[%s7577_s1 + $0x458] sm:$0xff] %v2777_v35  ;;  %v2690_v37 = vpop.permute.xlu0 %2689  ;;  %v5124_v35 = vld [vmem:[%s7576_s0 + $0x9a] ss:$0 sm:$0xff] }
 0x318   :  { %4975 = vst [vmem:[%s7577_s1 + $0x648] sm:$0xff] %v2668_v36  ;;  %v5128_v36 = vld [vmem:[%s7576_s0 + $0xba] ss:$0 sm:$0xff] }
 0x319   :  { %4979 = vst [vmem:[%s7577_s1 + $0x848] sm:$0xff] %v2690_v37 }
 0x31c   :  { %3165 = vperm.xlu2 %5255, %v5066_v38   ;;  %3155 = vperm.xlu1 %5254, %v5064_v39  }
 0x31d   :  { %3175 = vperm.xlu0 %5253, %v5068_v40   ;;  %v5132_v40 = vld [vmem:[%s7576_s0 + $0x1b] ss:$0 sm:$0xff] }
 0x31e   :  { %v2810_v41 = vpop.permute.xlu2 %2809  ;;  %v2701_v42 = vpop.permute.xlu1 %2700 }
 0x31f   :  { %5001 = vst [vmem:[%s7577_s1 + $0x758] sm:$0xff] %v2810_v41  ;;  %v2723_v43 = vpop.permute.xlu0 %2722  ;;  %v5130_v41 = vld [vmem:[%s7576_s0 + $0xb] ss:$0 sm:$0xff] }
 0x320   :  { %4981 = vst [vmem:[%s7577_s1 + $0x948] sm:$0xff] %v2701_v42  ;;  %v5134_v42 = vld [vmem:[%s7576_s0 + $0x2b] ss:$0 sm:$0xff] }
 0x321   :  { %4985 = vst [vmem:[%s7577_s1 + $0xb48] sm:$0xff] %v2723_v43 }
 0x324   :  { %3195 = vperm.xlu2 %5255, %v5072_v44   ;;  %3185 = vperm.xlu1 %5254, %v5070_v45  }
 0x325   :  { %3205 = vperm.xlu0 %5253, %v5074_v46   ;;  %v5138_v46 = vld [vmem:[%s7576_s0 + $0x4b] ss:$0 sm:$0xff] }
 0x326   :  { %v2843_v47 = vpop.permute.xlu2 %2842  ;;  %v2733_v48 = vpop.permute.xlu1 %2732 }
 0x327   :  { %5007 = vst [vmem:[%s7577_s1 + $0xa58] sm:$0xff] %v2843_v47  ;;  %v2755_v49 = vpop.permute.xlu0 %2754  ;;  %v5136_v47 = vld [vmem:[%s7576_s0 + $0x3b] ss:$0 sm:$0xff] }
 0x328   :  { %4987 = vst [vmem:[%s7577_s1 + $0x58] sm:$0xff] %v2733_v48  ;;  %v5140_v48 = vld [vmem:[%s7576_s0 + $0x5b] ss:$0 sm:$0xff] }
 0x329   :  { %4991 = vst [vmem:[%s7577_s1 + $0x258] sm:$0xff] %v2755_v49 }
 0x32c   :  { %3225 = vperm.xlu2 %5255, %v5078_v50   ;;  %3215 = vperm.xlu1 %5254, %v5076_v51  }
 0x32d   :  { %3235 = vperm.xlu0 %5253, %v5080_v52   ;;  %v5144_v52 = vld [vmem:[%s7576_s0 + $0x7b] ss:$0 sm:$0xff] }
 0x32e   :  { %v2875_v53 = vpop.permute.xlu2 %2874  ;;  %v2766_v54 = vpop.permute.xlu1 %2765 }
 0x32f   :  { %5013 = vst [vmem:[%s7577_s1 + $0x168] sm:$0xff] %v2875_v53  ;;  %v2788_v55 = vpop.permute.xlu0 %2787  ;;  %v5142_v53 = vld [vmem:[%s7576_s0 + $0x6b] ss:$0 sm:$0xff] }
 0x330   :  { %4993 = vst [vmem:[%s7577_s1 + $0x358] sm:$0xff] %v2766_v54  ;;  %v5146_v54 = vld [vmem:[%s7576_s0 + $0x8b] ss:$0 sm:$0xff] }
 0x331   :  { %4997 = vst [vmem:[%s7577_s1 + $0x558] sm:$0xff] %v2788_v55 }
 0x334   :  { %3257 = vperm.xlu2 %5255, %v5084_v56   ;;  %3246 = vperm.xlu1 %5254, %v5082_v57  }
 0x335   :  { %3268 = vperm.xlu0 %5253, %v5086_v58   ;;  %v5150_v58 = vld [vmem:[%s7576_s0 + $0xab] ss:$0 sm:$0xff] }
 0x336   :  { %v2908_v59 = vpop.permute.xlu2 %2907  ;;  %v2799_v60 = vpop.permute.xlu1 %2798 }
 0x337   :  { %5019 = vst [vmem:[%s7577_s1 + $0x468] sm:$0xff] %v2908_v59  ;;  %v2821_v61 = vpop.permute.xlu0 %2820  ;;  %v5148_v59 = vld [vmem:[%s7576_s0 + $0x9b] ss:$0 sm:$0xff] }
 0x338   :  { %4999 = vst [vmem:[%s7577_s1 + $0x658] sm:$0xff] %v2799_v60  ;;  %v5152_v60 = vld [vmem:[%s7576_s0 + $0xbb] ss:$0 sm:$0xff] }
 0x339   :  { %5003 = vst [vmem:[%s7577_s1 + $0x858] sm:$0xff] %v2821_v61 }
 0x33c   :  { %3290 = vperm.xlu2 %5255, %v5090_v62   ;;  %3279 = vperm.xlu1 %5254, %v5088_v63  }
 0x33d   :  { %3301 = vperm.xlu0 %5253, %v5092_v0   ;;  %v5156_v0 = vld [vmem:[%s7576_s0 + $0x1c] ss:$0 sm:$0xff] }
 0x33e   :  { %v2941_v2 = vpop.permute.xlu2 %2940  ;;  %v2832_v3 = vpop.permute.xlu1 %2831 }
 0x33f   :  { %5025 = vst [vmem:[%s7577_s1 + $0x768] sm:$0xff] %v2941_v2  ;;  %v2854_v4 = vpop.permute.xlu0 %2853  ;;  %v5154_v2 = vld [vmem:[%s7576_s0 + $0xc] ss:$0 sm:$0xff] }
 0x340   :  { %5005 = vst [vmem:[%s7577_s1 + $0x958] sm:$0xff] %v2832_v3  ;;  %v5158_v3 = vld [vmem:[%s7576_s0 + $0x2c] ss:$0 sm:$0xff] }
 0x341   :  { %5009 = vst [vmem:[%s7577_s1 + $0xb58] sm:$0xff] %v2854_v4 }
 0x344   :  { %3323 = vperm.xlu2 %5255, %v5096_v5   ;;  %3312 = vperm.xlu1 %5254, %v5094_v6  }
 0x345   :  { %3334 = vperm.xlu0 %5253, %v5098_v7   ;;  %v5162_v7 = vld [vmem:[%s7576_s0 + $0x4c] ss:$0 sm:$0xff] }
 0x346   :  { %v2974_v8 = vpop.permute.xlu2 %2973  ;;  %v2864_v9 = vpop.permute.xlu1 %2863 }
 0x347   :  { %5031 = vst [vmem:[%s7577_s1 + $0xa68] sm:$0xff] %v2974_v8  ;;  %v2886_v10 = vpop.permute.xlu0 %2885  ;;  %v5160_v8 = vld [vmem:[%s7576_s0 + $0x3c] ss:$0 sm:$0xff] }
 0x348   :  { %5011 = vst [vmem:[%s7577_s1 + $0x68] sm:$0xff] %v2864_v9  ;;  %v5164_v9 = vld [vmem:[%s7576_s0 + $0x5c] ss:$0 sm:$0xff] }
 0x349   :  { %5015 = vst [vmem:[%s7577_s1 + $0x268] sm:$0xff] %v2886_v10 }
 0x34c   :  { %3356 = vperm.xlu2 %5255, %v5102_v11   ;;  %3345 = vperm.xlu1 %5254, %v5100_v12  }
 0x34d   :  { %3367 = vperm.xlu0 %5253, %v5104_v13   ;;  %v5168_v13 = vld [vmem:[%s7576_s0 + $0x7c] ss:$0 sm:$0xff] }
 0x34e   :  { %v3006_v14 = vpop.permute.xlu2 %3005  ;;  %v2897_v15 = vpop.permute.xlu1 %2896 }
 0x34f   :  { %5037 = vst [vmem:[%s7577_s1 + $0x178] sm:$0xff] %v3006_v14  ;;  %v2919_v16 = vpop.permute.xlu0 %2918  ;;  %v5166_v14 = vld [vmem:[%s7576_s0 + $0x6c] ss:$0 sm:$0xff] }
 0x350   :  { %5017 = vst [vmem:[%s7577_s1 + $0x368] sm:$0xff] %v2897_v15  ;;  %v5170_v15 = vld [vmem:[%s7576_s0 + $0x8c] ss:$0 sm:$0xff] }
 0x351   :  { %5021 = vst [vmem:[%s7577_s1 + $0x568] sm:$0xff] %v2919_v16 }
 0x354   :  { %3389 = vperm.xlu2 %5255, %v5108_v17   ;;  %3378 = vperm.xlu1 %5254, %v5106_v18  }
 0x355   :  { %3400 = vperm.xlu0 %5253, %v5110_v19   ;;  %v5174_v19 = vld [vmem:[%s7576_s0 + $0xac] ss:$0 sm:$0xff] }
 0x356   :  { %v3039_v20 = vpop.permute.xlu2 %3038  ;;  %v2930_v21 = vpop.permute.xlu1 %2929 }
 0x357   :  { %5043 = vst [vmem:[%s7577_s1 + $0x478] sm:$0xff] %v3039_v20  ;;  %v2952_v22 = vpop.permute.xlu0 %2951  ;;  %v5172_v20 = vld [vmem:[%s7576_s0 + $0x9c] ss:$0 sm:$0xff] }
 0x358   :  { %5023 = vst [vmem:[%s7577_s1 + $0x668] sm:$0xff] %v2930_v21  ;;  %v5176_v21 = vld [vmem:[%s7576_s0 + $0xbc] ss:$0 sm:$0xff] }
 0x359   :  { %5027 = vst [vmem:[%s7577_s1 + $0x868] sm:$0xff] %v2952_v22 }
 0x35c   :  { %3422 = vperm.xlu2 %5255, %v5114_v23   ;;  %3411 = vperm.xlu1 %5254, %v5112_v24  }
 0x35d   :  { %3433 = vperm.xlu0 %5253, %v5116_v25   ;;  %v5180_v25 = vld [vmem:[%s7576_s0 + $0x1d] ss:$0 sm:$0xff] }
 0x35e   :  { %v3072_v26 = vpop.permute.xlu2 %3071  ;;  %v2963_v27 = vpop.permute.xlu1 %2962 }
 0x35f   :  { %5049 = vst [vmem:[%s7577_s1 + $0x778] sm:$0xff] %v3072_v26  ;;  %v2985_v28 = vpop.permute.xlu0 %2984  ;;  %v5178_v26 = vld [vmem:[%s7576_s0 + $0xd] ss:$0 sm:$0xff] }
 0x360   :  { %5029 = vst [vmem:[%s7577_s1 + $0x968] sm:$0xff] %v2963_v27  ;;  %v5182_v27 = vld [vmem:[%s7576_s0 + $0x2d] ss:$0 sm:$0xff] }
 0x361   :  { %5033 = vst [vmem:[%s7577_s1 + $0xb68] sm:$0xff] %v2985_v28 }
 0x364   :  { %3455 = vperm.xlu2 %5255, %v5120_v29   ;;  %3444 = vperm.xlu1 %5254, %v5118_v30  }
 0x365   :  { %3466 = vperm.xlu0 %5253, %v5122_v31   ;;  %v5186_v31 = vld [vmem:[%s7576_s0 + $0x4d] ss:$0 sm:$0xff] }
 0x366   :  { %v3105_v1 = vpop.permute.xlu2 %3104  ;;  %v2995_v32 = vpop.permute.xlu1 %2994 }
 0x367   :  { %5055 = vst [vmem:[%s7577_s1 + $0xa78] sm:$0xff] %v3105_v1  ;;  %v3017_v33 = vpop.permute.xlu0 %3016  ;;  %v5184_v1 = vld [vmem:[%s7576_s0 + $0x3d] ss:$0 sm:$0xff] }
 0x368   :  { %5035 = vst [vmem:[%s7577_s1 + $0x78] sm:$0xff] %v2995_v32  ;;  %v5188_v32 = vld [vmem:[%s7576_s0 + $0x5d] ss:$0 sm:$0xff] }
 0x369   :  { %5039 = vst [vmem:[%s7577_s1 + $0x278] sm:$0xff] %v3017_v33 }
 0x36c   :  { %3488 = vperm.xlu2 %5255, %v5126_v34   ;;  %3477 = vperm.xlu1 %5254, %v5124_v35  }
 0x36d   :  { %3499 = vperm.xlu0 %5253, %v5128_v36   ;;  %v5192_v36 = vld [vmem:[%s7576_s0 + $0x7d] ss:$0 sm:$0xff] }
 0x36e   :  { %v3136_v37 = vpop.permute.xlu2 %3135  ;;  %v3028_v38 = vpop.permute.xlu1 %3027 }
 0x36f   :  { %5061 = vst [vmem:[%s7577_s1 + $0x188] sm:$0xff] %v3136_v37  ;;  %v3050_v39 = vpop.permute.xlu0 %3049  ;;  %v5190_v37 = vld [vmem:[%s7576_s0 + $0x6d] ss:$0 sm:$0xff] }
 0x370   :  { %5041 = vst [vmem:[%s7577_s1 + $0x378] sm:$0xff] %v3028_v38  ;;  %v5194_v38 = vld [vmem:[%s7576_s0 + $0x8d] ss:$0 sm:$0xff] }
 0x371   :  { %5045 = vst [vmem:[%s7577_s1 + $0x578] sm:$0xff] %v3050_v39 }
 0x374   :  { %3521 = vperm.xlu2 %5255, %v5132_v40   ;;  %3510 = vperm.xlu1 %5254, %v5130_v41  }
 0x375   :  { %3532 = vperm.xlu0 %5253, %v5134_v42   ;;  %v5198_v42 = vld [vmem:[%s7576_s0 + $0xad] ss:$0 sm:$0xff] }
 0x376   :  { %v3166_v43 = vpop.permute.xlu2 %3165  ;;  %v3061_v44 = vpop.permute.xlu1 %3060 }
 0x377   :  { %5067 = vst [vmem:[%s7577_s1 + $0x488] sm:$0xff] %v3166_v43  ;;  %v3083_v45 = vpop.permute.xlu0 %3082  ;;  %v5196_v43 = vld [vmem:[%s7576_s0 + $0x9d] ss:$0 sm:$0xff] }
 0x378   :  { %5047 = vst [vmem:[%s7577_s1 + $0x678] sm:$0xff] %v3061_v44  ;;  %v5200_v44 = vld [vmem:[%s7576_s0 + $0xbd] ss:$0 sm:$0xff] }
 0x379   :  { %5051 = vst [vmem:[%s7577_s1 + $0x878] sm:$0xff] %v3083_v45 }
 0x37c   :  { %3554 = vperm.xlu2 %5255, %v5138_v46   ;;  %3543 = vperm.xlu1 %5254, %v5136_v47  }
 0x37d   :  { %3565 = vperm.xlu0 %5253, %v5140_v48   ;;  %v5204_v48 = vld [vmem:[%s7576_s0 + $0x1e] ss:$0 sm:$0xff] }
 0x37e   :  { %v3196_v49 = vpop.permute.xlu2 %3195  ;;  %v3094_v50 = vpop.permute.xlu1 %3093 }
 0x37f   :  { %5073 = vst [vmem:[%s7577_s1 + $0x788] sm:$0xff] %v3196_v49  ;;  %v3116_v51 = vpop.permute.xlu0 %3115  ;;  %v5202_v49 = vld [vmem:[%s7576_s0 + $0xe] ss:$0 sm:$0xff] }
 0x380   :  { %5053 = vst [vmem:[%s7577_s1 + $0x978] sm:$0xff] %v3094_v50  ;;  %v5206_v50 = vld [vmem:[%s7576_s0 + $0x2e] ss:$0 sm:$0xff] }
 0x381   :  { %5057 = vst [vmem:[%s7577_s1 + $0xb78] sm:$0xff] %v3116_v51 }
 0x384   :  { %3587 = vperm.xlu2 %5255, %v5144_v52   ;;  %3576 = vperm.xlu1 %5254, %v5142_v53  }
 0x385   :  { %3598 = vperm.xlu0 %5253, %v5146_v54   ;;  %v5210_v54 = vld [vmem:[%s7576_s0 + $0x4e] ss:$0 sm:$0xff] }
 0x386   :  { %v3226_v55 = vpop.permute.xlu2 %3225  ;;  %v3126_v56 = vpop.permute.xlu1 %3125 }
 0x387   :  { %5079 = vst [vmem:[%s7577_s1 + $0xa88] sm:$0xff] %v3226_v55  ;;  %v3146_v57 = vpop.permute.xlu0 %3145  ;;  %v5208_v55 = vld [vmem:[%s7576_s0 + $0x3e] ss:$0 sm:$0xff] }
 0x388   :  { %5059 = vst [vmem:[%s7577_s1 + $0x88] sm:$0xff] %v3126_v56  ;;  %v5212_v56 = vld [vmem:[%s7576_s0 + $0x5e] ss:$0 sm:$0xff] }
 0x389   :  { %5063 = vst [vmem:[%s7577_s1 + $0x288] sm:$0xff] %v3146_v57 }
 0x38c   :  { %3620 = vperm.xlu2 %5255, %v5150_v58   ;;  %3609 = vperm.xlu1 %5254, %v5148_v59  }
 0x38d   :  { %3631 = vperm.xlu0 %5253, %v5152_v60   ;;  %v5216_v60 = vld [vmem:[%s7576_s0 + $0x7e] ss:$0 sm:$0xff] }
 0x38e   :  { %v3258_v61 = vpop.permute.xlu2 %3257  ;;  %v3156_v62 = vpop.permute.xlu1 %3155 }
 0x38f   :  { %5085 = vst [vmem:[%s7577_s1 + $0x198] sm:$0xff] %v3258_v61  ;;  %v3176_v63 = vpop.permute.xlu0 %3175  ;;  %v5214_v61 = vld [vmem:[%s7576_s0 + $0x6e] ss:$0 sm:$0xff] }
 0x390   :  { %5065 = vst [vmem:[%s7577_s1 + $0x388] sm:$0xff] %v3156_v62  ;;  %v5218_v62 = vld [vmem:[%s7576_s0 + $0x8e] ss:$0 sm:$0xff] }
 0x391   :  { %5069 = vst [vmem:[%s7577_s1 + $0x588] sm:$0xff] %v3176_v63 }
 0x394   :  { %3653 = vperm.xlu2 %5255, %v5156_v0   ;;  %3642 = vperm.xlu1 %5254, %v5154_v2  }
 0x395   :  { %3664 = vperm.xlu0 %5253, %v5158_v3   ;;  %v5222_v3 = vld [vmem:[%s7576_s0 + $0xae] ss:$0 sm:$0xff] }
 0x396   :  { %v3291_v4 = vpop.permute.xlu2 %3290  ;;  %v3186_v5 = vpop.permute.xlu1 %3185 }
 0x397   :  { %5091 = vst [vmem:[%s7577_s1 + $0x498] sm:$0xff] %v3291_v4  ;;  %v3206_v6 = vpop.permute.xlu0 %3205  ;;  %v5220_v4 = vld [vmem:[%s7576_s0 + $0x9e] ss:$0 sm:$0xff] }
 0x398   :  { %5071 = vst [vmem:[%s7577_s1 + $0x688] sm:$0xff] %v3186_v5  ;;  %v5224_v5 = vld [vmem:[%s7576_s0 + $0xbe] ss:$0 sm:$0xff] }
 0x399   :  { %5075 = vst [vmem:[%s7577_s1 + $0x888] sm:$0xff] %v3206_v6 }
 0x39c   :  { %3686 = vperm.xlu2 %5255, %v5162_v7   ;;  %3675 = vperm.xlu1 %5254, %v5160_v8  }
 0x39d   :  { %3697 = vperm.xlu0 %5253, %v5164_v9   ;;  %v5228_v9 = vld [vmem:[%s7576_s0 + $0x1f] ss:$0 sm:$0xff] }
 0x39e   :  { %v3324_v10 = vpop.permute.xlu2 %3323  ;;  %v3216_v11 = vpop.permute.xlu1 %3215 }
 0x39f   :  { %5097 = vst [vmem:[%s7577_s1 + $0x798] sm:$0xff] %v3324_v10  ;;  %v3236_v12 = vpop.permute.xlu0 %3235  ;;  %v5226_v10 = vld [vmem:[%s7576_s0 + $0xf] ss:$0 sm:$0xff] }
 0x3a0   :  { %5077 = vst [vmem:[%s7577_s1 + $0x988] sm:$0xff] %v3216_v11  ;;  %v5230_v11 = vld [vmem:[%s7576_s0 + $0x2f] ss:$0 sm:$0xff] }
 0x3a1   :  { %5081 = vst [vmem:[%s7577_s1 + $0xb88] sm:$0xff] %v3236_v12 }
 0x3a4   :  { %3719 = vperm.xlu2 %5255, %v5168_v13   ;;  %3708 = vperm.xlu1 %5254, %v5166_v14  }
 0x3a5   :  { %3730 = vperm.xlu0 %5253, %v5170_v15   ;;  %v5234_v15 = vld [vmem:[%s7576_s0 + $0x4f] ss:$0 sm:$0xff] }
 0x3a6   :  { %v3357_v16 = vpop.permute.xlu2 %3356  ;;  %v3247_v17 = vpop.permute.xlu1 %3246 }
 0x3a7   :  { %5103 = vst [vmem:[%s7577_s1 + $0xa98] sm:$0xff] %v3357_v16  ;;  %v3269_v18 = vpop.permute.xlu0 %3268  ;;  %v5232_v16 = vld [vmem:[%s7576_s0 + $0x3f] ss:$0 sm:$0xff] }
 0x3a8   :  { %5083 = vst [vmem:[%s7577_s1 + $0x98] sm:$0xff] %v3247_v17  ;;  %v5236_v17 = vld [vmem:[%s7576_s0 + $0x5f] ss:$0 sm:$0xff] }
 0x3a9   :  { %5087 = vst [vmem:[%s7577_s1 + $0x298] sm:$0xff] %v3269_v18 }
 0x3ac   :  { %3752 = vperm.xlu2 %5255, %v5174_v19   ;;  %3741 = vperm.xlu1 %5254, %v5172_v20  }
 0x3ad   :  { %3763 = vperm.xlu0 %5253, %v5176_v21   ;;  %v5240_v21 = vld [vmem:[%s7576_s0 + $0x7f] ss:$0 sm:$0xff] }
 0x3ae   :  { %v3390_v22 = vpop.permute.xlu2 %3389  ;;  %v3280_v23 = vpop.permute.xlu1 %3279 }
 0x3af   :  { %5109 = vst [vmem:[%s7577_s1 + $0x1a8] sm:$0xff] %v3390_v22  ;;  %v3302_v24 = vpop.permute.xlu0 %3301  ;;  %v5238_v22 = vld [vmem:[%s7576_s0 + $0x6f] ss:$0 sm:$0xff] }
 0x3b0   :  { %5089 = vst [vmem:[%s7577_s1 + $0x398] sm:$0xff] %v3280_v23  ;;  %v5242_v23 = vld [vmem:[%s7576_s0 + $0x8f] ss:$0 sm:$0xff] }
 0x3b1   :  { %5093 = vst [vmem:[%s7577_s1 + $0x598] sm:$0xff] %v3302_v24 }
 0x3b4   :  { %3785 = vperm.xlu2 %5255, %v5180_v25   ;;  %3774 = vperm.xlu1 %5254, %v5178_v26  }
 0x3b5   :  { %3796 = vperm.xlu0 %5253, %v5182_v27   ;;  %v5246_v27 = vld [vmem:[%s7576_s0 + $0xaf] ss:$0 sm:$0xff] }
 0x3b6   :  { %v3423_v28 = vpop.permute.xlu2 %3422  ;;  %v3313_v29 = vpop.permute.xlu1 %3312 }
 0x3b7   :  { %5115 = vst [vmem:[%s7577_s1 + $0x4a8] sm:$0xff] %v3423_v28  ;;  %v3335_v30 = vpop.permute.xlu0 %3334  ;;  %v5244_v28 = vld [vmem:[%s7576_s0 + $0x9f] ss:$0 sm:$0xff] }
 0x3b8   :  { %5095 = vst [vmem:[%s7577_s1 + $0x698] sm:$0xff] %v3313_v29  ;;  %v5248_v29 = vld [vmem:[%s7576_s0 + $0xbf] ss:$0 sm:$0xff] }
 0x3b9   :  { %5099 = vst [vmem:[%s7577_s1 + $0x898] sm:$0xff] %v3335_v30 }
 0x3bc   :  { %3818 = vperm.xlu2 %5255, %v5186_v31   ;;  %3807 = vperm.xlu1 %5254, %v5184_v1  }
 0x3bd   :  { %3829 = vperm.xlu0 %5253, %v5188_v32  }
 0x3be   :  { %v3456_v33 = vpop.permute.xlu2 %3455  ;;  %v3346_v34 = vpop.permute.xlu1 %3345 }
 0x3bf   :  { %5121 = vst [vmem:[%s7577_s1 + $0x7a8] sm:$0xff] %v3456_v33  ;;  %v3368_v35 = vpop.permute.xlu0 %3367 }
 0x3c0   :  { %5101 = vst [vmem:[%s7577_s1 + $0x998] sm:$0xff] %v3346_v34 }
 0x3c1   :  { %5105 = vst [vmem:[%s7577_s1 + $0xb98] sm:$0xff] %v3368_v35 }
 0x3c4   :  { %3851 = vperm.xlu2 %5255, %v5192_v36   ;;  %3840 = vperm.xlu1 %5254, %v5190_v37  }
 0x3c5   :  { %3862 = vperm.xlu0 %5253, %v5194_v38  }
 0x3c6   :  { %v3489_v39 = vpop.permute.xlu2 %3488  ;;  %v3379_v40 = vpop.permute.xlu1 %3378 }
 0x3c7   :  { %5127 = vst [vmem:[%s7577_s1 + $0xaa8] sm:$0xff] %v3489_v39  ;;  %v3401_v41 = vpop.permute.xlu0 %3400 }
 0x3c8   :  { %5107 = vst [vmem:[%s7577_s1 + $0xa8] sm:$0xff] %v3379_v40 }
 0x3c9   :  { %5111 = vst [vmem:[%s7577_s1 + $0x2a8] sm:$0xff] %v3401_v41 }
 0x3cc   :  { %3884 = vperm.xlu2 %5255, %v5198_v42   ;;  %3873 = vperm.xlu1 %5254, %v5196_v43  }
 0x3cd   :  { %3895 = vperm.xlu0 %5253, %v5200_v44  }
 0x3ce   :  { %v3522_v45 = vpop.permute.xlu2 %3521  ;;  %v3412_v46 = vpop.permute.xlu1 %3411 }
 0x3cf   :  { %5133 = vst [vmem:[%s7577_s1 + $0x1b8] sm:$0xff] %v3522_v45  ;;  %v3434_v47 = vpop.permute.xlu0 %3433 }
 0x3d0   :  { %5113 = vst [vmem:[%s7577_s1 + $0x3a8] sm:$0xff] %v3412_v46 }
 0x3d1   :  { %5117 = vst [vmem:[%s7577_s1 + $0x5a8] sm:$0xff] %v3434_v47 }
 0x3d4   :  { %3917 = vperm.xlu2 %5255, %v5204_v48   ;;  %3906 = vperm.xlu1 %5254, %v5202_v49  }
 0x3d5   :  { %3928 = vperm.xlu0 %5253, %v5206_v50  }
 0x3d6   :  { %v3555_v51 = vpop.permute.xlu2 %3554  ;;  %v3445_v52 = vpop.permute.xlu1 %3444 }
 0x3d7   :  { %5139 = vst [vmem:[%s7577_s1 + $0x4b8] sm:$0xff] %v3555_v51  ;;  %v3467_v53 = vpop.permute.xlu0 %3466 }
 0x3d8   :  { %5119 = vst [vmem:[%s7577_s1 + $0x6a8] sm:$0xff] %v3445_v52 }
 0x3d9   :  { %5123 = vst [vmem:[%s7577_s1 + $0x8a8] sm:$0xff] %v3467_v53 }
 0x3dc   :  { %3950 = vperm.xlu2 %5255, %v5210_v54   ;;  %3939 = vperm.xlu1 %5254, %v5208_v55  }
 0x3dd   :  { %3961 = vperm.xlu0 %5253, %v5212_v56  }
 0x3de   :  { %v3588_v57 = vpop.permute.xlu2 %3587  ;;  %v3478_v58 = vpop.permute.xlu1 %3477 }
 0x3df   :  { %5145 = vst [vmem:[%s7577_s1 + $0x7b8] sm:$0xff] %v3588_v57  ;;  %v3500_v59 = vpop.permute.xlu0 %3499 }
 0x3e0   :  { %5125 = vst [vmem:[%s7577_s1 + $0x9a8] sm:$0xff] %v3478_v58 }
 0x3e1   :  { %5129 = vst [vmem:[%s7577_s1 + $0xba8] sm:$0xff] %v3500_v59 }
 0x3e4   :  { %3983 = vperm.xlu2 %5255, %v5216_v60   ;;  %3972 = vperm.xlu1 %5254, %v5214_v61  }
 0x3e5   :  { %3994 = vperm.xlu0 %5253, %v5218_v62  }
 0x3e6   :  { %v3621_v63 = vpop.permute.xlu2 %3620  ;;  %v3511_v0 = vpop.permute.xlu1 %3510 }
 0x3e7   :  { %5151 = vst [vmem:[%s7577_s1 + $0xab8] sm:$0xff] %v3621_v63  ;;  %v3533_v2 = vpop.permute.xlu0 %3532 }
 0x3e8   :  { %5131 = vst [vmem:[%s7577_s1 + $0xb8] sm:$0xff] %v3511_v0 }
 0x3e9   :  { %5135 = vst [vmem:[%s7577_s1 + $0x2b8] sm:$0xff] %v3533_v2 }
 0x3ec   :  { %4016 = vperm.xlu2 %5255, %v5222_v3   ;;  %4005 = vperm.xlu1 %5254, %v5220_v4  }
 0x3ed   :  { %4027 = vperm.xlu0 %5253, %v5224_v5  }
 0x3ee   :  { %v3654_v6 = vpop.permute.xlu2 %3653  ;;  %v3544_v7 = vpop.permute.xlu1 %3543 }
 0x3ef   :  { %5157 = vst [vmem:[%s7577_s1 + $0x1c8] sm:$0xff] %v3654_v6  ;;  %v3566_v8 = vpop.permute.xlu0 %3565 }
 0x3f0   :  { %5137 = vst [vmem:[%s7577_s1 + $0x3b8] sm:$0xff] %v3544_v7 }
 0x3f1   :  { %5141 = vst [vmem:[%s7577_s1 + $0x5b8] sm:$0xff] %v3566_v8 }
 0x3f4   :  { %4049 = vperm.xlu2 %5255, %v5228_v9   ;;  %4038 = vperm.xlu1 %5254, %v5226_v10  }
 0x3f5   :  { %4060 = vperm.xlu0 %5253, %v5230_v11  }
 0x3f6   :  { %v3687_v12 = vpop.permute.xlu2 %3686  ;;  %v3577_v13 = vpop.permute.xlu1 %3576 }
 0x3f7   :  { %5163 = vst [vmem:[%s7577_s1 + $0x4c8] sm:$0xff] %v3687_v12  ;;  %v3599_v14 = vpop.permute.xlu0 %3598 }
 0x3f8   :  { %5143 = vst [vmem:[%s7577_s1 + $0x6b8] sm:$0xff] %v3577_v13 }
 0x3f9   :  { %5147 = vst [vmem:[%s7577_s1 + $0x8b8] sm:$0xff] %v3599_v14 }
 0x3fc   :  { %4082 = vperm.xlu2 %5255, %v5234_v15   ;;  %4071 = vperm.xlu1 %5254, %v5232_v16  }
 0x3fd   :  { %4093 = vperm.xlu0 %5253, %v5236_v17  }
 0x3fe   :  { %v3720_v18 = vpop.permute.xlu2 %3719  ;;  %v3610_v19 = vpop.permute.xlu1 %3609 }
 0x3ff   :  { %5169 = vst [vmem:[%s7577_s1 + $0x7c8] sm:$0xff] %v3720_v18  ;;  %v3632_v20 = vpop.permute.xlu0 %3631 }
 0x400   :  { %5149 = vst [vmem:[%s7577_s1 + $0x9b8] sm:$0xff] %v3610_v19 }
 0x401   :  { %5153 = vst [vmem:[%s7577_s1 + $0xbb8] sm:$0xff] %v3632_v20 }
 0x404   :  { %4115 = vperm.xlu2 %5255, %v5240_v21   ;;  %4104 = vperm.xlu1 %5254, %v5238_v22  }
 0x405   :  { %4126 = vperm.xlu0 %5253, %v5242_v23  }
 0x406   :  { %v3753_v24 = vpop.permute.xlu2 %3752  ;;  %v3643_v25 = vpop.permute.xlu1 %3642 }
 0x407   :  { %5175 = vst [vmem:[%s7577_s1 + $0xac8] sm:$0xff] %v3753_v24  ;;  %v3665_v26 = vpop.permute.xlu0 %3664 }
 0x408   :  { %5155 = vst [vmem:[%s7577_s1 + $0xc8] sm:$0xff] %v3643_v25 }
 0x409   :  { %5159 = vst [vmem:[%s7577_s1 + $0x2c8] sm:$0xff] %v3665_v26 }
 0x40c   :  { %4148 = vperm.xlu2 %5255, %v5246_v27   ;;  %4137 = vperm.xlu1 %5254, %v5244_v28  }
 0x40d   :  { %4159 = vperm.xlu0 %5253, %v5248_v29  }
 0x40e   :  { %v3786_v30 = vpop.permute.xlu2 %3785  ;;  %v3676_v31 = vpop.permute.xlu1 %3675 }
 0x40f   :  { %5181 = vst [vmem:[%s7577_s1 + $0x1d8] sm:$0xff] %v3786_v30  ;;  %v3698_v1 = vpop.permute.xlu0 %3697 }
 0x410   :  { %5161 = vst [vmem:[%s7577_s1 + $0x3c8] sm:$0xff] %v3676_v31 }
 0x411   :  { %5165 = vst [vmem:[%s7577_s1 + $0x5c8] sm:$0xff] %v3698_v1 }
 0x416   :  { %v3819_v32 = vpop.permute.xlu2 %3818  ;;  %v3709_v33 = vpop.permute.xlu1 %3708 }
 0x417   :  { %5187 = vst [vmem:[%s7577_s1 + $0x4d8] sm:$0xff] %v3819_v32  ;;  %v3731_v34 = vpop.permute.xlu0 %3730 }
 0x418   :  { %5167 = vst [vmem:[%s7577_s1 + $0x6c8] sm:$0xff] %v3709_v33 }
 0x419   :  { %5171 = vst [vmem:[%s7577_s1 + $0x8c8] sm:$0xff] %v3731_v34 }
 0x41e   :  { %v3852_v35 = vpop.permute.xlu2 %3851  ;;  %v3742_v36 = vpop.permute.xlu1 %3741 }
 0x41f   :  { %5193 = vst [vmem:[%s7577_s1 + $0x7d8] sm:$0xff] %v3852_v35  ;;  %v3764_v37 = vpop.permute.xlu0 %3763 }
 0x420   :  { %5173 = vst [vmem:[%s7577_s1 + $0x9c8] sm:$0xff] %v3742_v36 }
 0x421   :  { %5177 = vst [vmem:[%s7577_s1 + $0xbc8] sm:$0xff] %v3764_v37 }
 0x426   :  { %v3885_v38 = vpop.permute.xlu2 %3884  ;;  %v3775_v39 = vpop.permute.xlu1 %3774 }
 0x427   :  { %5199 = vst [vmem:[%s7577_s1 + $0xad8] sm:$0xff] %v3885_v38  ;;  %v3797_v40 = vpop.permute.xlu0 %3796 }
 0x428   :  { %5179 = vst [vmem:[%s7577_s1 + $0xd8] sm:$0xff] %v3775_v39 }
 0x429   :  { %5183 = vst [vmem:[%s7577_s1 + $0x2d8] sm:$0xff] %v3797_v40 }
 0x42e   :  { %v3918_v41 = vpop.permute.xlu2 %3917  ;;  %v3808_v42 = vpop.permute.xlu1 %3807 }
 0x42f   :  { %5205 = vst [vmem:[%s7577_s1 + $0x1e8] sm:$0xff] %v3918_v41  ;;  %v3830_v43 = vpop.permute.xlu0 %3829 }
 0x430   :  { %5185 = vst [vmem:[%s7577_s1 + $0x3d8] sm:$0xff] %v3808_v42 }
 0x431   :  { %5189 = vst [vmem:[%s7577_s1 + $0x5d8] sm:$0xff] %v3830_v43 }
 0x436   :  { %v3951_v44 = vpop.permute.xlu2 %3950  ;;  %v3841_v45 = vpop.permute.xlu1 %3840 }
 0x437   :  { %5211 = vst [vmem:[%s7577_s1 + $0x4e8] sm:$0xff] %v3951_v44  ;;  %v3863_v46 = vpop.permute.xlu0 %3862 }
 0x438   :  { %5191 = vst [vmem:[%s7577_s1 + $0x6d8] sm:$0xff] %v3841_v45 }
 0x439   :  { %5195 = vst [vmem:[%s7577_s1 + $0x8d8] sm:$0xff] %v3863_v46 }
 0x43e   :  { %v3984_v47 = vpop.permute.xlu2 %3983  ;;  %v3874_v48 = vpop.permute.xlu1 %3873 }
 0x43f   :  { %5217 = vst [vmem:[%s7577_s1 + $0x7e8] sm:$0xff] %v3984_v47  ;;  %v3896_v49 = vpop.permute.xlu0 %3895 }
 0x440   :  { %5197 = vst [vmem:[%s7577_s1 + $0x9d8] sm:$0xff] %v3874_v48 }
 0x441   :  { %5201 = vst [vmem:[%s7577_s1 + $0xbd8] sm:$0xff] %v3896_v49 }
 0x446   :  { %v4017_v50 = vpop.permute.xlu2 %4016  ;;  %v3907_v51 = vpop.permute.xlu1 %3906 }
 0x447   :  { %5223 = vst [vmem:[%s7577_s1 + $0xae8] sm:$0xff] %v4017_v50  ;;  %v3929_v52 = vpop.permute.xlu0 %3928 }
 0x448   :  { %5203 = vst [vmem:[%s7577_s1 + $0xe8] sm:$0xff] %v3907_v51 }
 0x449   :  { %5207 = vst [vmem:[%s7577_s1 + $0x2e8] sm:$0xff] %v3929_v52 }
 0x44e   :  { %v4050_v53 = vpop.permute.xlu2 %4049  ;;  %v3940_v54 = vpop.permute.xlu1 %3939 }
 0x44f   :  { %5229 = vst [vmem:[%s7577_s1 + $0x1f8] sm:$0xff] %v4050_v53  ;;  %v3962_v55 = vpop.permute.xlu0 %3961 }
 0x450   :  { %5209 = vst [vmem:[%s7577_s1 + $0x3e8] sm:$0xff] %v3940_v54 }
 0x451   :  { %5213 = vst [vmem:[%s7577_s1 + $0x5e8] sm:$0xff] %v3962_v55 }
 0x456   :  { %v4083_v56 = vpop.permute.xlu2 %4082  ;;  %v3973_v57 = vpop.permute.xlu1 %3972 }
 0x457   :  { %5235 = vst [vmem:[%s7577_s1 + $0x4f8] sm:$0xff] %v4083_v56  ;;  %v3995_v58 = vpop.permute.xlu0 %3994 }
 0x458   :  { %5215 = vst [vmem:[%s7577_s1 + $0x6e8] sm:$0xff] %v3973_v57 }
 0x459   :  { %5219 = vst [vmem:[%s7577_s1 + $0x8e8] sm:$0xff] %v3995_v58 }
 0x45e   :  { %v4116_v59 = vpop.permute.xlu2 %4115  ;;  %v4006_v60 = vpop.permute.xlu1 %4005 }
 0x45f   :  { %5241 = vst [vmem:[%s7577_s1 + $0x7f8] sm:$0xff] %v4116_v59  ;;  %v4028_v61 = vpop.permute.xlu0 %4027 }
 0x460   :  { %5221 = vst [vmem:[%s7577_s1 + $0x9e8] sm:$0xff] %v4006_v60 }
 0x461   :  { %5225 = vst [vmem:[%s7577_s1 + $0xbe8] sm:$0xff] %v4028_v61 }
 0x466   :  { %v4149_v62 = vpop.permute.xlu2 %4148  ;;  %v4039_v63 = vpop.permute.xlu1 %4038 }
 0x467   :  { %5247 = vst [vmem:[%s7577_s1 + $0xaf8] sm:$0xff] %v4149_v62  ;;  %v4061_v0 = vpop.permute.xlu0 %4060 }
 0x468   :  { %5227 = vst [vmem:[%s7577_s1 + $0xf8] sm:$0xff] %v4039_v63 }
 0x469   :  { %5231 = vst [vmem:[%s7577_s1 + $0x2f8] sm:$0xff] %v4061_v0 }
 0x46e   :  { %v4072_v2 = vpop.permute.xlu1 %4071 }
 0x46f   :  { %5233 = vst [vmem:[%s7577_s1 + $0x3f8] sm:$0xff] %v4072_v2  ;;  %v4094_v3 = vpop.permute.xlu0 %4093 }
 0x470   :  { %5237 = vst [vmem:[%s7577_s1 + $0x5f8] sm:$0xff] %v4094_v3 }
 0x476   :  { %v4105_v4 = vpop.permute.xlu1 %4104 }
 0x477   :  { %5239 = vst [vmem:[%s7577_s1 + $0x6f8] sm:$0xff] %v4105_v4  ;;  %v4127_v5 = vpop.permute.xlu0 %4126 }
 0x478   :  { %5243 = vst [vmem:[%s7577_s1 + $0x8f8] sm:$0xff] %v4127_v5 }
 0x47e   :  { %v4138_v6 = vpop.permute.xlu1 %4137 }
 0x47f   :  { %5245 = vst [vmem:[%s7577_s1 + $0x9f8] sm:$0xff] %v4138_v6  ;;  %v4160_v7 = vpop.permute.xlu0 %4159 }
 0x480   :  { %5249 = vst [vmem:[%s7577_s1 + $0xbf8] sm:$0xff] %v4160_v7 }

// kernel: tile.14
= control target key start
LH: loop header
LB: loop body
LE: loop exit
PB: predicated region body
PF: predicated region fallthrough
CT: control target
= control target key end

     0   :  { %vm65_vm0 = vcmask 1043458   ;;  %vm70_vm1 = vcmask 1045508   ;;  %vm75_vm2 = vcmask 1047558   ;;  %s105_s6 = smov 3  ;;  %s108_s7 = smov 12  ;;  %vm4_vm3 = vcmask 1047556   ;;  %s1120_s0 = inlined_call_operand.vmem [shape: f32[16,12,16], index: 0, kind: input, shape index: {}]   ;;  %s1121_s1 = inlined_call_operand.vmem [shape: f32[16,192], index: 1, kind: output, shape index: {}]  }
   0x1   :  { %v542_v0 = vld [vmem:[%s1120_s0 + $0x6] ss:$16 sm:%s105_s6]   ;;  %s113_s12 = smov 48  ;;  %s118_s13 = smov 192  ;;  %vm6_vm4 = vcmask 130048   ;;  %vm79_vm5 = vcmask 1048448  }
   0x2   :  { %v543_v1 = vld [vmem:[%s1120_s0 + $0x6] ss:$16 sm:%s108_s7]   ;;  %s60_s18 = smov 3  ;;  %s63_s21 = smov 12  ;;  %vm124_vm6 = vcmask 917248   ;;  %vm169_vm7 = vcmask 786048  }
   0x3   :  { %v111_v2 = vsel %vm65_vm0, %v543_v1, %v542_v0  ;;  %v544_v3 = vld [vmem:[%s1120_s0 + $0x6] ss:$16 sm:%s113_s12]   ;;  %v533_v6 = vld [vmem:[%s1120_s0 + $0x7] ss:$16 sm:%s60_s18]   ;;  %s68_s22 = smov 48  ;;  %s73_s27 = smov 192 }
   0x4   :  { %v545_v4 = vld [vmem:[%s1120_s0 + $0x6] ss:$16 sm:%s118_s13]   ;;  %v116_v5 = vsel %vm70_vm1, %v544_v3, %v111_v2  ;;  %v534_v8 = vld [vmem:[%s1120_s0 + $0x7] ss:$16 sm:%s63_s21]   ;;  %s633_s28 = smov 96   ;;  %s127_s2 = smov 3 }
   0x5   :  { %v121_v7 = vsel %vm75_vm2, %v545_v4, %v116_v5  ;;  %v535_v9 = vld [vmem:[%s1120_s0 + $0x7] ss:$16 sm:%s68_s22]   ;;  %v66_v10 = vsel %vm65_vm0, %v534_v8, %v533_v6  ;;  %s130_s3 = smov 12  ;;  %v546_v13 = vld [vmem:[%s1120_s0 + $0x86] ss:$16 sm:%s127_s2]   ;;  %s135_s8 = smov 48 }
   0x6   :  { %122 = vrot.lane.b32.xlu1 %v121_v7, %s633_s28  ;;  %v536_v11 = vld [vmem:[%s1120_s0 + $0x7] ss:$16 sm:%s73_s27]   ;;  %v71_v12 = vsel %vm70_vm1, %v535_v9, %v66_v10  ;;  %s140_s9 = smov 192  ;;  %s82_s14 = smov 3  ;;  %vm214_vm8 = vcmask 654848   ;;  %vm259_vm9 = vcmask 523648  }
   0x7   :  { %v547_v14 = vld [vmem:[%s1120_s0 + $0x86] ss:$16 sm:%s130_s3]   ;;  %v76_v15 = vsel %vm75_vm2, %v536_v11, %v71_v12  ;;  %s85_s15 = smov 12  ;;  %s634_s16 = smov 112   ;;  %v537_v20 = vld [vmem:[%s1120_s0 + $0x87] ss:$16 sm:%s82_s14]  }
   0x8   :  { %v133_v16 = vsel %vm65_vm0, %v547_v14, %v546_v13  ;;  %v548_v17 = vld [vmem:[%s1120_s0 + $0x86] ss:$16 sm:%s135_s8]   ;;  %77 = vrot.lane.b32.xlu0 %v76_v15, %s634_s16  ;;  %s90_s19 = smov 48  ;;  %s95_s20 = smov 192  ;;  %vm350_vm10 = vcmask 392448   ;;  %vm441_vm11 = vcmask 261248  }
   0x9   :  { %v549_v18 = vld [vmem:[%s1120_s0 + $0x86] ss:$16 sm:%s140_s9]   ;;  %v138_v19 = vsel %vm70_vm1, %v548_v17, %v133_v16  ;;  %v538_v21 = vld [vmem:[%s1120_s0 + $0x87] ss:$16 sm:%s85_s15]   ;;  %s217_s25 = smov 3  ;;  %s220_s2 = smov 12 }
   0xa   :  { %v539_v22 = vld [vmem:[%s1120_s0 + $0x87] ss:$16 sm:%s90_s19]   ;;  %v143_v23 = vsel %vm75_vm2, %v549_v18, %v138_v19  ;;  %v88_v24 = vsel %vm65_vm0, %v538_v21, %v537_v20  ;;  %v564_v26 = vld [vmem:[%s1120_s0 + $0x84] ss:$16 sm:%s217_s25]   ;;  %s225_s3 = smov 48  ;;  %s230_s6 = smov 192 }
   0xb   :  { %v540_v25 = vld [vmem:[%s1120_s0 + $0x87] ss:$16 sm:%s95_s20]   ;;  %v93_v27 = vsel %vm70_vm1, %v539_v22, %v88_v24  ;;  %v565_v28 = vld [vmem:[%s1120_s0 + $0x84] ss:$16 sm:%s220_s2]   ;;  %s195_s7 = smov 3  ;;  %s198_s12 = smov 12 }
   0xc   :  { %v223_v29 = vsel %vm65_vm0, %v565_v28, %v564_v26  ;;  %v566_v30 = vld [vmem:[%s1120_s0 + $0x84] ss:$16 sm:%s225_s3]   ;;  %s203_s13 = smov 48  ;;  %v98_v32 = vsel %vm75_vm2, %v540_v25, %v93_v27  ;;  %s208_s15 = smov 192 }
   0xd   :  { %v560_v31 = vld [vmem:[%s1120_s0 + $0x4] ss:$16 sm:%s195_s7]   ;;  %s285_s17 = smov 3  ;;  %s288_s18 = smov 12  ;;  %v228_v34 = vsel %vm70_vm1, %v566_v30, %v223_v29 }
   0xe   :  { %144 = vrot.lane.b32.xlu1 %v143_v23, %s633_s28  ;;  %v561_v33 = vld [vmem:[%s1120_s0 + $0x4] ss:$16 sm:%s198_s12]   ;;  %s293_s23 = smov 48  ;;  %s262_s25 = smov 3 }
   0xf   :  { %v567_v35 = vld [vmem:[%s1120_s0 + $0x84] ss:$16 sm:%s230_s6]   ;;  %v201_v36 = vsel %vm65_vm0, %v561_v33, %v560_v31  ;;  %s265_s26 = smov 12  ;;  %v578_v39 = vld [vmem:[%s1120_s0 + $0x83] ss:$16 sm:%s285_s17]   ;;  %s150_s7 = smov 3 }
  0x10   :  { %v562_v37 = vld [vmem:[%s1120_s0 + $0x4] ss:$16 sm:%s203_s13]   ;;  %99 = vrot.lane.b32.xlu0 %v98_v32, %s634_s16  ;;  %v233_v41 = vsel %vm75_vm2, %v567_v35, %v228_v34  ;;  %s153_s8 = smov 12  ;;  %s158_s13 = smov 48 }
  0x11   :  { %v563_v38 = vld [vmem:[%s1120_s0 + $0x4] ss:$16 sm:%s208_s15]   ;;  %v579_v40 = vld [vmem:[%s1120_s0 + $0x83] ss:$16 sm:%s288_s18]   ;;  %v206_v42 = vsel %vm70_vm1, %v562_v37, %v201_v36  ;;  %s163_s28 = smov 192  ;;  %s298_s14 = smov 192 }
  0x12   :  { %v580_v43 = vld [vmem:[%s1120_s0 + $0x83] ss:$16 sm:%s293_s23]   ;;  %v573_v44 = vld [vmem:[%s1120_s0 + $0xb] ss:$16 sm:%s262_s25]   ;;  %v291_v47 = vsel %vm65_vm0, %v579_v40, %v578_v39  ;;  %s270_s15 = smov 48  ;;  %s635_s21 = smov 64   ;;  %v211_v50 = vsel %vm75_vm2, %v563_v38, %v206_v42 }
  0x13   :  { %v574_v45 = vld [vmem:[%s1120_s0 + $0xb] ss:$16 sm:%s265_s26]   ;;  %v551_v46 = vld [vmem:[%s1120_s0 + $0x5] ss:$16 sm:%s150_s7]   ;;  %s275_s22 = smov 192  ;;  %s353_s24 = smov 3  ;;  %v296_v54 = vsel %vm70_vm1, %v580_v43, %v291_v47 }
  0x14   :  { %v552_v48 = vld [vmem:[%s1120_s0 + $0x5] ss:$16 sm:%s153_s8]   ;;  %s356_s25 = smov 12  ;;  %v581_v55 = vld [vmem:[%s1120_s0 + $0x83] ss:$16 sm:%s298_s14]   ;;  %v268_v56 = vsel %vm65_vm0, %v574_v45, %v573_v44  ;;  %s361_s2 = smov 48 }
  0x15   :  { %v553_v49 = vld [vmem:[%s1120_s0 + $0x5] ss:$16 sm:%s158_s13]   ;;  %v156_v51 = vsel %vm65_vm0, %v552_v48, %v551_v46  ;;  %v575_v57 = vld [vmem:[%s1120_s0 + $0xb] ss:$16 sm:%s270_s15]   ;;  %s331_s3 = smov 3  ;;  %s636_s6 = smov 80   ;;  %v301_v62 = vsel %vm75_vm2, %v581_v55, %v296_v54 }
  0x16   :  { %234 = vrot.lane.b32.xlu1 %v233_v41, %s635_s21  ;;  %v554_v52 = vld [vmem:[%s1120_s0 + $0x5] ss:$16 sm:%s163_s28]   ;;  %v161_v53 = vsel %vm70_vm1, %v553_v49, %v156_v51  ;;  %s334_s7 = smov 12  ;;  %s172_s12 = smov 3  ;;  %v273_v63 = vsel %vm70_vm1, %v575_v57, %v268_v56 }
  0x17   :  { %v166_v58 = vsel %vm75_vm2, %v554_v52, %v161_v53  ;;  %v576_v59 = vld [vmem:[%s1120_s0 + $0xb] ss:$16 sm:%s275_s22]   ;;  %v592_v60 = vld [vmem:[%s1120_s0 + $0xa] ss:$16 sm:%s353_s24]   ;;  %s175_s13 = smov 12  ;;  %s180_s20 = smov 48 }
  0x18   :  { %212 = vrot.lane.b32.xlu0 %v211_v50, %s635_s21  ;;  %167 = vrot.lane.b32.xlu2 %v166_v58, %s636_s6  ;;  %v593_v61 = vld [vmem:[%s1120_s0 + $0xa] ss:$16 sm:%s356_s25]   ;;  %s185_s21 = smov 192  ;;  %s366_s25 = smov 192  ;;  %v278_v9 = vsel %vm75_vm2, %v576_v59, %v273_v63 }
  0x19   :  { %v594_v0 = vld [vmem:[%s1120_s0 + $0xa] ss:$16 sm:%s361_s2]   ;;  %v588_v1 = vld [vmem:[%s1120_s0 + $0x2] ss:$16 sm:%s331_s3]   ;;  %v359_v5 = vsel %vm65_vm0, %v593_v61, %v592_v60  ;;  %s339_s29 = smov 48  ;;  %s637_s3 = smov 48  }
  0x1a   :  { %v555_v2 = vld [vmem:[%s1120_s0 + $0x85] ss:$16 sm:%s172_s12]   ;;  %v589_v6 = vld [vmem:[%s1120_s0 + $0x2] ss:$16 sm:%s334_s7]   ;;  %s344_s4 = smov 192  ;;  %s422_s5 = smov 3  ;;  %v364_v12 = vsel %vm70_vm1, %v594_v0, %v359_v5 }
  0x1b   :  { %v556_v3 = vld [vmem:[%s1120_s0 + $0x85] ss:$16 sm:%s175_s13]   ;;  %s425_s7 = smov 12  ;;  %s430_s8 = smov 48  ;;  %v595_v13 = vld [vmem:[%s1120_s0 + $0xa] ss:$16 sm:%s366_s25]   ;;  %v337_v14 = vsel %vm65_vm0, %v589_v6, %v588_v1 }
  0x1c   :  { %v557_v4 = vld [vmem:[%s1120_s0 + $0x85] ss:$16 sm:%s180_s20]   ;;  %v178_v7 = vsel %vm65_vm0, %v556_v3, %v555_v2  ;;  %v590_v15 = vld [vmem:[%s1120_s0 + $0x2] ss:$16 sm:%s339_s29]   ;;  %s399_s13 = smov 3  ;;  %s240_s28 = smov 3  ;;  %v369_v20 = vsel %vm75_vm2, %v595_v13, %v364_v12 }
  0x1d   :  { %v558_v8 = vld [vmem:[%s1120_s0 + $0x85] ss:$16 sm:%s185_s21]   ;;  %v183_v10 = vsel %vm70_vm1, %v557_v4, %v178_v7  ;;  %v591_v16 = vld [vmem:[%s1120_s0 + $0x2] ss:$16 sm:%s344_s4]   ;;  %s243_s18 = smov 12  ;;  %s248_s19 = smov 48  ;;  %v342_v21 = vsel %vm70_vm1, %v590_v15, %v337_v14 }
  0x1e   :  { %302 = vrot.lane.b32.xlu1 %v301_v62, %s637_s3  ;;  %v188_v11 = vsel %vm75_vm2, %v558_v8, %v183_v10  ;;  %v607_v17 = vld [vmem:[%s1120_s0 + $0x1] ss:$16 sm:%s422_s5]   ;;  %s402_s22 = smov 12  ;;  %s253_s24 = smov 192  ;;  %v347_v31 = vsel %vm75_vm2, %v591_v16, %v342_v21 }
  0x1f   :  { %v608_v18 = vld [vmem:[%s1120_s0 + $0x1] ss:$16 sm:%s425_s7]   ;;  %v569_v19 = vld [vmem:[%s1120_s0 + $0x3] ss:$16 sm:%s240_s28]   ;;  %s435_s4 = smov 192  ;;  %s407_s5 = smov 48 }
  0x20   :  { %279 = vrot.lane.b32.xlu0 %v278_v9, %s637_s3  ;;  %189 = vrot.lane.b32.xlu2 %v188_v11, %s636_s6  ;;  %v570_v22 = vld [vmem:[%s1120_s0 + $0x3] ss:$16 sm:%s243_s18]   ;;  %v428_v27 = vsel %vm65_vm0, %v608_v18, %v607_v17  ;;  %s493_s28 = smov 12  ;;  %s638_s14 = smov 32  }
  0x21   :  { %v571_v23 = vld [vmem:[%s1120_s0 + $0x3] ss:$16 sm:%s248_s19]   ;;  %v609_v24 = vld [vmem:[%s1120_s0 + $0x1] ss:$16 sm:%s430_s8]   ;;  %v246_v25 = vsel %vm65_vm0, %v570_v22, %v569_v19  ;;  %s412_s15 = smov 192  ;;  %s308_s6 = smov 3 }
  0x22   :  { %v572_v26 = vld [vmem:[%s1120_s0 + $0x3] ss:$16 sm:%s253_s24]   ;;  %v602_v28 = vld [vmem:[%s1120_s0 + $0x8a] ss:$16 sm:%s399_s13]   ;;  %v251_v30 = vsel %vm70_vm1, %v571_v23, %v246_v25  ;;  %s490_s13 = smov 3  ;;  %s311_s21 = smov 12  ;;  %v433_v35 = vsel %vm70_vm1, %v609_v24, %v428_v27 }
  0x23   :  { %v603_v29 = vld [vmem:[%s1120_s0 + $0x8a] ss:$16 sm:%s402_s22]   ;;  %v256_v32 = vsel %vm75_vm2, %v572_v26, %v251_v30  ;;  %v610_v33 = vld [vmem:[%s1120_s0 + $0x1] ss:$16 sm:%s435_s4]   ;;  %s316_s22 = smov 48  ;;  %s498_s26 = smov 48 }
  0x24   :  { %v604_v34 = vld [vmem:[%s1120_s0 + $0x8a] ss:$16 sm:%s407_s5]   ;;  %v405_v36 = vsel %vm65_vm0, %v603_v29, %v602_v28  ;;  %v621_v37 = vld [vmem:[%s1120_s0 + $0x89] ss:$16 sm:%s490_s13]   ;;  %s321_s27 = smov 192  ;;  %s467_s2 = smov 3  ;;  %v438_v43 = vsel %vm75_vm2, %v610_v33, %v433_v35 }
  0x25   :  { %v622_v38 = vld [vmem:[%s1120_s0 + $0x89] ss:$16 sm:%s493_s28]   ;;  %v605_v39 = vld [vmem:[%s1120_s0 + $0x8a] ss:$16 sm:%s412_s15]   ;;  %s470_s4 = smov 12  ;;  %s376_s12 = smov 3  ;;  %v410_v44 = vsel %vm70_vm1, %v604_v34, %v405_v36 }
  0x26   :  { %370 = vrot.lane.b32.xlu1 %v369_v20, %s638_s14  ;;  %v583_v40 = vld [vmem:[%s1120_s0 + $0x8b] ss:$16 sm:%s308_s6]   ;;  %s379_s13 = smov 12  ;;  %s503_s18 = smov 192  ;;  %v496_v51 = vsel %vm65_vm0, %v622_v38, %v621_v37  ;;  %v415_v54 = vsel %vm75_vm2, %v605_v39, %v410_v44 }
  0x27   :  { %v584_v41 = vld [vmem:[%s1120_s0 + $0x8b] ss:$16 sm:%s311_s21]   ;;  %v623_v45 = vld [vmem:[%s1120_s0 + $0x89] ss:$16 sm:%s498_s26]   ;;  %s475_s23 = smov 48  ;;  %s639_s29 = smov 16  }
  0x28   :  { %348 = vrot.lane.b32.xlu0 %v347_v31, %s638_s14  ;;  %257 = vrot.lane.b32.xlu2 %v256_v32, %s637_s3  ;;  %v585_v42 = vld [vmem:[%s1120_s0 + $0x8b] ss:$16 sm:%s316_s22]   ;;  %v314_v46 = vsel %vm65_vm0, %v584_v41, %v583_v40  ;;  %v501_v57 = vsel %vm70_vm1, %v623_v45, %v496_v51  ;;  %s480_s7 = smov 192  ;;  %s389_s10 = smov 192 }
  0x29   :  { %v586_v47 = vld [vmem:[%s1120_s0 + $0x8b] ss:$16 sm:%s321_s27]   ;;  %v616_v48 = vld [vmem:[%s1120_s0 + $0x81] ss:$16 sm:%s467_s2]   ;;  %v319_v50 = vsel %vm70_vm1, %v585_v42, %v314_v46  ;;  %s384_s27 = smov 48  ;;  %s447_s11 = smov 12 }
  0x2a   :  { %v617_v49 = vld [vmem:[%s1120_s0 + $0x81] ss:$16 sm:%s470_s4]   ;;  %v597_v52 = vld [vmem:[%s1120_s0 + $0x82] ss:$16 sm:%s376_s12]   ;;  %v324_v55 = vsel %vm75_vm2, %v586_v47, %v319_v50  ;;  %s452_s20 = smov 48 }
  0x2b   :  { %v598_v53 = vld [vmem:[%s1120_s0 + $0x82] ss:$16 sm:%s379_s13]   ;;  %v624_v56 = vld [vmem:[%s1120_s0 + $0x89] ss:$16 sm:%s503_s18]   ;;  %v473_v58 = vsel %vm65_vm0, %v617_v49, %v616_v48 }
  0x2c   :  { %v618_v59 = vld [vmem:[%s1120_s0 + $0x81] ss:$16 sm:%s475_s23]   ;;  %v382_v60 = vsel %vm65_vm0, %v598_v53, %v597_v52  ;;  %v599_v61 = vld [vmem:[%s1120_s0 + $0x82] ss:$16 sm:%s384_s27]   ;;  %v506_v62 = vsel %vm75_vm2, %v624_v56, %v501_v57  ;;  %s457_s23 = smov 192 }
  0x2d   :  { %v478_v63 = vsel %vm70_vm1, %v618_v59, %v473_v58  ;;  %v619_v0 = vld [vmem:[%s1120_s0 + $0x81] ss:$16 sm:%s480_s7]   ;;  %v387_v1 = vsel %vm70_vm1, %v599_v61, %v382_v60  ;;  %v600_v2 = vld [vmem:[%s1120_s0 + $0x82] ss:$16 sm:%s389_s10]  }
  0x2e   :  { %439 = vrot.lane.b32.xlu1 %v438_v43, %s639_s29  ;;  %v612_v4 = vld [vmem:[%s1120_s0 + $0x9] ss:$16 sm:%s447_s11]   ;;  %v483_v5 = vsel %vm75_vm2, %v619_v0, %v478_v63  ;;  %v392_v6 = vsel %vm75_vm2, %v600_v2, %v387_v1  ;;  %v2_v12 = vld [vmem:[%s1120_s0] ss:$8 sm:$0xf]  }
  0x2f   :  { %v613_v8 = vld [vmem:[%s1120_s0 + $0x9] ss:$16 sm:%s452_s20]   ;;  %v3_v13 = vld [vmem:[%s1120_s0] ss:$8 sm:$0xf0]  }
  0x30   :  { %416 = vrot.lane.b32.xlu0 %v415_v54, %s638_s14  ;;  %325 = vrot.lane.b32.xlu2 %v324_v55, %s637_s3  ;;  %s444_s3 = smov 3  ;;  %v614_v10 = vld [vmem:[%s1120_s0 + $0x9] ss:$16 sm:%s457_s23]   ;;  %v5_v14 = vsel %vm4_vm3, %v3_v13, %v2_v12 }
  0x31   :  { %v611_v3 = vld [vmem:[%s1120_s0 + $0x9] ss:$16 sm:%s444_s3]   ;;  %v515_v15 = vld [vmem:[%s1120_s0 + $0x40] ss:$8 sm:$0xf]  }
  0x32   :  { %v450_v7 = vsel %vm65_vm0, %v612_v4, %v611_v3  ;;  %7 = vst.msk [vmem:[%s1121_s1] ss:$8 sm:$0x3] %vm6_vm4, %v5_v14   ;;  %v516_v16 = vld [vmem:[%s1120_s0 + $0x40] ss:$8 sm:$0xf0]  }
  0x33   :  { %v455_v9 = vsel %vm70_vm1, %v613_v8, %v450_v7  ;;  %512 = vst.msk [vmem:[%s1121_s1 - $0xf] ss:$8 sm:$0xc] %vm6_vm4, %v5_v14   ;;  %v19_v17 = vsel %vm4_vm3, %v516_v16, %v515_v15  ;;  %v521_v18 = vld [vmem:[%s1120_s0 + $0x80] ss:$8 sm:$0xf]  }
  0x34   :  { %v460_v11 = vsel %vm75_vm2, %v614_v10, %v455_v9  ;;  %513 = vst.msk [vmem:[%s1121_s1 - $0x1e] ss:$8 sm:$0x30] %vm6_vm4, %v5_v14   ;;  %v522_v19 = vld [vmem:[%s1120_s0 + $0x80] ss:$8 sm:$0xf0]  }
  0x35   :  { %514 = vst.msk [vmem:[%s1121_s1 - $0x2d] ss:$8 sm:$0xc0] %vm6_vm4, %v5_v14   ;;  %v34_v20 = vsel %vm4_vm3, %v522_v19, %v521_v18  ;;  %v527_v21 = vld [vmem:[%s1120_s0 + $0xc0] ss:$8 sm:$0xf]  }
  0x36   :  { %507 = vrot.lane.b32.xlu1 %v506_v62, %s639_s29  ;;  %517 = vst.msk [vmem:[%s1121_s1 + $0x4] ss:$8 sm:$0x3] %vm6_vm4, %v19_v17   ;;  %v528_v22 = vld [vmem:[%s1120_s0 + $0xc0] ss:$8 sm:$0xf0]  }
  0x37   :  { %518 = vst.msk [vmem:[%s1121_s1 - $0xb] ss:$8 sm:$0xc] %vm6_vm4, %v19_v17   ;;  %v49_v23 = vsel %vm4_vm3, %v528_v22, %v527_v21 }
  0x38   :  { %484 = vrot.lane.b32.xlu0 %v483_v5, %s639_s29  ;;  %393 = vrot.lane.b32.xlu2 %v392_v6, %s638_s14  ;;  %519 = vst.msk [vmem:[%s1121_s1 - $0x1a] ss:$8 sm:$0x30] %vm6_vm4, %v19_v17  }
  0x39   :  { %520 = vst.msk [vmem:[%s1121_s1 - $0x29] ss:$8 sm:$0xc0] %vm6_vm4, %v19_v17  }
  0x3a   :  { %523 = vst.msk [vmem:[%s1121_s1 + $0x10] ss:$8 sm:$0x3] %vm6_vm4, %v34_v20  }
  0x3b   :  { %524 = vst.msk [vmem:[%s1121_s1 + $0x1] ss:$8 sm:$0xc] %vm6_vm4, %v34_v20  }
  0x3c   :  { %525 = vst.msk [vmem:[%s1121_s1 - $0xe] ss:$8 sm:$0x30] %vm6_vm4, %v34_v20  }
  0x3d   :  { %526 = vst.msk [vmem:[%s1121_s1 - $0x1d] ss:$8 sm:$0xc0] %vm6_vm4, %v34_v20  }
  0x3e   :  { %529 = vst.msk [vmem:[%s1121_s1 + $0x14] ss:$8 sm:$0x3] %vm6_vm4, %v49_v23  }
  0x3f   :  { %530 = vst.msk [vmem:[%s1121_s1 + $0x5] ss:$8 sm:$0xc] %vm6_vm4, %v49_v23  }
  0x40   :  { %461 = vrot.lane.b32.xlu2 %v460_v11, %s639_s29  ;;  %531 = vst.msk [vmem:[%s1121_s1 - $0xa] ss:$8 sm:$0x30] %vm6_vm4, %v49_v23  }
  0x41   :  { %532 = vst.msk [vmem:[%s1121_s1 - $0x19] ss:$8 sm:$0xc0] %vm6_vm4, %v49_v23  }
  0x72   :  { %v168_v24 = vpop.permute.xlu2 %167  }
  0x78   :  { %v123_v25 = vpop.permute.xlu1 %122  }
  0x7a   :  { %v78_v26 = vpop.permute.xlu0 %77   ;;  %v190_v27 = vpop.permute.xlu2 %189  }
  0x7b   :  { %80 = vst.msk [vmem:[%s1121_s1] sm:$0xff] %vm79_vm5, %v78_v26  }
  0x7c   :  { %125 = vst.msk [vmem:[%s1121_s1] sm:$0xff] %vm124_vm6, %v123_v25  }
  0x7d   :  { %170 = vst.msk [vmem:[%s1121_s1] sm:$0xff] %vm169_vm7, %v168_v24  }
  0x80   :  { %v145_v28 = vpop.permute.xlu1 %144  }
  0x82   :  { %v100_v29 = vpop.permute.xlu0 %99   ;;  %v258_v30 = vpop.permute.xlu2 %257  }
  0x83   :  { %541 = vst.msk [vmem:[%s1121_s1 + $0x10] sm:$0xff] %vm79_vm5, %v100_v29  }
  0x84   :  { %550 = vst.msk [vmem:[%s1121_s1 + $0x10] sm:$0xff] %vm124_vm6, %v145_v28  }
  0x85   :  { %559 = vst.msk [vmem:[%s1121_s1 + $0x10] sm:$0xff] %vm169_vm7, %v190_v27  }
  0x88   :  { %v235_v31 = vpop.permute.xlu1 %234  }
  0x89   :  { %568 = vst.msk [vmem:[%s1121_s1 + $0x10] sm:$0xff] %vm214_vm8, %v235_v31  }
  0x8a   :  { %v213_v32 = vpop.permute.xlu0 %212   ;;  %v326_v33 = vpop.permute.xlu2 %325  }
  0x8b   :  { %215 = vst.msk [vmem:[%s1121_s1] sm:$0xff] %vm214_vm8, %v213_v32  }
  0x8c   :  { %260 = vst.msk [vmem:[%s1121_s1] sm:$0xff] %vm259_vm9, %v258_v30  }
  0x8d   :  { %587 = vst.msk [vmem:[%s1121_s1 + $0x18] sm:$0xff] %vm259_vm9, %v326_v33  }
  0x90   :  { %v303_v34 = vpop.permute.xlu1 %302  }
  0x91   :  { %582 = vst.msk [vmem:[%s1121_s1 + $0x10] sm:$0xff] %vm259_vm9, %v303_v34  }
  0x92   :  { %v280_v35 = vpop.permute.xlu0 %279   ;;  %v394_v36 = vpop.permute.xlu2 %393  }
  0x93   :  { %577 = vst.msk [vmem:[%s1121_s1 + $0x8] sm:$0xff] %vm259_vm9, %v280_v35  }
  0x94   :  { %601 = vst.msk [vmem:[%s1121_s1 + $0x10] sm:$0xff] %vm350_vm10, %v394_v36  }
  0x98   :  { %v371_v37 = vpop.permute.xlu1 %370  }
  0x99   :  { %596 = vst.msk [vmem:[%s1121_s1 + $0x8] sm:$0xff] %vm350_vm10, %v371_v37  }
  0x9a   :  { %v349_v38 = vpop.permute.xlu0 %348   ;;  %v462_v39 = vpop.permute.xlu2 %461  }
  0x9b   :  { %351 = vst.msk [vmem:[%s1121_s1] sm:$0xff] %vm350_vm10, %v349_v38  }
  0x9c   :  { %615 = vst.msk [vmem:[%s1121_s1 + $0x8] sm:$0xff] %vm441_vm11, %v462_v39  }
  0xa0   :  { %v440_v40 = vpop.permute.xlu1 %439  }
  0xa1   :  { %442 = vst.msk [vmem:[%s1121_s1] sm:$0xff] %vm441_vm11, %v440_v40  }
  0xa2   :  { %v417_v41 = vpop.permute.xlu0 %416  }
  0xa3   :  { %606 = vst.msk [vmem:[%s1121_s1 + $0x18] sm:$0xff] %vm350_vm10, %v417_v41  }
  0xa8   :  { %v508_v42 = vpop.permute.xlu1 %507  }
  0xa9   :  { %625 = vst.msk [vmem:[%s1121_s1 + $0x18] sm:$0xff] %vm441_vm11, %v508_v42  }
  0xaa   :  { %v485_v43 = vpop.permute.xlu0 %484  }
  0xab   :  { %620 = vst.msk [vmem:[%s1121_s1 + $0x10] sm:$0xff] %vm441_vm11, %v485_v43  }

// kernel: han_layer_forward.1
= control target key start
LH: loop header
LB: loop body
LE: loop exit
PB: predicated region body
PF: predicated region fallthrough
CT: control target
= control target key end

     0   :  { %vm58_vm0 = vcmask 261120   ;;  %s2437_s0 = inlined_call_operand.vmem [shape: f32[16,32], index: 0, kind: input, shape index: {}]   ;;  %s2438_s1 = inlined_call_operand.vmem [shape: f32[32,192], index: 1, kind: input, shape index: {}]   ;;  %s2439_s2 = inlined_call_operand.vmem [shape: f32[192,192], index: 2, kind: input, shape index: {}]   ;;  %s2440_s3 = inlined_call_operand.vmem [shape: f32[192,192], index: 3, kind: input, shape index: {}]   ;;  %s2441_s4 = inlined_call_operand.vmem [shape: f32[16,192], index: 4, kind: input, shape index: {}]   ;;  %s2442_s5 = inlined_call_operand.vmem [shape: f32[16,192], index: 5, kind: input, shape index: {}]   ;;  %s2443_s6 = inlined_call_operand.vmem [shape: f32[192,12], index: 6, kind: input, shape index: {}]   ;;  %s2444_s7 = inlined_call_operand.vmem [shape: f32[12,192], index: 7, kind: input, shape index: {}]   ;;  %s2445_s8 = inlined_call_operand.vmem [shape: f32[64,16], index: 8, kind: input, shape index: {}]   ;;  %s2446_s9 = inlined_call_operand.vmem [shape: f32[64,64], index: 9, kind: input, shape index: {}]   ;;  %s2447_s10 = inlined_call_operand.vmem [shape: f32[3,64], index: 10, kind: input, shape index: {}]   ;;  %s2448_s11 = inlined_call_operand.vmem [shape: f32[64,128], index: 11, kind: input, shape index: {}]   ;;  %s2449_s12 = inlined_call_operand.vmem [shape: f32[1,128], index: 12, kind: input, shape index: {}]   ;;  %s2450_s13 = inlined_call_operand.vmem [shape: f32[128,1], index: 13, kind: input, shape index: {}]   ;;  %s2451_s14 = inlined_call_operand.hbm [shape: f32[16,64], index: 14, kind: output, shape index: {}]  }
   0x1   :  { %v56_v0 = vld [vmem:[%s2438_s1 + $0x30] sm:$0xff]  ;;  %v57_v1 = vld [vmem:[%s2438_s1 + $0x38] sm:$0xff]  ;;  %v54_v2 = vld [vmem:[%s2438_s1 + $0x20] sm:$0xff] }
   0x2   :  { %77 = vmatpush.msra.mxu0 %v56_v0  ;;  %100 = vmatpush.msra.mxu1 %v57_v1  ;;  %v55_v3 = vld [vmem:[%s2438_s1 + $0x28] sm:$0xff]  ;;  %v52_v4 = vld [vmem:[%s2438_s1 + $0x10] sm:$0xff]  ;;  %v53_v5 = vld [vmem:[%s2438_s1 + $0x18] sm:$0xff] }
   0x3   :  { %v189_v6 = vld [vmem:[%s2440_s3 + $0xf0] sm:$0xff]  ;;  %v50_v7 = vld [vmem:[%s2438_s1] sm:$0xff]  ;;  %v51_v8 = vld [vmem:[%s2438_s1 + $0x8] sm:$0xff] }
   0x4   :  { %78 = vmatpush.msra.mxu0 %v54_v2  ;;  %101 = vmatpush.msra.mxu1 %v55_v3  ;;  %v187_v9 = vld [vmem:[%s2440_s3 + $0xe0] sm:$0xff]  ;;  %v190_v11 = vld [vmem:[%s2440_s3 + $0xf8] sm:$0xff]  ;;  %v185_v12 = vld [vmem:[%s2440_s3 + $0xd0] sm:$0xff] }
   0x5   :  { %214 = vmatpush.msra.mxu2 %v189_v6  ;;  %v48_v10 = vld [vmem:[%s2437_s0] sm:$0xff]  ;;  %v188_v13 = vld [vmem:[%s2440_s3 + $0xe8] sm:$0xff]  ;;  %v186_v15 = vld [vmem:[%s2440_s3 + $0xd8] sm:$0xff] }
   0x6   :  { %79 = vmatpush.msra.mxu0 %v52_v4  ;;  %102 = vmatpush.msra.mxu1 %v53_v5  ;;  %v183_v14 = vld [vmem:[%s2440_s3 + $0xc0] sm:$0xff]  ;;  %v181_v16 = vld [vmem:[%s2440_s3 + $0xb0] sm:$0xff]  ;;  %v184_v17 = vld [vmem:[%s2440_s3 + $0xc8] sm:$0xff] }
   0x7   :  { %215 = vmatpush.msra.mxu2 %v187_v9  ;;  %v179_v18 = vld [vmem:[%s2440_s3 + $0xa0] sm:$0xff]  ;;  %v49_v19 = vld [vmem:[%s2437_s0 + $0x8] sm:$0xff]  ;;  %v182_v20 = vld [vmem:[%s2440_s3 + $0xb8] sm:$0xff] }
   0x8   :  { %80 = vmatpush.msra.mxu0 %v50_v7  ;;  %103 = vmatpush.msra.mxu1 %v51_v8  ;;  %v177_v21 = vld [vmem:[%s2440_s3 + $0x90] sm:$0xff]  ;;  %v180_v23 = vld [vmem:[%s2440_s3 + $0xa8] sm:$0xff]  ;;  %v175_v24 = vld [vmem:[%s2440_s3 + $0x80] sm:$0xff] }
   0x9   :  { %1262 = vmatmul.msk.f32.vlgmr.msra.gmra.mxu0 %vm58_vm0, %v48_v10  ;;  %1264 = vmatmul.msk.f32.vlgmr.msra.gmra.mxu1 %vm58_vm0, %v48_v10  ;;  %v205_v22 = vld [vmem:[%s2440_s3 + $0x170] sm:$0xff]  ;;  %v203_v25 = vld [vmem:[%s2440_s3 + $0x160] sm:$0xff]  ;;  %v178_v26 = vld [vmem:[%s2440_s3 + $0x98] sm:$0xff] }
   0xa   :  { %260 = vmatpush.msrb.mxu0 %v190_v11  ;;  %216 = vmatpush.msra.mxu2 %v185_v12  ;;  %v173_v27 = vld [vmem:[%s2440_s3 + $0x70] sm:$0xff]  ;;  %v176_v28 = vld [vmem:[%s2440_s3 + $0x88] sm:$0xff]  ;;  %v174_v30 = vld [vmem:[%s2440_s3 + $0x78] sm:$0xff] }
   0xb   :  { %245 = vmatpush.msrb.mxu1 %v205_v22  ;;  %v201_v29 = vld [vmem:[%s2440_s3 + $0x150] sm:$0xff]  ;;  %v171_v31 = vld [vmem:[%s2440_s3 + $0x60] sm:$0xff] }
   0xc   :  { %261 = vmatpush.msrb.mxu0 %v188_v13  ;;  %217 = vmatpush.msra.mxu2 %v183_v14  ;;  %v199_v32 = vld [vmem:[%s2440_s3 + $0x140] sm:$0xff]  ;;  %v169_v33 = vld [vmem:[%s2440_s3 + $0x50] sm:$0xff] }
   0xd   :  { %246 = vmatpush.msrb.mxu1 %v203_v25 }
   0xe   :  { %262 = vmatpush.msrb.mxu0 %v186_v15  ;;  %218 = vmatpush.msra.mxu2 %v181_v16 }
   0xf   :  { %247 = vmatpush.msrb.mxu1 %v201_v29 }
  0x10   :  { %263 = vmatpush.msrb.mxu0 %v184_v17  ;;  %219 = vmatpush.msra.mxu2 %v179_v18 }
  0x11   :  { %1263 = vmatmul.msk.f32.gmra.mxu0 %vm58_vm0, %v49_v19  ;;  %1265 = vmatmul.msk.f32.gmra.mxu1 %vm58_vm0, %v49_v19 }
  0x12   :  { %264 = vmatpush.msrb.mxu0 %v182_v20  ;;  %220 = vmatpush.msra.mxu2 %v177_v21 }
  0x14   :  { %265 = vmatpush.msrb.mxu0 %v180_v23  ;;  %221 = vmatpush.msra.mxu2 %v175_v24 }
  0x16   :  { %266 = vmatpush.msrb.mxu0 %v178_v26  ;;  %222 = vmatpush.msra.mxu2 %v173_v27 }
  0x17   :  { %19 = vsyncpa [#allocation3], 0  ;;  %v197_v34 = vld [vmem:[%s2440_s3 + $0x130] sm:$0xff]  ;;  %v172_v35 = vld [vmem:[%s2440_s3 + $0x68] sm:$0xff]  ;;  %248 = vmatpush.msrb.mxu1 %v199_v32  ;;  %vm207_vm1 = vcmask 523264   ;;  %vm314_vm2 = vcmask 130048  }
  0x18   :  { %267 = vmatpush.msrb.mxu0 %v176_v28  ;;  %223 = vmatpush.msra.mxu2 %v171_v31  ;;  %v167_v36 = vld [vmem:[%s2440_s3 + $0x40] sm:$0xff]  ;;  %v170_v38 = vld [vmem:[%s2440_s3 + $0x58] sm:$0xff]  ;;  %v165_v39 = vld [vmem:[%s2440_s3 + $0x30] sm:$0xff]  ;;  %vm589_vm11 = vcmask 1043456   ;;  %vm582_vm12 = vcmask 97280   ;;  %s1250_s25 = sshll.u32 %s2451_s14, 4  ;;  %s1251_s25 = int_to_ptr.hbm [resolvable:$true] %s1250_s25 }
  0x19   :  { %v195_v37 = vld [vmem:[%s2440_s3 + $0x120] sm:$0xff]  ;;  %249 = vmatpush.msrb.mxu1 %v197_v34  ;;  %v193_v40 = vld [vmem:[%s2440_s3 + $0x110] sm:$0xff]  ;;  %v168_v41 = vld [vmem:[%s2440_s3 + $0x48] sm:$0xff]  ;;  %s1444_s26 = smov 128   ;;  %s1445_s27 = smov 8  }
  0x1a   :  { %268 = vmatpush.msrb.mxu0 %v174_v30  ;;  %224 = vmatpush.msra.mxu2 %v169_v33  ;;  %v163_v42 = vld [vmem:[%s2440_s3 + $0x20] sm:$0xff]  ;;  %v166_v43 = vld [vmem:[%s2440_s3 + $0x38] sm:$0xff]  ;;  %v161_v44 = vld [vmem:[%s2440_s3 + $0x10] sm:$0xff] }
  0x1b   :  { %250 = vmatpush.msrb.mxu1 %v195_v37  ;;  %v164_v45 = vld [vmem:[%s2440_s3 + $0x28] sm:$0xff]  ;;  %v159_v46 = vld [vmem:[%s2440_s3] sm:$0xff]  ;;  %v141_v47 = vld [vmem:[%s2439_s2 + $0xf0] sm:$0xff] }
  0x1c   :  { %269 = vmatpush.msrb.mxu0 %v172_v35  ;;  %225 = vmatpush.msra.mxu2 %v167_v36  ;;  %v162_v48 = vld [vmem:[%s2440_s3 + $0x18] sm:$0xff]  ;;  %v139_v49 = vld [vmem:[%s2439_s2 + $0xe0] sm:$0xff]  ;;  %v160_v50 = vld [vmem:[%s2440_s3 + $0x8] sm:$0xff] }
  0x1d   :  { %251 = vmatpush.msrb.mxu1 %v193_v40  ;;  %v142_v51 = vld [vmem:[%s2439_s2 + $0xf8] sm:$0xff]  ;;  %v137_v52 = vld [vmem:[%s2439_s2 + $0xd0] sm:$0xff]  ;;  %v140_v53 = vld [vmem:[%s2439_s2 + $0xe8] sm:$0xff] }
  0x1e   :  { %270 = vmatpush.msrb.mxu0 %v170_v38  ;;  %226 = vmatpush.msra.mxu2 %v165_v39  ;;  %v135_v54 = vld [vmem:[%s2439_s2 + $0xc0] sm:$0xff]  ;;  %v138_v55 = vld [vmem:[%s2439_s2 + $0xd8] sm:$0xff]  ;;  %v133_v56 = vld [vmem:[%s2439_s2 + $0xb0] sm:$0xff] }
  0x1f   :  { %v136_v57 = vld [vmem:[%s2439_s2 + $0xc8] sm:$0xff]  ;;  %v131_v58 = vld [vmem:[%s2439_s2 + $0xa0] sm:$0xff]  ;;  %v134_v59 = vld [vmem:[%s2439_s2 + $0xb8] sm:$0xff] }
  0x20   :  { %271 = vmatpush.msrb.mxu0 %v168_v41  ;;  %227 = vmatpush.msra.mxu2 %v163_v42  ;;  %v129_v60 = vld [vmem:[%s2439_s2 + $0x90] sm:$0xff]  ;;  %v132_v61 = vld [vmem:[%s2439_s2 + $0xa8] sm:$0xff]  ;;  %v130_v62 = vld [vmem:[%s2439_s2 + $0x98] sm:$0xff] }
  0x21   :  { %v191_v63 = vld [vmem:[%s2440_s3 + $0x100] sm:$0xff]  ;;  %v128_v1 = vld [vmem:[%s2439_s2 + $0x88] sm:$0xff]  ;;  %v206_v2 = vld [vmem:[%s2440_s3 + $0x178] sm:$0xff] }
  0x22   :  { %272 = vmatpush.msrb.mxu0 %v166_v43  ;;  %228 = vmatpush.msra.mxu2 %v161_v44  ;;  %v127_v0 = vld [vmem:[%s2439_s2 + $0x80] sm:$0xff]  ;;  %v125_v3 = vld [vmem:[%s2439_s2 + $0x70] sm:$0xff]  ;;  %v126_v4 = vld [vmem:[%s2439_s2 + $0x78] sm:$0xff]  ;;  %v1441_v44 = vmov 1.0  }
  0x23   :  { %252 = vmatpush.msrb.mxu1 %v191_v63  ;;  %v204_v5 = vld [vmem:[%s2440_s3 + $0x168] sm:$0xff]  ;;  %v123_v6 = vld [vmem:[%s2439_s2 + $0x60] sm:$0xff]  ;;  %v202_v8 = vld [vmem:[%s2440_s3 + $0x158] sm:$0xff] }
  0x24   :  { %273 = vmatpush.msrb.mxu0 %v164_v45  ;;  %229 = vmatpush.msra.mxu2 %v159_v46  ;;  %v124_v7 = vld [vmem:[%s2439_s2 + $0x68] sm:$0xff]  ;;  %v121_v9 = vld [vmem:[%s2439_s2 + $0x50] sm:$0xff]  ;;  %v122_v10 = vld [vmem:[%s2439_s2 + $0x58] sm:$0xff] }
  0x25   :  { %291 = vmatpush.msra.mxu1 %v206_v2  ;;  %v200_v11 = vld [vmem:[%s2440_s3 + $0x148] sm:$0xff]  ;;  %v119_v12 = vld [vmem:[%s2439_s2 + $0x40] sm:$0xff]  ;;  %v198_v14 = vld [vmem:[%s2440_s3 + $0x138] sm:$0xff] }
  0x26   :  { %364 = vmatpush.msrb.mxu2 %v141_v47  ;;  %274 = vmatpush.msrb.mxu0 %v162_v48  ;;  %v120_v13 = vld [vmem:[%s2439_s2 + $0x48] sm:$0xff]  ;;  %v117_v15 = vld [vmem:[%s2439_s2 + $0x30] sm:$0xff]  ;;  %v118_v16 = vld [vmem:[%s2439_s2 + $0x38] sm:$0xff] }
  0x27   :  { %292 = vmatpush.msra.mxu1 %v204_v5  ;;  %v196_v17 = vld [vmem:[%s2440_s3 + $0x128] sm:$0xff]  ;;  %v115_v18 = vld [vmem:[%s2439_s2 + $0x20] sm:$0xff]  ;;  %v194_v20 = vld [vmem:[%s2440_s3 + $0x118] sm:$0xff] }
  0x28   :  { %365 = vmatpush.msrb.mxu2 %v139_v49  ;;  %275 = vmatpush.msrb.mxu0 %v160_v50  ;;  %v116_v19 = vld [vmem:[%s2439_s2 + $0x28] sm:$0xff]  ;;  %v113_v21 = vld [vmem:[%s2439_s2 + $0x10] sm:$0xff]  ;;  %v114_v22 = vld [vmem:[%s2439_s2 + $0x18] sm:$0xff] }
  0x29   :  { %293 = vmatpush.msra.mxu1 %v202_v8  ;;  %v192_v23 = vld [vmem:[%s2440_s3 + $0x108] sm:$0xff]  ;;  %v111_v24 = vld [vmem:[%s2439_s2] sm:$0xff]  ;;  %s1440_s3 = smov 64   ;;  %v308_v36 = vld [vmem:[%s2441_s4 + $0x10] sm:$0xff] }
  0x2a   :  { %410 = vmatpush.msra.mxu0 %v142_v51  ;;  %366 = vmatpush.msrb.mxu2 %v137_v52  ;;  %v112_v25 = vld [vmem:[%s2439_s2 + $0x8] sm:$0xff]  ;;  %v306_v40 = vld [vmem:[%s2441_s4] sm:$0xff]  ;;  %v157_v43 = vld [vmem:[%s2439_s2 + $0x170] sm:$0xff] }
  0x2b   :  { %294 = vmatpush.msra.mxu1 %v200_v11  ;;  %v155_v45 = vld [vmem:[%s2439_s2 + $0x160] sm:$0xff]  ;;  %v309_v48 = vld [vmem:[%s2441_s4 + $0x18] sm:$0xff]  ;;  %v153_v49 = vld [vmem:[%s2439_s2 + $0x150] sm:$0xff] }
  0x2c   :  { %411 = vmatpush.msra.mxu0 %v140_v53  ;;  %367 = vmatpush.msrb.mxu2 %v135_v54  ;;  %v307_v52 = vld [vmem:[%s2441_s4 + $0x8] sm:$0xff]  ;;  %v151_v53 = vld [vmem:[%s2439_s2 + $0x140] sm:$0xff]  ;;  %v146_v2 = vld [vmem:[%s2439_s2 + $0x118] sm:$0xff] }
  0x2d   :  { %295 = vmatpush.msra.mxu1 %v198_v14  ;;  %v152_v63 = vld [vmem:[%s2439_s2 + $0x148] sm:$0xff]  ;;  %v522_v5 = vld [vmem:[%s2443_s6 + $0xb0] sm:$0xff]  ;;  %v519_v8 = vld [vmem:[%s2443_s6 + $0x98] sm:$0xff] }
  0x2e   :  { %412 = vmatpush.msra.mxu0 %v138_v55  ;;  %368 = vmatpush.msrb.mxu2 %v133_v56  ;;  %v149_v55 = vld [vmem:[%s2439_s2 + $0x130] sm:$0xff]  ;;  %v516_v11 = vld [vmem:[%s2443_s6 + $0x80] sm:$0xff]  ;;  %v515_v14 = vld [vmem:[%s2443_s6 + $0x78] sm:$0xff] }
  0x2f   :  { %296 = vmatpush.msra.mxu1 %v196_v17  ;;  %v513_v17 = vld [vmem:[%s2443_s6 + $0x68] sm:$0xff] }
  0x30   :  { %413 = vmatpush.msra.mxu0 %v136_v57  ;;  %369 = vmatpush.msrb.mxu2 %v131_v58  ;;  %v158_v57 = vld [vmem:[%s2439_s2 + $0x178] sm:$0xff]  ;;  %v147_v58 = vld [vmem:[%s2439_s2 + $0x120] sm:$0xff] }
  0x31   :  { %297 = vmatpush.msra.mxu1 %v194_v20 }
  0x32   :  { %414 = vmatpush.msra.mxu0 %v134_v59  ;;  %370 = vmatpush.msrb.mxu2 %v129_v60  ;;  %v156_v59 = vld [vmem:[%s2439_s2 + $0x168] sm:$0xff]  ;;  %v145_v60 = vld [vmem:[%s2439_s2 + $0x110] sm:$0xff] }
  0x33   :  { %298 = vmatpush.msra.mxu1 %v192_v23  ;;  %v510_v23 = vld [vmem:[%s2443_s6 + $0x50] sm:$0xff] }
  0x34   :  { %415 = vmatpush.msra.mxu0 %v132_v61  ;;  %371 = vmatpush.msrb.mxu2 %v127_v0  ;;  %v154_v61 = vld [vmem:[%s2439_s2 + $0x158] sm:$0xff] }
  0x35   :  { %v150_v0 = vld [vmem:[%s2439_s2 + $0x138] sm:$0xff] }
  0x36   :  { %416 = vmatpush.msra.mxu0 %v130_v62  ;;  %372 = vmatpush.msrb.mxu2 %v125_v3  ;;  %v143_v62 = vld [vmem:[%s2439_s2 + $0x100] sm:$0xff]  ;;  %v144_v3 = vld [vmem:[%s2439_s2 + $0x108] sm:$0xff] }
  0x38   :  { %417 = vmatpush.msra.mxu0 %v128_v1  ;;  %373 = vmatpush.msrb.mxu2 %v123_v6  ;;  %v148_v1 = vld [vmem:[%s2439_s2 + $0x128] sm:$0xff] }
  0x39   :  { %v521_v6 = vld [vmem:[%s2443_s6 + $0xa8] sm:$0xff] }
  0x3a   :  { %418 = vmatpush.msra.mxu0 %v126_v4  ;;  %374 = vmatpush.msrb.mxu2 %v121_v9  ;;  %v523_v4 = vld [vmem:[%s2443_s6 + $0xb8] sm:$0xff]  ;;  %v518_v9 = vld [vmem:[%s2443_s6 + $0x90] sm:$0xff] }
  0x3c   :  { %419 = vmatpush.msra.mxu0 %v124_v7  ;;  %375 = vmatpush.msrb.mxu2 %v119_v12  ;;  %v520_v7 = vld [vmem:[%s2443_s6 + $0xa0] sm:$0xff] }
  0x3e   :  { %420 = vmatpush.msra.mxu0 %v122_v10  ;;  %376 = vmatpush.msrb.mxu2 %v117_v15  ;;  %v517_v10 = vld [vmem:[%s2443_s6 + $0x88] sm:$0xff]  ;;  %v514_v15 = vld [vmem:[%s2443_s6 + $0x70] sm:$0xff] }
  0x40   :  { %421 = vmatpush.msra.mxu0 %v120_v13  ;;  %377 = vmatpush.msrb.mxu2 %v115_v18  ;;  %v512_v18 = vld [vmem:[%s2443_s6 + $0x60] sm:$0xff] }
  0x42   :  { %422 = vmatpush.msra.mxu0 %v118_v16  ;;  %378 = vmatpush.msrb.mxu2 %v113_v21  ;;  %v511_v21 = vld [vmem:[%s2443_s6 + $0x58] sm:$0xff] }
  0x44   :  { %423 = vmatpush.msra.mxu0 %v116_v19  ;;  %379 = vmatpush.msrb.mxu2 %v111_v24 }
  0x46   :  { %424 = vmatpush.msra.mxu0 %v114_v22 }
  0x48   :  { %425 = vmatpush.msra.mxu0 %v112_v25 }
  0x86   :  { %v1795_v26 = vpop.f32.mrf.mxu0  ;;  %v1797_v27 = vpop.f32.mrf.mxu1 }
  0x87   :  { %230 = vmatmul.f32.vlgmr.msra.gmra.mxu2 %v1795_v26  ;;  %1266 = vmatmul.msk.f32.vlgmr.msrb.gmra.mxu1 %vm207_vm1, %v1797_v27 }
  0x88   :  { %276 = vmatmul.f32.vlgmr.msrb.gmra.mxu0 %v1795_v26 }
  0x8e   :  { %v1803_v28 = vpop.f32.mrf.mxu0  ;;  %v1805_v29 = vpop.f32.mrf.mxu1 }
  0x8f   :  { %233 = vmatmul.f32.gmra.mxu2 %v1803_v28  ;;  %1267 = vmatmul.msk.f32.gmra.mxu1 %vm207_vm1, %v1805_v29  ;;  %v1350_v30 = vpack.i.bf16 %v1795_v26, %v1803_v28 }
  0x90   :  { %279 = vmatmul.f32.gmra.mxu0 %v1803_v28 }
  0x91   :  { %1351 = vrot.lane.b32.xlu1 %v1350_v30, %s1440_s3  ;;  %v508_v30 = vld [vmem:[%s2443_s6 + $0x40] sm:$0xff] }
  0x97   :  { %1268 = vmatmul.msk.f32.vlgmr.msra.gmra.mxu1 %vm207_vm1, %v1797_v27  ;;  %380 = vmatmul.f32.vlgmr.msrb.gmra.mxu2 %v1795_v26 }
  0x98   :  { %426 = vmatmul.f32.vlgmr.msra.gmra.mxu0 %v1795_v26 }
  0x9f   :  { %1269 = vmatmul.msk.f32.gmra.mxu1 %vm207_vm1, %v1805_v29  ;;  %383 = vmatmul.f32.gmra.mxu2 %v1803_v28 }
  0xa0   :  { %429 = vmatmul.f32.gmra.mxu0 %v1803_v28 }
 0x104   :  { %v254_v31 = vpop.f32.mrf.mxu1 }
 0x105   :  { %v277_v34 = vpop.f32.mrf.mxu0 }
 0x10a   :  { %v231_v32 = vpop.f32.mrf.mxu2 }
 0x10b   :  { %v255_v37 = vadd.f32 %v254_v31, %v231_v32 }
 0x10c   :  { %v257_v33 = vpop.f32.mrf.mxu1 }
 0x10d   :  { %v310_v42 = vmul.f32 %v306_v40, %v255_v37  ;;  %v280_v46 = vpop.f32.mrf.mxu0  ;;  %v506_v40 = vld [vmem:[%s2443_s6 + $0x30] sm:$0xff] }
 0x112   :  { %v234_v35 = vpop.f32.mrf.mxu2 }
 0x113   :  { %v258_v38 = vadd.f32 %v257_v33, %v234_v35  ;;  %v507_v35 = vld [vmem:[%s2443_s6 + $0x38] sm:$0xff] }
 0x114   :  { %v300_v39 = vpop.f32.mrf.mxu1 }
 0x115   :  { %v312_v41 = vmul.f32 %v308_v36, %v258_v38  ;;  %v301_v50 = vadd.f32 %v300_v39, %v277_v34  ;;  %v427_v25 = vpop.f32.mrf.mxu0  ;;  %v469_v34 = vld [vmem:[%s2442_s5 + $0x8] sm:$0xff]  ;;  %v468_v38 = vld [vmem:[%s2442_s5] sm:$0xff] }
 0x116   :  { %vm473_vm5 = vcmp.gt.f32.partialorder %v469_v34, 0.0  ;;  %vm472_vm6 = vcmp.gt.f32.partialorder %v468_v38, 0.0 }
 0x117   :  { %332 = vmatpush.msra.mxu3 %v312_v41  ;;  %v311_v56 = vmul.f32 %v307_v52, %v301_v50 }
 0x119   :  { %333 = vmatpush.msra.mxu3 %v310_v42 }
 0x11a   :  { %1270 = vmatmul.msk.f32.vlgmr.msra.gmra.mxu3 %vm314_vm2, %v1441_v44  ;;  %v381_v19 = vpop.f32.mrf.mxu2 }
 0x11b   :  { %395 = vmatpush.msrb.mxu3 %v157_v43 }
 0x11c   :  { %v303_v47 = vpop.f32.mrf.mxu1 }
 0x11d   :  { %v304_v51 = vadd.f32 %v303_v47, %v280_v46  ;;  %396 = vmatpush.msrb.mxu3 %v155_v45  ;;  %v430_v46 = vpop.f32.mrf.mxu0 }
 0x11f   :  { %v313_v54 = vmul.f32 %v309_v48, %v304_v51  ;;  %397 = vmatpush.msrb.mxu3 %v153_v49 }
 0x121   :  { %355 = vmatpush.msrb.mxu1 %v313_v54  ;;  %398 = vmatpush.msrb.mxu3 %v151_v53  ;;  %v471_v54 = vld [vmem:[%s2442_s5 + $0x18] sm:$0xff] }
 0x122   :  { %1271 = vmatmul.msk.f32.gmra.mxu3 %vm314_vm2, %v1441_v44  ;;  %v384_v36 = vpop.f32.mrf.mxu2  ;;  %vm475_vm9 = vcmp.gt.f32.partialorder %v471_v54, 0.0 }
 0x123   :  { %356 = vmatpush.msrb.mxu1 %v311_v56  ;;  %399 = vmatpush.msrb.mxu3 %v149_v55  ;;  %v470_v56 = vld [vmem:[%s2442_s5 + $0x10] sm:$0xff] }
 0x124   :  { %1272 = vmatmul.msk.f32.vlgmr.msrb.gmra.mxu1 %vm314_vm2, %v1441_v44  ;;  %vm474_vm10 = vcmp.gt.f32.partialorder %v470_v56, 0.0 }
 0x125   :  { %441 = vmatpush.msra.mxu1 %v158_v57  ;;  %400 = vmatpush.msrb.mxu3 %v147_v58 }
 0x127   :  { %442 = vmatpush.msra.mxu1 %v156_v59  ;;  %401 = vmatpush.msrb.mxu3 %v145_v60 }
 0x129   :  { %443 = vmatpush.msra.mxu1 %v154_v61  ;;  %402 = vmatpush.msrb.mxu3 %v143_v62 }
 0x12a   :  { %1274 = vmatmul.msk.f32.vlgmr.msrb.gmra.mxu3 %vm207_vm1, %v1797_v27 }
 0x12b   :  { %444 = vmatpush.msra.mxu1 %v152_v63  ;;  %530 = vmatpush.msra.mxu3 %v515_v14 }
 0x12c   :  { %1273 = vmatmul.msk.f32.gmra.mxu1 %vm314_vm2, %v1441_v44 }
 0x12d   :  { %445 = vmatpush.msra.mxu1 %v150_v0  ;;  %531 = vmatpush.msra.mxu3 %v514_v15  ;;  %v505_v0 = vld [vmem:[%s2443_s6 + $0x28] sm:$0xff] }
 0x12f   :  { %446 = vmatpush.msra.mxu1 %v148_v1  ;;  %532 = vmatpush.msra.mxu3 %v513_v17  ;;  %v504_v1 = vld [vmem:[%s2443_s6 + $0x20] sm:$0xff] }
 0x131   :  { %447 = vmatpush.msra.mxu1 %v146_v2  ;;  %533 = vmatpush.msra.mxu3 %v512_v18  ;;  %v503_v2 = vld [vmem:[%s2443_s6 + $0x18] sm:$0xff] }
 0x132   :  { %1275 = vmatmul.msk.f32.gmra.mxu3 %vm207_vm1, %v1805_v29 }
 0x133   :  { %448 = vmatpush.msra.mxu1 %v144_v3  ;;  %534 = vmatpush.msra.mxu3 %v511_v21  ;;  %v502_v3 = vld [vmem:[%s2443_s6 + $0x10] sm:$0xff]  ;;  %v2006_v21 = vld [vmem:[%s2445_s8 + $0x8] sm:$0xff] }
 0x134   :  { %1276 = vmatmul.msk.f32.vlgmr.msra.gmra.mxu1 %vm207_vm1, %v1797_v27 }
 0x135   :  { %561 = vmatpush.msrb.mxu1 %v523_v4  ;;  %535 = vmatpush.msra.mxu3 %v510_v23  ;;  %v501_v4 = vld [vmem:[%s2443_s6 + $0x8] sm:$0xff]  ;;  %v2020_v23 = vld [vmem:[%s2445_s8 + $0x18] sm:$0xff] }
 0x137   :  { %562 = vmatpush.msrb.mxu1 %v522_v5  ;;  %v500_v5 = vld [vmem:[%s2443_s6] sm:$0xff] }
 0x139   :  { %563 = vmatpush.msrb.mxu1 %v521_v6 }
 0x13b   :  { %564 = vmatpush.msrb.mxu1 %v520_v7 }
 0x13c   :  { %1277 = vmatmul.msk.f32.gmra.mxu1 %vm207_vm1, %v1805_v29 }
 0x13d   :  { %565 = vmatpush.msrb.mxu1 %v519_v8 }
 0x13f   :  { %566 = vmatpush.msrb.mxu1 %v518_v9 }
 0x141   :  { %567 = vmatpush.msrb.mxu1 %v517_v10 }
 0x143   :  { %568 = vmatpush.msrb.mxu1 %v516_v11 }
 0x145   :  { %725 = vmatpush.msra.mxu1 %v1803_v28  ;;  %v509_v28 = vld [vmem:[%s2443_s6 + $0x48] sm:$0xff] }
 0x146   :  { %536 = vmatpush.msra.mxu3 %v509_v28  ;;  %v2048_v28 = vld [vmem:[%s2445_s8 + $0x38] sm:$0xff] }
 0x147   :  { %726 = vmatpush.msra.mxu1 %v1795_v26 }
 0x148   :  { %537 = vmatpush.msra.mxu3 %v508_v30  ;;  %v580_v30 = vld [vmem:[%s2444_s7 + $0x10] sm:$0xf] }
 0x149   :  { %1280 = vmatpush.msk.msra.mxu2 %vm589_vm11, %v580_v30 }
 0x14a   :  { %538 = vmatpush.msra.mxu3 %v507_v35 }
 0x14c   :  { %539 = vmatpush.msra.mxu3 %v506_v40 }
 0x14e   :  { %540 = vmatpush.msra.mxu3 %v505_v0  ;;  %v2109_v0 = vld [vmem:[%s2446_s9] sm:$0xff] }
 0x150   :  { %541 = vmatpush.msra.mxu3 %v504_v1  ;;  %v1352_v1 = vpop.permute.xlu1 %1351 }
 0x152   :  { %542 = vmatpush.msra.mxu3 %v503_v2 }
 0x154   :  { %543 = vmatpush.msra.mxu3 %v502_v3  ;;  %v1353_v3 = vunpack.i.l.bf16 %v1352_v1 }
 0x156   :  { %544 = vmatpush.msra.mxu3 %v501_v4  ;;  %v1354_v4 = vunpack.i.h.bf16 %v1352_v1  ;;  %v2210_v1 = vld [vmem:[%s2450_s13 + $0x68] sm:$0xff] }
 0x158   :  { %545 = vmatpush.msra.mxu3 %v500_v5 }
 0x19d   :  { %v335_v12 = vpop.f32.mrf.mxu3 }
 0x19e   :  { %v382_v22 = vadd.f32 %v381_v19, %v335_v12 }
 0x1a1   :  { %v358_v13 = vpop.f32.mrf.mxu1 }
 0x1a2   :  { %v428_v31 = vadd.f32 %v427_v25, %v358_v13  ;;  %v2034_v25 = vld [vmem:[%s2445_s8 + $0x28] sm:$0xff] }
 0x1a5   :  { %v338_v16 = vpop.f32.mrf.mxu3 }
 0x1a6   :  { %v385_v39 = vadd.f32 %v384_v36, %v338_v16 }
 0x1a9   :  { %v361_v20 = vpop.f32.mrf.mxu1 }
 0x1aa   :  { %v431_v48 = vadd.f32 %v430_v46, %v361_v20  ;;  %v1999_v20 = vld [vmem:[%s2445_s8] sm:$0xff] }
 0x1ad   :  { %v404_v24 = vpop.f32.mrf.mxu3 }
 0x1ae   :  { %v405_v26 = vadd.f32 %v404_v24, %v382_v22  ;;  %v2013_v22 = vld [vmem:[%s2445_s8 + $0x10] sm:$0xff]  ;;  %v2027_v24 = vld [vmem:[%s2445_s8 + $0x20] sm:$0xff] }
 0x1b0   :  { %v460_v32 = vmul.f32 0.2, %v405_v26  ;;  %vm456_vm3 = vcmp.gt.f32.partialorder %v405_v26, 0.0 }
 0x1b1   :  { %v450_v33 = vpop.f32.mrf.mxu1 }
 0x1b2   :  { %v451_v37 = vadd.f32 %v450_v33, %v428_v31  ;;  %v464_v44 = vsel %vm456_vm3, %v405_v26, %v460_v32  ;;  %v2041_v26 = vld [vmem:[%s2445_s8 + $0x30] sm:$0xff]  ;;  %v581_v31 = vld [vmem:[%s2444_s7 + $0x18] sm:$0xf]  ;;  %v578_v32 = vld [vmem:[%s2444_s7] sm:$0xff] }
 0x1b3   :  { %v476_v49 = vsel %vm472_vm6, %v464_v44, -1e+30  ;;  %1283 = vmatpush.msk.msrb.mxu0 %vm589_vm11, %v581_v31  ;;  %v579_v33 = vld [vmem:[%s2444_s7 + $0x8] sm:$0xff]  ;;  %611 = vmatpush.msra.mxu2 %v578_v32 }
 0x1b4   :  { %vm457_vm4 = vcmp.gt.f32.partialorder %v451_v37, 0.0  ;;  %v461_v41 = vmul.f32 0.2, %v451_v37 }
 0x1b5   :  { %v407_v42 = vpop.f32.mrf.mxu3  ;;  %634 = vmatpush.msrb.mxu0 %v579_v33 }
 0x1b6   :  { %v408_v43 = vadd.f32 %v407_v42, %v385_v39  ;;  %v465_v45 = vsel %vm457_vm4, %v451_v37, %v461_v41 }
 0x1b7   :  { %v477_v47 = vsel %vm473_vm5, %v465_v45, -1e+30 }
 0x1b8   :  { %v480_v50 = vsel %vm207_vm1, %v477_v47, -inf  ;;  %v462_v51 = vmul.f32 0.2, %v408_v43  ;;  %vm458_vm7 = vcmp.gt.f32.partialorder %v408_v43, 0.0 }
 0x1b9   :  { %v453_v52 = vpop.f32.mrf.mxu1  ;;  %v481_v53 = vmax.f32 %v476_v49, %v480_v50  ;;  %v2072_v50 = vld [vmem:[%s2446_s9 + $0x38] sm:$0xff] }
 0x1ba   :  { %v454_v55 = vadd.f32 %v453_v52, %v431_v48  ;;  %v466_v58 = vsel %vm458_vm7, %v408_v43, %v462_v51  ;;  %v2077_v51 = vld [vmem:[%s2446_s9 + $0x28] sm:$0xff] }
 0x1bb   :  { %482 = vmax.xlane.f32.xlu0 %v481_v53  ;;  %v478_v61 = vsel %vm474_vm10, %v466_v58, -1e+30 }
 0x1bc   :  { %vm459_vm8 = vcmp.gt.f32.partialorder %v454_v55, 0.0  ;;  %v463_v57 = vmul.f32 0.2, %v454_v55 }
 0x1be   :  { %v467_v59 = vsel %vm459_vm8, %v454_v55, %v463_v57  ;;  %v2084_v55 = vld [vmem:[%s2446_s9 + $0x20] sm:$0xff]  ;;  %v2090_v57 = vld [vmem:[%s2446_s9 + $0x18] sm:$0xff] }
 0x1bf   :  { %v479_v60 = vsel %vm475_vm9, %v467_v59, -1e+30  ;;  %v2096_v59 = vld [vmem:[%s2446_s9 + $0x10] sm:$0xff] }
 0x1c0   :  { %v484_v62 = vsel %vm207_vm1, %v479_v60, -inf }
 0x1c1   :  { %v485_v63 = vmax.f32 %v478_v61, %v484_v62 }
 0x1c3   :  { %486 = vmax.xlane.f32.xlu0 %v485_v63 }
 0x22e   :  { %v483_v6 = vpop.xlane.xlu0 %482 }
 0x22f   :  { %v488_v7 = vsub.f32 %v476_v49, %v483_v6  ;;  %v489_v8 = vsub.f32 %v477_v47, %v483_v6  ;;  %v2067_v49 = vld [vmem:[%s2446_s9 + $0x30] sm:$0xff] }
 0x231   :  { %v492_v9 = vmul.f32 1.442695, %v488_v7  ;;  %v494_v10 = vmul.f32 1.442695, %v489_v8 }
 0x233   :  { %1362 = vpow2.f32 %v492_v9  ;;  %v2137_v9 = vld [vmem:[%s2448_s11 + $0x38] sm:$0xff] }
 0x234   :  { %1364 = vpow2.f32 %v494_v10  ;;  %820 = vmatpush.msrb.mxu3 %v2137_v9  ;;  %v2143_v10 = vld [vmem:[%s2448_s11 + $0x30] sm:$0xff] }
 0x236   :  { %v487_v11 = vpop.xlane.xlu0 %486  ;;  %821 = vmatpush.msrb.mxu3 %v2143_v10 }
 0x237   :  { %v490_v12 = vsub.f32 %v478_v61, %v487_v11  ;;  %v491_v13 = vsub.f32 %v479_v60, %v487_v11  ;;  %v2102_v61 = vld [vmem:[%s2446_s9 + $0x8] sm:$0xff] }
 0x238   :  { %v2149_v11 = vld [vmem:[%s2448_s11 + $0x28] sm:$0xff] }
 0x239   :  { %v1982_v14 = vpop.eup %1362  ;;  %v496_v15 = vmul.f32 1.442695, %v490_v12  ;;  %v498_v16 = vmul.f32 1.442695, %v491_v13  ;;  %822 = vmatpush.msrb.mxu3 %v2149_v11  ;;  %v2155_v12 = vld [vmem:[%s2448_s11 + $0x20] sm:$0xff]  ;;  %v2161_v13 = vld [vmem:[%s2448_s11 + $0x18] sm:$0xff] }
 0x23a   :  { %v1984_v17 = vpop.eup %1364  ;;  %546 = vmatmul.f32.vlgmr.msra.gmra.mxu3 %v1982_v14 }
 0x23b   :  { %1366 = vpow2.f32 %v496_v15  ;;  %1278 = vmatmul.msk.f32.vlgmr.msrb.gmra.mxu1 %vm207_vm1, %v1984_v17  ;;  %823 = vmatpush.msrb.mxu3 %v2155_v12  ;;  %v2173_v15 = vld [vmem:[%s2448_s11 + $0x8] sm:$0xff] }
 0x23c   :  { %1368 = vpow2.f32 %v498_v16  ;;  %v2179_v16 = vld [vmem:[%s2448_s11] sm:$0xff] }
 0x23d   :  { %824 = vmatpush.msrb.mxu3 %v2161_v13 }
 0x241   :  { %v1989_v18 = vpop.eup %1366 }
 0x242   :  { %v1991_v19 = vpop.eup %1368  ;;  %549 = vmatmul.f32.gmra.mxu3 %v1989_v18 }
 0x243   :  { %1279 = vmatmul.msk.f32.gmra.mxu1 %vm207_vm1, %v1991_v19 }
 0x24b   :  { %1286 = vmatmul.msk.f32.vlgmr.msra.gmra.mxu1 %vm314_vm2, %v1999_v20 }
 0x253   :  { %1287 = vmatmul.msk.f32.gmra.mxu1 %vm314_vm2, %v2006_v21 }
 0x25b   :  { %1288 = vmatmul.msk.f32.gmra.mxu1 %vm314_vm2, %v2013_v22 }
 0x263   :  { %1289 = vmatmul.msk.f32.gmra.mxu1 %vm314_vm2, %v2020_v23 }
 0x26b   :  { %1290 = vmatmul.msk.f32.gmra.mxu1 %vm314_vm2, %v2027_v24 }
 0x273   :  { %1291 = vmatmul.msk.f32.gmra.mxu1 %vm314_vm2, %v2034_v25 }
 0x27b   :  { %1292 = vmatmul.msk.f32.gmra.mxu1 %vm314_vm2, %v2041_v26 }
 0x283   :  { %1293 = vmatmul.msk.f32.gmra.mxu1 %vm314_vm2, %v2048_v28 }
 0x2b8   :  { %v570_v34 = vpop.f32.mrf.mxu1 }
 0x2bd   :  { %v547_v35 = vpop.f32.mrf.mxu3 }
 0x2be   :  { %v571_v36 = vadd.f32 %v570_v34, %v547_v35 }
 0x2c0   :  { %1370 = vrcp.f32 %v571_v36  ;;  %v573_v37 = vpop.f32.mrf.mxu1 }
 0x2c5   :  { %v550_v38 = vpop.f32.mrf.mxu3 }
 0x2c6   :  { %v1371_v39 = vpop.eup %1370  ;;  %v574_v40 = vadd.f32 %v573_v37, %v550_v38 }
 0x2c7   :  { %1281 = vmatmul.msk.f32.vlgmr.msra.gmra.mxu2 %vm582_vm12, %v1371_v39  ;;  %1284 = vmatmul.msk.f32.vlgmr.msrb.gmra.mxu0 %vm582_vm12, %v1371_v39 }
 0x2c8   :  { %1372 = vrcp.f32 %v574_v40  ;;  %v728_v41 = vpop.f32.mrf.mxu1 }
 0x2c9   :  { %v752_v2 = vmul.f32 %v728_v41, %v2109_v0 }
 0x2ce   :  { %v1373_v42 = vpop.eup %1372 }
 0x2cf   :  { %1282 = vmatmul.msk.f32.gmra.mxu2 %vm582_vm12, %v1373_v42  ;;  %1285 = vmatmul.msk.f32.gmra.mxu0 %vm582_vm12, %v1373_v42 }
 0x2d0   :  { %v731_v43 = vpop.f32.mrf.mxu1 }
 0x2d1   :  { %v753_v63 = vmul.f32 %v731_v43, %v2102_v61 }
 0x2d8   :  { %v734_v44 = vpop.f32.mrf.mxu1 }
 0x2d9   :  { %v754_v62 = vmul.f32 %v734_v44, %v2096_v59 }
 0x2e0   :  { %v737_v45 = vpop.f32.mrf.mxu1 }
 0x2e1   :  { %v755_v60 = vmul.f32 %v737_v45, %v2090_v57 }
 0x2e8   :  { %v740_v46 = vpop.f32.mrf.mxu1 }
 0x2e9   :  { %v756_v58 = vmul.f32 %v740_v46, %v2084_v55 }
 0x2f0   :  { %v743_v47 = vpop.f32.mrf.mxu1 }
 0x2f1   :  { %v757_v56 = vmul.f32 %v743_v47, %v2077_v51 }
 0x2f8   :  { %v746_v48 = vpop.f32.mrf.mxu1 }
 0x2f9   :  { %v758_v53 = vmul.f32 %v746_v48, %v2067_v49 }
 0x300   :  { %v749_v52 = vpop.f32.mrf.mxu1 }
 0x301   :  { %v759_v54 = vmul.f32 %v749_v52, %v2072_v50 }
 0x303   :  { %776 = vmatpush.msrb.mxu2 %v759_v54 }
 0x305   :  { %777 = vmatpush.msrb.mxu2 %v758_v53 }
 0x307   :  { %778 = vmatpush.msrb.mxu2 %v757_v56 }
 0x309   :  { %779 = vmatpush.msrb.mxu2 %v756_v58 }
 0x30b   :  { %780 = vmatpush.msrb.mxu2 %v755_v60  ;;  %v2198_v60 = vld [vmem:[%s2450_s13 + $0x78] sm:$0xff] }
 0x30c   :  { %837 = vmatpush.msra.mxu0 %v2198_v60 }
 0x30d   :  { %781 = vmatpush.msrb.mxu2 %v754_v62  ;;  %v2203_v62 = vld [vmem:[%s2450_s13 + $0x70] sm:$0xff] }
 0x30e   :  { %838 = vmatpush.msra.mxu0 %v2203_v62 }
 0x30f   :  { %782 = vmatpush.msrb.mxu2 %v753_v63 }
 0x310   :  { %839 = vmatpush.msra.mxu0 %v2210_v1 }
 0x311   :  { %783 = vmatpush.msrb.mxu2 %v752_v2 }
 0x313   :  { %882 = vmatpush.msra.mxu2 %v1353_v3  ;;  %v2218_v3 = vld [vmem:[%s2450_s13 + $0x60] sm:$0xff] }
 0x314   :  { %840 = vmatpush.msra.mxu0 %v2218_v3 }
 0x315   :  { %883 = vmatpush.msra.mxu2 %v1354_v4 }
 0x34a   :  { %v613_v5 = vpop.f32.mrf.mxu2 }
 0x34b   :  { %v642_v6 = vmul.f32 %v1982_v14, %v613_v5  ;;  %v2167_v14 = vld [vmem:[%s2448_s11 + $0x10] sm:$0xff]  ;;  %v2226_v5 = vld [vmem:[%s2450_s13 + $0x58] sm:$0xff] }
 0x34c   :  { %825 = vmatpush.msrb.mxu3 %v2167_v14  ;;  %841 = vmatpush.msra.mxu0 %v2226_v5 }
 0x34d   :  { %919 = vrot.lane.b32.xlu1 %v642_v6, %s1440_s3  ;;  %1294 = vmatmul.msk.f32.vlgmr.msrb.gmra.mxu2 %vm207_vm1, %v642_v6 }
 0x34e   :  { %826 = vmatpush.msrb.mxu3 %v2173_v15  ;;  %1139 = vmatpush.msrb.mxu2 %v2198_v60 }
 0x350   :  { %827 = vmatpush.msrb.mxu3 %v2179_v16  ;;  %1140 = vmatpush.msrb.mxu2 %v2203_v62 }
 0x352   :  { %v616_v7 = vpop.f32.mrf.mxu2  ;;  %1141 = vmatpush.msrb.mxu2 %v2210_v1 }
 0x353   :  { %v644_v8 = vmul.f32 %v1989_v18, %v616_v7  ;;  %v1358_v18 = vld [vmem:[%s2447_s10] ss:$0 sm:$0xff]  ;;  %v2234_v7 = vld [vmem:[%s2450_s13 + $0x50] sm:$0xff] }
 0x354   :  { %1142 = vmatpush.msrb.mxu2 %v2218_v3  ;;  %842 = vmatpush.msra.mxu0 %v2234_v7 }
 0x355   :  { %921 = vrot.lane.b32.xlu2 %v644_v8, %s1440_s3  ;;  %1295 = vmatmul.msk.f32.gmra.mxu2 %vm207_vm1, %v644_v8 }
 0x356   :  { %1143 = vmatpush.msrb.mxu2 %v2226_v5 }
 0x358   :  { %1144 = vmatpush.msrb.mxu2 %v2234_v7 }
 0x35d   :  { %1300 = vmatmul.msk.f32.vlgmr.msra.gmra.mxu2 %vm314_vm2, %v1999_v20 }
 0x365   :  { %1301 = vmatmul.msk.f32.gmra.mxu2 %vm314_vm2, %v2006_v21 }
 0x36d   :  { %1302 = vmatmul.msk.f32.gmra.mxu2 %vm314_vm2, %v2013_v22 }
 0x375   :  { %1303 = vmatmul.msk.f32.gmra.mxu2 %vm314_vm2, %v2020_v23 }
 0x37d   :  { %1304 = vmatmul.msk.f32.gmra.mxu2 %vm314_vm2, %v2027_v24 }
 0x385   :  { %1305 = vmatmul.msk.f32.gmra.mxu2 %vm314_vm2, %v2034_v25 }
 0x38d   :  { %1306 = vmatmul.msk.f32.gmra.mxu2 %vm314_vm2, %v2041_v26 }
 0x395   :  { %1307 = vmatmul.msk.f32.gmra.mxu2 %vm314_vm2, %v2048_v28 }
 0x3d0   :  { %v785_v30 = vpop.f32.mrf.mxu2 }
 0x3d1   :  { %v786_v31 = vadd.f32 %v1358_v18, %v785_v30 }
 0x3d3   :  { %v793_v32 = vmin.f32 %v786_v31, 0.0  ;;  %vm791_vm13 = vcmp.gt.f32.partialorder %v786_v31, 0.0 }
 0x3d5   :  { %v795_v33 = vmul.f32 1.442695, %v793_v32  ;;  %v920_v32 = vpop.permute.xlu1 %919 }
 0x3d7   :  { %1374 = vpow2.f32 %v795_v33  ;;  %v2258_v33 = vld [vmem:[%s2450_s13 + $0x38] sm:$0xff] }
 0x3d8   :  { %v788_v34 = vpop.f32.mrf.mxu2 }
 0x3d9   :  { %v789_v35 = vadd.f32 %v1358_v18, %v788_v34  ;;  %v2242_v18 = vld [vmem:[%s2450_s13 + $0x48] sm:$0xff]  ;;  %v2266_v34 = vld [vmem:[%s2450_s13 + $0x30] sm:$0xff] }
 0x3da   :  { %843 = vmatpush.msra.mxu0 %v2242_v18  ;;  %1145 = vmatpush.msrb.mxu2 %v2242_v18 }
 0x3db   :  { %v794_v36 = vmin.f32 %v789_v35, 0.0  ;;  %vm792_vm14 = vcmp.gt.f32.partialorder %v789_v35, 0.0 }
 0x3dd   :  { %v1375_v37 = vpop.eup %1374  ;;  %v797_v38 = vmul.f32 1.442695, %v794_v36  ;;  %v922_v36 = vpop.permute.xlu2 %921 }
 0x3de   :  { %v1296_v39 = vadd.f32 -1.0, %v1375_v37  ;;  %v2293_v37 = vld [vmem:[%s2450_s13 + $0x20] sm:$0xff] }
 0x3df   :  { %1376 = vpow2.f32 %v797_v38  ;;  %v2300_v38 = vld [vmem:[%s2450_s13 + $0x18] sm:$0xff] }
 0x3e0   :  { %v2185_v40 = vsel %vm791_vm13, %v786_v31, %v1296_v39  ;;  %v885_v41 = vpop.f32.mrf.mxu2  ;;  %v2250_v31 = vld [vmem:[%s2450_s13 + $0x40] sm:$0xff] }
 0x3e1   :  { %1298 = vmatmul.msk.f32.vlgmr.msrb.gmra.mxu3 %vm207_vm1, %v2185_v40  ;;  %v909_v30 = vmul.f32 %v885_v41, %v2109_v0  ;;  %844 = vmatpush.msra.mxu0 %v2250_v31  ;;  %v2321_v39 = vld [vmem:[%s2450_s13] sm:$0xff] }
 0x3e2   :  { %1146 = vmatpush.msrb.mxu2 %v2250_v31  ;;  %v2337_v41 = vld [vmem:[%s2449_s12] ss:$0 sm:$0xff] }
 0x3e3   :  { %845 = vmatpush.msra.mxu0 %v2258_v33 }
 0x3e4   :  { %1147 = vmatpush.msrb.mxu2 %v2258_v33 }
 0x3e5   :  { %v1377_v42 = vpop.eup %1376  ;;  %846 = vmatpush.msra.mxu0 %v2266_v34 }
 0x3e6   :  { %v1297_v43 = vadd.f32 -1.0, %v1377_v42  ;;  %1148 = vmatpush.msrb.mxu2 %v2266_v34 }
 0x3e8   :  { %v888_v44 = vpop.f32.mrf.mxu2  ;;  %v2189_v45 = vsel %vm792_vm14, %v789_v35, %v1297_v43  ;;  %v2274_v35 = vld [vmem:[%s2450_s13 + $0x28] sm:$0xff] }
 0x3e9   :  { %1299 = vmatmul.msk.f32.gmra.mxu3 %vm207_vm1, %v2189_v45  ;;  %v910_v8 = vmul.f32 %v888_v44, %v2102_v61  ;;  %847 = vmatpush.msra.mxu0 %v2274_v35 }
 0x3ea   :  { %1149 = vmatpush.msrb.mxu2 %v2274_v35 }
 0x3eb   :  { %848 = vmatpush.msra.mxu0 %v2293_v37 }
 0x3ec   :  { %1150 = vmatpush.msrb.mxu2 %v2293_v37 }
 0x3ed   :  { %849 = vmatpush.msra.mxu0 %v2300_v38 }
 0x3ee   :  { %1151 = vmatpush.msrb.mxu2 %v2300_v38 }
 0x3f0   :  { %v891_v46 = vpop.f32.mrf.mxu2 }
 0x3f1   :  { %v911_v6 = vmul.f32 %v891_v46, %v2096_v59 }
 0x3f8   :  { %v894_v47 = vpop.f32.mrf.mxu2 }
 0x3f9   :  { %v912_v4 = vmul.f32 %v894_v47, %v2090_v57 }
 0x400   :  { %v897_v48 = vpop.f32.mrf.mxu2 }
 0x401   :  { %v913_v2 = vmul.f32 %v897_v48, %v2084_v55 }
 0x408   :  { %v900_v52 = vpop.f32.mrf.mxu2 }
 0x409   :  { %v914_v63 = vmul.f32 %v900_v52, %v2077_v51 }
 0x410   :  { %v903_v53 = vpop.f32.mrf.mxu2 }
 0x411   :  { %v915_v58 = vmul.f32 %v903_v53, %v2067_v49 }
 0x418   :  { %v906_v54 = vpop.f32.mrf.mxu2 }
 0x419   :  { %v916_v56 = vmul.f32 %v906_v54, %v2072_v50 }
 0x41b   :  { %935 = vmatpush.msra.mxu3 %v916_v56 }
 0x41d   :  { %936 = vmatpush.msra.mxu3 %v915_v58 }
 0x41f   :  { %937 = vmatpush.msra.mxu3 %v914_v63 }
 0x421   :  { %938 = vmatpush.msra.mxu3 %v913_v2 }
 0x423   :  { %939 = vmatpush.msra.mxu3 %v912_v4 }
 0x425   :  { %940 = vmatpush.msra.mxu3 %v911_v6 }
 0x427   :  { %941 = vmatpush.msra.mxu3 %v910_v8 }
 0x429   :  { %942 = vmatpush.msra.mxu3 %v909_v30 }
 0x42a   :  { %1308 = vmatmul.msk.f32.vlgmr.msra.gmra.mxu3 %vm207_vm1, %v920_v32 }
 0x42b   :  { %976 = vmatpush.msrb.mxu3 %v2137_v9 }
 0x42d   :  { %977 = vmatpush.msrb.mxu3 %v2143_v10 }
 0x42f   :  { %978 = vmatpush.msrb.mxu3 %v2149_v11 }
 0x431   :  { %979 = vmatpush.msrb.mxu3 %v2155_v12 }
 0x432   :  { %1309 = vmatmul.msk.f32.gmra.mxu3 %vm207_vm1, %v922_v36 }
 0x433   :  { %980 = vmatpush.msrb.mxu3 %v2161_v13 }
 0x435   :  { %981 = vmatpush.msrb.mxu3 %v2167_v14 }
 0x437   :  { %982 = vmatpush.msrb.mxu3 %v2173_v15 }
 0x439   :  { %983 = vmatpush.msrb.mxu3 %v2179_v16 }
 0x43b   :  { %1030 = vmatpush.msra.mxu3 %v1805_v29  ;;  %v2305_v29 = vld [vmem:[%s2450_s13 + $0x10] sm:$0xff] }
 0x43c   :  { %850 = vmatpush.msra.mxu0 %v2305_v29  ;;  %1152 = vmatpush.msrb.mxu2 %v2305_v29 }
 0x43d   :  { %1031 = vmatpush.msra.mxu3 %v1797_v27  ;;  %v2312_v27 = vld [vmem:[%s2450_s13 + $0x8] sm:$0xff] }
 0x43e   :  { %851 = vmatpush.msra.mxu0 %v2312_v27  ;;  %1153 = vmatpush.msrb.mxu2 %v2312_v27 }
 0x440   :  { %852 = vmatpush.msra.mxu0 %v2321_v39  ;;  %1154 = vmatpush.msrb.mxu2 %v2321_v39 }
 0x442   :  { %993 = vmatpush.msrb.mxu0 %v2198_v60 }
 0x444   :  { %994 = vmatpush.msrb.mxu0 %v2203_v62 }
 0x446   :  { %995 = vmatpush.msrb.mxu0 %v2210_v1 }
 0x448   :  { %996 = vmatpush.msrb.mxu0 %v2218_v3 }
 0x44a   :  { %997 = vmatpush.msrb.mxu0 %v2226_v5 }
 0x44c   :  { %998 = vmatpush.msrb.mxu0 %v2234_v7 }
 0x44e   :  { %999 = vmatpush.msrb.mxu0 %v2242_v18 }
 0x450   :  { %1000 = vmatpush.msrb.mxu0 %v2250_v31 }
 0x452   :  { %1001 = vmatpush.msrb.mxu0 %v2258_v33 }
 0x454   :  { %1002 = vmatpush.msrb.mxu0 %v2266_v34 }
 0x456   :  { %1003 = vmatpush.msrb.mxu0 %v2274_v35 }
 0x458   :  { %1004 = vmatpush.msrb.mxu0 %v2293_v37 }
 0x45a   :  { %1005 = vmatpush.msrb.mxu0 %v2300_v38 }
 0x45c   :  { %1006 = vmatpush.msrb.mxu0 %v2305_v29 }
 0x45e   :  { %1007 = vmatpush.msrb.mxu0 %v2312_v27 }
 0x460   :  { %1008 = vmatpush.msrb.mxu0 %v2321_v39 }
 0x464   :  { %v829_v42 = vpop.f32.mrf.mxu3 }
 0x465   :  { %v830_v43 = vadd.f32 %v2337_v41, %v829_v42 }
 0x467   :  { %1378 = vtanh.f32 %v830_v43 }
 0x46c   :  { %v832_v44 = vpop.f32.mrf.mxu3 }
 0x46d   :  { %v1379_v46 = vpop.eup %1378  ;;  %v833_v47 = vadd.f32 %v2337_v41, %v832_v44 }
 0x46e   :  { %853 = vmatmul.f32.vlgmr.msra.gmra.mxu0 %v1379_v46 }
 0x46f   :  { %1380 = vtanh.f32 %v833_v47  ;;  %1122 = vmatpush.msra.mxu0 %v2137_v9  ;;  %v1360_v9 = vld [vmem:[%s2447_s10 + $0x1] ss:$0 sm:$0xff] }
 0x471   :  { %1123 = vmatpush.msra.mxu0 %v2143_v10 }
 0x473   :  { %1124 = vmatpush.msra.mxu0 %v2149_v11 }
 0x475   :  { %v1381_v48 = vpop.eup %1380  ;;  %1125 = vmatpush.msra.mxu0 %v2155_v12 }
 0x476   :  { %856 = vmatmul.f32.gmra.mxu0 %v1381_v48 }
 0x477   :  { %1126 = vmatpush.msra.mxu0 %v2161_v13 }
 0x479   :  { %1127 = vmatpush.msra.mxu0 %v2167_v14 }
 0x47b   :  { %1128 = vmatpush.msra.mxu0 %v2173_v15 }
 0x47d   :  { %1129 = vmatpush.msra.mxu0 %v2179_v16 }
 0x4ad   :  { %v944_v52 = vpop.f32.mrf.mxu3 }
 0x4ae   :  { %v945_v10 = vadd.f32 %v1360_v9, %v944_v52 }
 0x4b0   :  { %v952_v53 = vmin.f32 %v945_v10, 0.0  ;;  %vm950_vm15 = vcmp.gt.f32.partialorder %v945_v10, 0.0 }
 0x4b2   :  { %v954_v11 = vmul.f32 1.442695, %v952_v53 }
 0x4b4   :  { %1382 = vpow2.f32 %v954_v11 }
 0x4b5   :  { %v947_v54 = vpop.f32.mrf.mxu3 }
 0x4b6   :  { %v948_v12 = vadd.f32 %v1360_v9, %v947_v54  ;;  %v1442_v54 = vmov 0  }
 0x4b7   :  { %1357 = vset.pattern.permute.xlu1 %v1442_v54  ;;  %1355 = vset.pattern.permute.xlu2 %v1442_v54 }
 0x4b8   :  { %v953_v56 = vmin.f32 %v948_v12, 0.0  ;;  %vm951_vm0 = vcmp.gt.f32.partialorder %v948_v12, 0.0  ;;  %1356 = vset.pattern.permute.xlu0 %v1442_v54 }
 0x4ba   :  { %v1383_v58 = vpop.eup %1382  ;;  %v956_v13 = vmul.f32 1.442695, %v953_v56 }
 0x4bb   :  { %v1310_v63 = vadd.f32 -1.0, %v1383_v58 }
 0x4bc   :  { %1384 = vpow2.f32 %v956_v13 }
 0x4bd   :  { %v2359_v14 = vsel %vm950_vm15, %v945_v10, %v1310_v63 }
 0x4be   :  { %1312 = vmatmul.msk.f32.vlgmr.msrb.gmra.mxu3 %vm207_vm1, %v2359_v14 }
 0x4bf   :  { %1328 = vmatpush.msrb.mxu3 %v2198_v60 }
 0x4c1   :  { %1329 = vmatpush.msrb.mxu3 %v2203_v62 }
 0x4c2   :  { %v1385_v15 = vpop.eup %1384 }
 0x4c3   :  { %v1311_v16 = vadd.f32 -1.0, %v1385_v15  ;;  %1330 = vmatpush.msrb.mxu3 %v2210_v1 }
 0x4c5   :  { %v2366_v2 = vsel %vm951_vm0, %v948_v12, %v1311_v16  ;;  %1331 = vmatpush.msrb.mxu3 %v2218_v3 }
 0x4c6   :  { %1313 = vmatmul.msk.f32.gmra.mxu3 %vm207_vm1, %v2366_v2 }
 0x4c7   :  { %1332 = vmatpush.msrb.mxu3 %v2226_v5 }
 0x4c9   :  { %1333 = vmatpush.msrb.mxu3 %v2234_v7 }
 0x4cb   :  { %1334 = vmatpush.msrb.mxu3 %v2242_v18 }
 0x4cd   :  { %1335 = vmatpush.msrb.mxu3 %v2250_v31  ;;  %v636_v31 = vpop.f32.mrf.mxu0 }
 0x4ce   :  { %1314 = vmatmul.msk.f32.vlgmr.msra.gmra.mxu3 %vm314_vm2, %v1999_v20 }
 0x4cf   :  { %1336 = vmatpush.msrb.mxu3 %v2258_v33 }
 0x4d1   :  { %1337 = vmatpush.msrb.mxu3 %v2266_v34 }
 0x4d3   :  { %1338 = vmatpush.msrb.mxu3 %v2274_v35 }
 0x4d5   :  { %1339 = vmatpush.msrb.mxu3 %v2293_v37 }
 0x4d6   :  { %1315 = vmatmul.msk.f32.gmra.mxu3 %vm314_vm2, %v2006_v21 }
 0x4d7   :  { %1340 = vmatpush.msrb.mxu3 %v2300_v38 }
 0x4d9   :  { %1341 = vmatpush.msrb.mxu3 %v2305_v29 }
 0x4db   :  { %1342 = vmatpush.msrb.mxu3 %v2312_v27 }
 0x4dd   :  { %1343 = vmatpush.msrb.mxu3 %v2321_v39 }
 0x4de   :  { %1316 = vmatmul.msk.f32.gmra.mxu3 %vm314_vm2, %v2013_v22 }
 0x4e6   :  { %1317 = vmatmul.msk.f32.gmra.mxu3 %vm314_vm2, %v2020_v23 }
 0x4ee   :  { %1318 = vmatmul.msk.f32.gmra.mxu3 %vm314_vm2, %v2027_v24 }
 0x4f6   :  { %1319 = vmatmul.msk.f32.gmra.mxu3 %vm314_vm2, %v2034_v25 }
 0x4fe   :  { %1320 = vmatmul.msk.f32.gmra.mxu3 %vm314_vm2, %v2041_v26 }
 0x506   :  { %1321 = vmatmul.msk.f32.gmra.mxu3 %vm314_vm2, %v2048_v28 }
 0x541   :  { %v985_v20 = vpop.f32.mrf.mxu3 }
 0x542   :  { %v986_v21 = vadd.f32 %v2337_v41, %v985_v20 }
 0x544   :  { %1386 = vtanh.f32 %v986_v21 }
 0x549   :  { %v988_v22 = vpop.f32.mrf.mxu3 }
 0x54a   :  { %v1387_v60 = vpop.eup %1386  ;;  %v989_v23 = vadd.f32 %v2337_v41, %v988_v22 }
 0x54b   :  { %1009 = vmatmul.f32.vlgmr.msrb.gmra.mxu0 %v1387_v60 }
 0x54c   :  { %1388 = vtanh.f32 %v989_v23 }
 0x551   :  { %v1033_v24 = vpop.f32.mrf.mxu3 }
 0x552   :  { %v1389_v62 = vpop.eup %1388 }
 0x553   :  { %1012 = vmatmul.f32.gmra.mxu0 %v1389_v62 }
 0x559   :  { %v1036_v25 = vpop.f32.mrf.mxu3 }
 0x55a   :  { %v1058_v33 = vmul.f32 %v1036_v25, %v2102_v61 }
 0x561   :  { %v1039_v1 = vpop.f32.mrf.mxu3 }
 0x562   :  { %v1059_v32 = vmul.f32 %v1039_v1, %v2096_v59 }
 0x569   :  { %v1042_v3 = vpop.f32.mrf.mxu3 }
 0x56a   :  { %v1060_v30 = vmul.f32 %v1042_v3, %v2090_v57  ;;  %v1361_v57 = vld [vmem:[%s2447_s10 + $0x2] ss:$0 sm:$0xff]  ;;  %s1443_s10 = smov [#allocation2]  }
 0x56b   :  { %s1248_s9 = sshll.u32 %s1443_s10, 4  ;;  %s1249_s9 = int_to_ptr.vmem [resolvable:$true] %s1248_s9 }
 0x571   :  { %v1045_v26 = vpop.f32.mrf.mxu3 }
 0x572   :  { %v1061_v18 = vmul.f32 %v1045_v26, %v2084_v55 }
 0x579   :  { %v1048_v4 = vpop.f32.mrf.mxu3 }
 0x57a   :  { %v1062_v8 = vmul.f32 %v1048_v4, %v2077_v51  ;;  %v639_v51 = vpop.f32.mrf.mxu0 }
 0x57b   :  { %v645_v55 = vmul.f32 %v1991_v19, %v639_v51 }
 0x581   :  { %v1051_v5 = vpop.f32.mrf.mxu3 }
 0x582   :  { %v1063_v7 = vmul.f32 %v1051_v5, %v2067_v49  ;;  %v643_v49 = vmul.f32 %v1984_v17, %v636_v31  ;;  %v854_v43 = vpop.f32.mrf.mxu0 }
 0x589   :  { %v1054_v28 = vpop.f32.mrf.mxu3 }
 0x58a   :  { %v1064_v6 = vmul.f32 %v1054_v28, %v2072_v50  ;;  %v1057_v50 = vmul.f32 %v1033_v24, %v2109_v0  ;;  %v857_v44 = vpop.f32.mrf.mxu0 }
 0x58c   :  { %1081 = vmatpush.msrb.mxu1 %v1064_v6 }
 0x58e   :  { %1082 = vmatpush.msrb.mxu1 %v1063_v7 }
 0x590   :  { %1083 = vmatpush.msrb.mxu1 %v1062_v8 }
 0x592   :  { %1084 = vmatpush.msrb.mxu1 %v1061_v18 }
 0x594   :  { %1085 = vmatpush.msrb.mxu1 %v1060_v30 }
 0x596   :  { %1086 = vmatpush.msrb.mxu1 %v1059_v32 }
 0x598   :  { %1087 = vmatpush.msrb.mxu1 %v1058_v33 }
 0x59a   :  { %1088 = vmatpush.msrb.mxu1 %v1057_v50 }
 0x59b   :  { %1322 = vmatmul.msk.f32.vlgmr.msrb.gmra.mxu1 %vm207_vm1, %v643_v49 }
 0x5a3   :  { %1323 = vmatmul.msk.f32.gmra.mxu1 %vm207_vm1, %v645_v55 }
 0x5c8   :  { %v1010_v46 = vpop.f32.mrf.mxu0 }
 0x5c9   :  { %v1162_v12 = vmax.f32 %v854_v43, %v1010_v46 }
 0x5d0   :  { %v1013_v47 = vpop.f32.mrf.mxu0 }
 0x5d1   :  { %v1163_v21 = vmax.f32 %v857_v44, %v1013_v47 }
 0x618   :  { %v1090_v59 = vpop.f32.mrf.mxu1 }
 0x619   :  { %v1091_v61 = vadd.f32 %v1361_v57, %v1090_v59 }
 0x61b   :  { %v1098_v34 = vmin.f32 %v1091_v61, 0.0  ;;  %vm1096_vm2 = vcmp.gt.f32.partialorder %v1091_v61, 0.0 }
 0x61d   :  { %v1100_v35 = vmul.f32 1.442695, %v1098_v34 }
 0x61f   :  { %1390 = vpow2.f32 %v1100_v35 }
 0x620   :  { %v1093_v0 = vpop.f32.mrf.mxu1 }
 0x621   :  { %v1094_v36 = vadd.f32 %v1361_v57, %v1093_v0 }
 0x623   :  { %v1099_v17 = vmin.f32 %v1094_v36, 0.0  ;;  %vm1097_vm3 = vcmp.gt.f32.partialorder %v1094_v36, 0.0 }
 0x625   :  { %v1391_v37 = vpop.eup %1390  ;;  %v1102_v38 = vmul.f32 1.442695, %v1099_v17 }
 0x626   :  { %v1324_v29 = vadd.f32 -1.0, %v1391_v37 }
 0x627   :  { %1392 = vpow2.f32 %v1102_v38 }
 0x628   :  { %v2416_v19 = vsel %vm1096_vm2, %v1091_v61, %v1324_v29 }
 0x629   :  { %1326 = vmatmul.msk.f32.vlgmr.msra.gmra.mxu0 %vm207_vm1, %v2416_v19 }
 0x62d   :  { %v1393_v27 = vpop.eup %1392 }
 0x62e   :  { %v1325_v39 = vadd.f32 -1.0, %v1393_v27 }
 0x630   :  { %v2420_v42 = vsel %vm1097_vm3, %v1094_v36, %v1325_v39 }
 0x631   :  { %1327 = vmatmul.msk.f32.gmra.mxu0 %vm207_vm1, %v2420_v42 }
 0x6a6   :  { %v1131_v48 = vpop.f32.mrf.mxu0 }
 0x6a7   :  { %v1132_v9 = vadd.f32 %v2337_v41, %v1131_v48 }
 0x6a9   :  { %1394 = vtanh.f32 %v1132_v9 }
 0x6ae   :  { %v1134_v52 = vpop.f32.mrf.mxu0 }
 0x6af   :  { %v1395_v10 = vpop.eup %1394  ;;  %v1135_v53 = vadd.f32 %v2337_v41, %v1134_v52 }
 0x6b0   :  { %1155 = vmatmul.f32.vlgmr.msrb.gmra.mxu2 %v1395_v10 }
 0x6b1   :  { %1396 = vtanh.f32 %v1135_v53 }
 0x6b7   :  { %v1397_v11 = vpop.eup %1396 }
 0x6b8   :  { %1158 = vmatmul.f32.vlgmr.msrb.gmra.mxu3 %v1397_v11 }
 0x733   :  { %v1156_v56 = vpop.f32.mrf.mxu2 }
 0x734   :  { %v1164_v58 = vmax.f32 %v1162_v12, %v1156_v56 }
 0x736   :  { %v1166_v13 = vsub.f32 %v854_v43, %v1164_v58  ;;  %v1172_v63 = vsub.f32 %v1010_v46, %v1164_v58  ;;  %v1178_v20 = vsub.f32 %v1156_v56, %v1164_v58 }
 0x738   :  { %v1168_v15 = vmul.f32 1.442695, %v1166_v13  ;;  %v1174_v16 = vmul.f32 1.442695, %v1172_v63  ;;  %v1180_v22 = vmul.f32 1.442695, %v1178_v20 }
 0x73a   :  { %1398 = vpow2.f32 %v1168_v15 }
 0x73b   :  { %1400 = vpow2.f32 %v1174_v16  ;;  %v1159_v41 = vpop.f32.mrf.mxu3 }
 0x73c   :  { %v1165_v60 = vmax.f32 %v1163_v21, %v1159_v41  ;;  %1402 = vpow2.f32 %v1180_v22 }
 0x73e   :  { %v1167_v23 = vsub.f32 %v857_v44, %v1165_v60  ;;  %v1173_v24 = vsub.f32 %v1013_v47, %v1165_v60  ;;  %v1179_v3 = vsub.f32 %v1159_v41, %v1165_v60 }
 0x740   :  { %v1399_v62 = vpop.eup %1398  ;;  %v1170_v25 = vmul.f32 1.442695, %v1167_v23  ;;  %v1176_v1 = vmul.f32 1.442695, %v1173_v24  ;;  %v1182_v5 = vmul.f32 1.442695, %v1179_v3 }
 0x741   :  { %v1401_v26 = vpop.eup %1400  ;;  %1192 = vperm.xlu2 %1355, %v1399_v62  }
 0x742   :  { %1404 = vpow2.f32 %v1170_v25  ;;  %1204 = vperm.xlu1 %1357, %v1401_v26   ;;  %v1184_v4 = vadd.f32 %v1401_v26, %v1399_v62  ;;  %v1403_v28 = vpop.eup %1402 }
 0x743   :  { %1406 = vpow2.f32 %v1176_v1 }
 0x744   :  { %v1186_v6 = vadd.f32 %v1403_v28, %v1184_v4  ;;  %1408 = vpow2.f32 %v1182_v5 }
 0x746   :  { %1410 = vrcp.f32 %v1186_v6 }
 0x748   :  { %v1405_v7 = vpop.eup %1404 }
 0x749   :  { %v1407_v8 = vpop.eup %1406  ;;  %1197 = vperm.xlu0 %1356, %v1405_v7  }
 0x74a   :  { %1218 = vperm.xlu1 %1357, %v1403_v28   ;;  %1209 = vperm.xlu2 %1355, %v1407_v8   ;;  %v1185_v18 = vadd.f32 %v1407_v8, %v1405_v7  ;;  %v1409_v30 = vpop.eup %1408 }
 0x74c   :  { %v1187_v31 = vadd.f32 %v1409_v30, %v1185_v18  ;;  %v1411_v32 = vpop.eup %1410 }
 0x74e   :  { %1412 = vrcp.f32 %v1187_v31 }
 0x752   :  { %1223 = vperm.xlu2 %1355, %v1409_v30   ;;  %1232 = vperm.xlu1 %1357, %v1411_v32  }
 0x754   :  { %v1413_v33 = vpop.eup %1412 }
 0x75a   :  { %1237 = vperm.xlu2 %1355, %v1413_v33  }
 0x79b   :  { %v1193_v50 = vpop.permute.xlu2 %1192 }
 0x79c   :  { %v1200_v17 = vmul.f32 %v1193_v50, %v2185_v40 }
 0x7a4   :  { %v1210_v49 = vpop.permute.xlu2 %1209 }
 0x7a5   :  { %v1213_v59 = vmul.f32 %v1210_v49, %v2366_v2 }
 0x7ac   :  { %v1224_v55 = vpop.permute.xlu2 %1223 }
 0x7ad   :  { %v1227_v0 = vmul.f32 %v1224_v55, %v2420_v42 }
 0x7b4   :  { %v1205_v51 = vpop.permute.xlu1 %1204  ;;  %v1238_v27 = vpop.permute.xlu2 %1237 }
 0x7b5   :  { %v1212_v35 = vmul.f32 %v1205_v51, %v2359_v14 }
 0x7b7   :  { %v1214_v29 = vadd.f32 %v1212_v35, %v1200_v17 }
 0x7bb   :  { %v1198_v57 = vpop.permute.xlu0 %1197 }
 0x7bc   :  { %v1201_v61 = vmul.f32 %v1198_v57, %v2189_v45  ;;  %v1219_v34 = vpop.permute.xlu1 %1218 }
 0x7bd   :  { %v1226_v37 = vmul.f32 %v1219_v34, %v2416_v19 }
 0x7be   :  { %v1215_v36 = vadd.f32 %v1213_v59, %v1201_v61 }
 0x7bf   :  { %v1228_v2 = vadd.f32 %v1226_v37, %v1214_v29 }
 0x7c0   :  { %v1229_v38 = vadd.f32 %v1227_v0, %v1215_v36 }
 0x7c2   :  { %v1241_v45 = vmul.f32 %v1238_v27, %v1229_v38 }
 0x7c4   :  { %1243 = vst.msk [vmem:[#allocation2 + $0x8] sm:$0xff] %vm207_vm1, %v1241_v45  ;;  %v1233_v14 = vpop.permute.xlu1 %1232 }
 0x7c5   :  { %v1240_v39 = vmul.f32 %v1233_v14, %v1228_v2 }
 0x7c7   :  { %1242 = vst.msk [vmem:[#allocation2] sm:$0xff] %vm207_vm1, %v1240_v39 }
 0x7c8   :  { %1256 = dma.vmem_to_hbm [thread:$0]  %s1249_s9, 256, %s1251_s25, [#allocation3], %s1444_s26, %s1444_s26, %s1445_s27  }
 0x7c9   :  { %1438 = dma.done.wait [#allocation3], 256  }
 0x7ca   :  { %1439 = vsyncadd [#allocation3], 4294967040 }
 0x7cb   :  { %1261 = vsyncpa [#allocation3], 1 }

</bundles_post_ra>
